<compile_context>
chip_gen: v7x
topology: tpu7x:2x2x1
jax: 0.10.0
libtpu: 0.0.40
codegen_flags: <defaults>
</compile_context>

<pallas_src>
import functools

import jax
import jax.numpy as jnp
from jax.experimental import pallas as pl
from jax.experimental.pallas import tpu as pltpu

_VMEM = pl.BlockSpec(memory_space=pltpu.MemorySpace.VMEM)

_TAPS = tuple((dy, dx) for dy in (-1, 0, 1) for dx in (-1, 0, 1))


# ----------------------------- fused backbone ------------------------------ #

def _backbone_kernel(x_ref, mask_ref, sel_ref, w1_ref, b1_ref, w2_ref, b2_ref,
                     wf_ref, bf_ref, feat_ref,
                     pad1_ref, patch1_ref, pad2_ref, patch2_ref,
                     *, W, Nb, PAD):
    # x_ref      : (Cin, Nb)   flat (b, y, x)-major pixels, channels first
    # mask_ref   : (9, Nb)     per-tap validity (grid invariant, lane dense)
    # sel_ref    : (TB, Nb)    avg-pool selector pre-scaled by 1/(H*W)
    # w*/b*      : (Cout, 9*Cin) bf16 folded conv weights / (Cout, 1) f32 biases
    # wf/bf      : (C2, F_PAD) / (1, F_PAD) final linear (zero padded to 128 lanes)
    # feat_ref   : (1, TB, F_PAD) output block
    # pad*/patch*: VMEM scratch (lane-padded activation f32, bf16 im2col buffer)

    def conv3x3_relu(src, pad_ref, patch_ref, w_ref, b_ref):
        c = src.shape[0]
        # Lane-padded copy of the activation.  Only the pad strips are zeroed;
        # tap slices that run past the tile land in these strips (and the
        # border masks zero those positions anyway, but the strips must not
        # hold stale NaNs).
        pad_ref[:, :PAD] = jnp.zeros((c, PAD), jnp.float32)
        pad_ref[:, PAD + Nb:] = jnp.zeros((c, PAD), jnp.float32)
        pad_ref[:, PAD:PAD + Nb] = src
        # im2col in the transposed layout: 9 lane-shifted (c, Nb) slabs, masked
        # at image/row borders, cast to bf16 directly on store.
        for t, (dy, dx) in enumerate(_TAPS):
            s = dy * W + dx
            win = pad_ref[:, PAD + s:PAD + s + Nb]                   # (c, Nb)
            if s == 0:                                   # centre tap: always valid
                patch_ref[t * c:(t + 1) * c, :] = win.astype(jnp.bfloat16)
            else:
                patch_ref[t * c:(t + 1) * c, :] = (
                    win * mask_ref[t:t + 1, :]).astype(jnp.bfloat16)
        # Single folded-K MXU matmul: (Cout, 9c) @ (9c, Nb), f32 accumulation.
        acc = jnp.dot(w_ref[...], patch_ref[...],
                      preferred_element_type=jnp.float32)
        return jnp.maximum(acc + b_ref[...], 0.0)                    # (Cout, Nb)

    h1 = conv3x3_relu(x_ref[...], pad1_ref, patch1_ref, w1_ref, b1_ref)
    h2 = conv3x3_relu(h1, pad2_ref, patch2_ref, w2_ref, b2_ref)

    # Global average pool folded into one contraction with the precomputed
    # selector: contract on the pixel (lane) axis of both operands.
    pooled = jax.lax.dot_general(sel_ref[...], h2, (((1,), (1,)), ((), ())),
                                 preferred_element_type=jnp.float32)  # (TB, C2)
    feat_ref[0] = (jnp.dot(pooled, wf_ref[...],
                           preferred_element_type=jnp.float32) + bf_ref[...])


def backbone_forward(x_cf, mask, sel, w1, b1, w2, b2, wf, bf, *,
                     batch, height, width, batch_tile):
    """x_cf: (Cin, B*H*W) f32, channels first, pixels (b, y, x)-major."""
    H, W, TB = height, width, batch_tile
    HW = H * W
    Nb = TB * HW
    PAD = 128                       # lane-tile aligned; tap shifts need PAD >= W + 1
    assert batch % TB == 0
    assert Nb % 128 == 0
    assert W + 1 <= PAD
    c_in = x_cf.shape[0]
    c1, c2 = w1.shape[0], w2.shape[0]
    f_pad = wf.shape[-1]
    # bf16 patch slabs start at sublane offsets that are multiples of c; keep
    # them 32-bit-word aligned (bf16 packs 2 rows per word).
    assert c_in % 2 == 0 and c1 % 2 == 0
    grid_n = batch // TB

    kernel = functools.partial(_backbone_kernel, W=W, Nb=Nb, PAD=PAD)
    feat = pl.pallas_call(
        kernel,
        out_shape=jax.ShapeDtypeStruct((grid_n, TB, f_pad), jnp.float32),
        grid=(grid_n,),
        in_specs=[
            pl.BlockSpec((c_in, Nb), lambda i: (0, i)),
            pl.BlockSpec(mask.shape, lambda i: (0, 0)),    # grid invariant
            pl.BlockSpec(sel.shape, lambda i: (0, 0)),     # grid invariant
            pl.BlockSpec(w1.shape, lambda i: (0, 0)),
            pl.BlockSpec(b1.shape, lambda i: (0, 0)),
            pl.BlockSpec(w2.shape, lambda i: (0, 0)),
            pl.BlockSpec(b2.shape, lambda i: (0, 0)),
            pl.BlockSpec(wf.shape, lambda i: (0, 0)),
            pl.BlockSpec(bf.shape, lambda i: (0, 0)),
        ],
        out_specs=pl.BlockSpec((1, TB, f_pad), lambda i: (i, 0, 0)),
        scratch_shapes=[
            pltpu.VMEM((c_in, Nb + 2 * PAD), jnp.float32),   # lane-padded input
            pltpu.VMEM((9 * c_in, Nb), jnp.bfloat16),        # conv1 im2col (bf16)
            pltpu.VMEM((c1, Nb + 2 * PAD), jnp.float32),     # lane-padded conv1 act
            pltpu.VMEM((9 * c1, Nb), jnp.bfloat16),          # conv2 im2col (bf16)
        ],
        compiler_params=pltpu.CompilerParams(
            dimension_semantics=("parallel",)),   # v7x: batch tiles across 2 TCs
    )(x_cf, mask, sel, w1, b1, w2, b2, wf, bf)
    return feat.reshape(batch, f_pad)


# ------------------------------- gram kernel ------------------------------- #

def _gram_kernel(feat_ref, y_ref, m_ref, k_ref, *, dim_out):
    # feat: (B, F_PAD) backbone features (x | norm | zero padding), y: (B, L)
    # outputs: m = y @ y.T + K, k = K   (both (B, B))
    feat = feat_ref[...]
    x = feat[:, :dim_out]                                   # (B, D)
    xn = feat[:, :dim_out + 1]                              # (B, D+1) = x | norm
    bsz = x.shape[0]
    # Contractions on the last axes (no explicit transposes).
    xxt = jax.lax.dot_general(x, x, (((1,), (1,)), ((), ())),
                              preferred_element_type=jnp.float32)
    xnt = jax.lax.dot_general(xn, xn, (((1,), (1,)), ((), ())),
                              preferred_element_type=jnp.float32)
    nn = xnt - xxt                                          # norm_i * norm_j
    sq_col = jnp.sum(x * x, axis=-1, keepdims=True)         # (B, 1)
    ii = jax.lax.broadcasted_iota(jnp.int32, (bsz, bsz), 0)
    jj = jax.lax.broadcasted_iota(jnp.int32, (bsz, bsz), 1)
    eye = (ii == jj).astype(jnp.float32)
    sq_row = jnp.sum(xxt * eye, axis=0, keepdims=True)      # diag(xxt) as (1, B)
    d2 = jnp.maximum(sq_col + sq_row - 2.0 * xxt, 0.0)      # cdist(x, x)^2
    k = nn * jnp.exp(-d2)                                   # norm_i * gauss * norm_j
    yv = y_ref[...]
    yyt = jax.lax.dot_general(yv, yv, (((1,), (1,)), ((), ())),
                              preferred_element_type=jnp.float32)
    k_ref[...] = k
    m_ref[...] = yyt + k


def gram_matrices(feat, y, *, dim_out):
    bsz = feat.shape[0]
    return pl.pallas_call(
        functools.partial(_gram_kernel, dim_out=dim_out),
        out_shape=(jax.ShapeDtypeStruct((bsz, bsz), jnp.float32),
                   jax.ShapeDtypeStruct((bsz, bsz), jnp.float32)),
        in_specs=[_VMEM, _VMEM],
        out_specs=(_VMEM, _VMEM),
    )(feat, y)


# ------------------------------ model / forward ---------------------------- #

def init_params(key, dim_in, c1, c2, dim_out):
    # deterministic kaiming-normal-style init; gaussian kernel -> +1 "norm" output
    # Conv weights are stored pre-folded as (Cout, 9*Cin), column = tap*Cin + cin.
    feat_dim = dim_out + 1
    k1, k2, k3 = jax.random.split(key, 3)
    w1 = jax.random.normal(k1, (c1, 9 * dim_in), jnp.float32) * jnp.sqrt(2.0 / (9 * dim_in))
    b1 = jnp.zeros((c1, 1), jnp.float32)
    w2 = jax.random.normal(k2, (c2, 9 * c1), jnp.float32) * jnp.sqrt(2.0 / (9 * c1))
    b2 = jnp.zeros((c2, 1), jnp.float32)
    wf = jax.random.normal(k3, (c2, feat_dim), jnp.float32) * jnp.sqrt(2.0 / c2)
    bf = jnp.zeros((1, feat_dim), jnp.float32)
    return dict(w1=w1, b1=b1, w2=w2, b2=b2, wf=wf, bf=bf)


@functools.partial(jax.jit,
                   static_argnames=("dim_out", "alpha", "beta", "batch_tile"))
def forward(params, images_nchw, labels, *, dim_out, alpha, beta, batch_tile=4):
    B, C_in, H, W = images_nchw.shape
    HW = H * W
    TB = batch_tile
    Nb = TB * HW
    F = dim_out + 1
    F_PAD = ((F + 127) // 128) * 128

    # NCHW -> channels-first flat pixels (Cin, B*H*W): only the two leading
    # axes are permuted (cheaper than a full NCHW->NHWC relayout).
    x_cf = jnp.transpose(images_nchw, (1, 0, 2, 3)).reshape(C_in, B * HW)
    x_cf = x_cf.astype(jnp.float32)

    # Grid-invariant, trace-time-constant helpers (constant-folded by XLA):
    # lane-dense per-tap border masks and the pre-scaled avg-pool selector.
    n = jnp.arange(Nb, dtype=jnp.int32)
    xq, yq = n % W, (n // W) % H
    mask = jnp.stack(
        [((yq + dy >= 0) & (yq + dy < H) & (xq + dx >= 0) & (xq + dx < W))
         for dy in (-1, 0, 1) for dx in (-1, 0, 1)], axis=0).astype(jnp.float32)
    sel = ((n // HW)[None, :] == jnp.arange(TB, dtype=jnp.int32)[:, None])
    sel = sel.astype(jnp.float32) / HW

    # Lane-dense final features: pad the fc layer to 128 output lanes.
    wf_p = jnp.pad(params["wf"], ((0, 0), (0, F_PAD - F)))
    bf_p = jnp.pad(params["bf"], ((0, 0), (0, F_PAD - F)))

    feat = backbone_forward(
        x_cf, mask, sel,
        params["w1"].astype(jnp.bfloat16), params["b1"],
        params["w2"].astype(jnp.bfloat16), params["b2"],
        wf_p, bf_p,
        batch=B, height=H, width=W, batch_tile=TB)           # (B, F_PAD)

    y = labels.astype(jnp.float32)
    # The (x, norm) split is fused into the gram kernel (no wrapper slices).
    m, k = gram_matrices(feat, y, dim_out=dim_out)           # y@y.T + K  and  K
    # TODO(synk): symmetric eigendecomposition has no Pallas equivalent; eigvalsh runs in XLA.
    z_svals = jnp.sqrt(jnp.maximum(jnp.linalg.eigvalsh(m), 0.0))
    x_svals = jnp.sqrt(jnp.maximum(jnp.linalg.eigvalsh(k), 0.0))

    loss = z_svals.sum() - alpha * x_svals.sum() + beta * x_svals.max() ** 2
    return {"x_norm": x_svals.sum(), "z_norm": z_svals.sum(), "loss": loss}


if __name__ == "__main__":
    key = jax.random.PRNGKey(0)
    kp, ki, kl = jax.random.split(key, 3)

    B, C_IN, H, W = 8, 4, 16, 16
    DIM_OUT, N_LABELS = 8, 4
    ALPHA, BETA = 0.5, 0.1

    params = init_params(kp, dim_in=C_IN, c1=8, c2=16, dim_out=DIM_OUT)
    images = jax.random.normal(ki, (B, C_IN, H, W), jnp.float32)       # NCHW
    labels = jax.random.bernoulli(kl, 0.5, (B, N_LABELS)).astype(jnp.float32)

    out = forward(params, images, labels, dim_out=DIM_OUT, alpha=ALPHA, beta=BETA)
    jax.block_until_ready(out)
    print("KERNEL_OK")
</pallas_src>

<mosaic_0001>
module attributes {stable_mosaic.version = 11 : i64} {
  func.func @_gram_kernel(%arg0: memref<8x128xf32, #tpu.memory_space<vmem>>, %arg1: memref<8x4xf32, #tpu.memory_space<vmem>>, %arg2: memref<8x8xf32, #tpu.memory_space<vmem>>, %arg3: memref<8x8xf32, #tpu.memory_space<vmem>>) attributes {dimension_semantics = [], scalar_prefetch = 0 : i64, scratch_operands = 0 : i64, tpu.core_type = #tpu.core_type<tc>} {
    %c0 = arith.constant 0 : index
    %c0_0 = arith.constant 0 : index
    %0 = vector.load %arg0[%c0, %c0_0] : memref<8x128xf32, #tpu.memory_space<vmem>>, vector<8x128xf32>
    %1 = vector.extract_strided_slice %0 {offsets = [0, 0], sizes = [8, 8], strides = [1, 1]} : vector<8x128xf32> to vector<8x8xf32>
    %2 = vector.extract_strided_slice %0 {offsets = [0, 0], sizes = [8, 9], strides = [1, 1]} : vector<8x128xf32> to vector<8x9xf32>
    %cst = arith.constant dense<0.000000e+00> : vector<8x8xf32>
    %3 = tpu.matmul %1, %1, %cst {dimension_numbers = #tpu.dot_dimension_numbers<[1], [1], [0], [0], [0, 0, 1, 0], [], []>} : vector<8x8xf32>, vector<8x8xf32>, vector<8x8xf32> -> vector<8x8xf32>
    %cst_1 = arith.constant dense<0.000000e+00> : vector<8x8xf32>
    %4 = tpu.matmul %2, %2, %cst_1 {dimension_numbers = #tpu.dot_dimension_numbers<[1], [1], [0], [0], [0, 0, 1, 0], [], []>} : vector<8x9xf32>, vector<8x9xf32>, vector<8x8xf32> -> vector<8x8xf32>
    %5 = arith.subf %4, %3 : vector<8x8xf32>
    %6 = arith.mulf %1, %1 : vector<8x8xf32>
    %cst_2 = arith.constant dense<0.000000e+00> : vector<8xf32>
    %7 = vector.multi_reduction <add>, %6, %cst_2 [1] : vector<8x8xf32> to vector<8xf32>
    %8 = vector.shape_cast %7 : vector<8xf32> to vector<8x1xf32>
    %9 = tpu.iota {dimensions = array<i32: 0>} : vector<8x8xi32>
    %10 = tpu.iota {dimensions = array<i32: 1>} : vector<8x8xi32>
    %11 = arith.cmpi eq, %9, %10 : vector<8x8xi32>
    %12 = arith.extui %11 : vector<8x8xi1> to vector<8x8xi32>
    %13 = arith.sitofp %12 : vector<8x8xi32> to vector<8x8xf32>
    %14 = arith.mulf %3, %13 : vector<8x8xf32>
    %cst_3 = arith.constant dense<0.000000e+00> : vector<8xf32>
    %15 = vector.multi_reduction <add>, %14, %cst_3 [0] : vector<8x8xf32> to vector<8xf32>
    %16 = vector.shape_cast %15 : vector<8xf32> to vector<1x8xf32>
    %17 = vector.broadcast %8 : vector<8x1xf32> to vector<8x8xf32>
    %18 = vector.broadcast %16 : vector<1x8xf32> to vector<8x8xf32>
    %19 = arith.addf %17, %18 : vector<8x8xf32>
    %cst_4 = arith.constant 2.000000e+00 : f32
    %20 = vector.broadcast %cst_4 : f32 to vector<8x8xf32>
    %21 = arith.mulf %20, %3 : vector<8x8xf32>
    %22 = arith.subf %19, %21 : vector<8x8xf32>
    %cst_5 = arith.constant 0.000000e+00 : f32
    %23 = vector.broadcast %cst_5 : f32 to vector<8x8xf32>
    %24 = arith.maximumf %22, %23 : vector<8x8xf32>
    %cst_6 = arith.constant 0.000000e+00 : f32
    %25 = vector.broadcast %cst_6 : f32 to vector<8x8xf32>
    %26 = arith.subf %25, %24 : vector<8x8xf32>
    %27 = math.exp %26 : vector<8x8xf32>
    %28 = arith.mulf %5, %27 : vector<8x8xf32>
    %c0_7 = arith.constant 0 : index
    %c0_8 = arith.constant 0 : index
    %29 = vector.load %arg1[%c0_7, %c0_8] : memref<8x4xf32, #tpu.memory_space<vmem>>, vector<8x4xf32>
    %cst_9 = arith.constant dense<0.000000e+00> : vector<8x8xf32>
    %30 = tpu.matmul %29, %29, %cst_9 {dimension_numbers = #tpu.dot_dimension_numbers<[1], [1], [0], [0], [0, 0, 1, 0], [], []>} : vector<8x4xf32>, vector<8x4xf32>, vector<8x8xf32> -> vector<8x8xf32>
    %c0_10 = arith.constant 0 : index
    %c0_11 = arith.constant 0 : index
    %31 = vector.load %arg3[%c0_10, %c0_11] : memref<8x8xf32, #tpu.memory_space<vmem>>, vector<8x8xf32>
    tpu.vector_store %arg3[%c0_10, %c0_11], %28 {strides = array<i32>} : memref<8x8xf32, #tpu.memory_space<vmem>>, vector<8x8xf32>,
    %32 = arith.addf %30, %28 : vector<8x8xf32>
    %c0_12 = arith.constant 0 : index
    %c0_13 = arith.constant 0 : index
    %33 = vector.load %arg2[%c0_12, %c0_13] : memref<8x8xf32, #tpu.memory_space<vmem>>, vector<8x8xf32>
    tpu.vector_store %arg2[%c0_12, %c0_13], %32 {strides = array<i32>} : memref<8x8xf32, #tpu.memory_space<vmem>>, vector<8x8xf32>,
    return
  }
}

module attributes {stable_mosaic.version = 11 : i64} {
  func.func @_backbone_kernel(%arg0: i32, %arg1: memref<4x1024xf32, #tpu.memory_space<vmem>>, %arg2: memref<9x1024xf32, #tpu.memory_space<vmem>>, %arg3: memref<4x1024xf32, #tpu.memory_space<vmem>>, %arg4: memref<8x36xbf16, #tpu.memory_space<vmem>>, %arg5: memref<8x1xf32, #tpu.memory_space<vmem>>, %arg6: memref<16x72xbf16, #tpu.memory_space<vmem>>, %arg7: memref<16x1xf32, #tpu.memory_space<vmem>>, %arg8: memref<16x128xf32, #tpu.memory_space<vmem>>, %arg9: memref<1x128xf32, #tpu.memory_space<vmem>>, %arg10: memref<1x4x128xf32, #tpu.memory_space<vmem>>, %arg11: memref<4x1280xf32, #tpu.memory_space<vmem>>, %arg12: memref<36x1024xbf16, #tpu.memory_space<vmem>>, %arg13: memref<8x1280xf32, #tpu.memory_space<vmem>>, %arg14: memref<72x1024xbf16, #tpu.memory_space<vmem>>) attributes {dimension_semantics = [#tpu.dimension_semantics<parallel>], iteration_bounds = array<i64: 2>, scalar_prefetch = 0 : i64, scratch_operands = 4 : i64, tpu.core_type = #tpu.core_type<tc>, window_params = [{transform_indices = @transform_0, window_bounds = array<i64: 4, 1024>}, {pipeline_mode = #tpu.pipeline_mode<synchronous>, transform_indices = @transform_1, window_bounds = array<i64: 9, 1024>}, {pipeline_mode = #tpu.pipeline_mode<synchronous>, transform_indices = @transform_2, window_bounds = array<i64: 4, 1024>}, {pipeline_mode = #tpu.pipeline_mode<synchronous>, transform_indices = @transform_3, window_bounds = array<i64: 8, 36>}, {pipeline_mode = #tpu.pipeline_mode<synchronous>, transform_indices = @transform_4, window_bounds = array<i64: 8, 1>}, {pipeline_mode = #tpu.pipeline_mode<synchronous>, transform_indices = @transform_5, window_bounds = array<i64: 16, 72>}, {pipeline_mode = #tpu.pipeline_mode<synchronous>, transform_indices = @transform_6, window_bounds = array<i64: 16, 1>}, {pipeline_mode = #tpu.pipeline_mode<synchronous>, transform_indices = @transform_7, window_bounds = array<i64: 16, 128>}, {pipeline_mode = #tpu.pipeline_mode<synchronous>, transform_indices = @transform_8, window_bounds = array<i64: 1, 128>}, {transform_indices = @transform_9, window_bounds = array<i64: 1, 4, 128>}]} {
    %c0 = arith.constant 0 : index
    %c0_0 = arith.constant 0 : index
    %0 = vector.load %arg1[%c0, %c0_0] : memref<4x1024xf32, #tpu.memory_space<vmem>>, vector<4x1024xf32>
    %cst = arith.constant 0.000000e+00 : f32
    %1 = vector.broadcast %cst : f32 to vector<4x128xf32>
    %c0_1 = arith.constant 0 : index
    %c0_2 = arith.constant 0 : index
    %2 = vector.load %arg11[%c0_1, %c0_2] : memref<4x1280xf32, #tpu.memory_space<vmem>>, vector<4x128xf32>
    tpu.vector_store %arg11[%c0_1, %c0_2], %1 {strides = array<i32>} : memref<4x1280xf32, #tpu.memory_space<vmem>>, vector<4x128xf32>,
    %cst_3 = arith.constant 0.000000e+00 : f32
    %3 = vector.broadcast %cst_3 : f32 to vector<4x128xf32>
    %c0_4 = arith.constant 0 : index
    %c1152 = arith.constant 1152 : index
    %4 = vector.load %arg11[%c0_4, %c1152] : memref<4x1280xf32, #tpu.memory_space<vmem>>, vector<4x128xf32>
    tpu.vector_store %arg11[%c0_4, %c1152], %3 {strides = array<i32>} : memref<4x1280xf32, #tpu.memory_space<vmem>>, vector<4x128xf32>,
    %c0_5 = arith.constant 0 : index
    %c128 = arith.constant 128 : index
    %5 = vector.load %arg11[%c0_5, %c128] : memref<4x1280xf32, #tpu.memory_space<vmem>>, vector<4x1024xf32>
    tpu.vector_store %arg11[%c0_5, %c128], %0 {strides = array<i32>} : memref<4x1280xf32, #tpu.memory_space<vmem>>, vector<4x1024xf32>,
    %c0_6 = arith.constant 0 : index
    %c111 = arith.constant 111 : index
    %6 = vector.load %arg11[%c0_6, %c111] : memref<4x1280xf32, #tpu.memory_space<vmem>>, vector<4x1024xf32>
    %c0_7 = arith.constant 0 : index
    %c0_8 = arith.constant 0 : index
    %7 = vector.load %arg2[%c0_7, %c0_8] : memref<9x1024xf32, #tpu.memory_space<vmem>>, vector<1x1024xf32>
    %8 = vector.broadcast %7 : vector<1x1024xf32> to vector<4x1024xf32>
    %9 = arith.mulf %6, %8 : vector<4x1024xf32>
    %10 = arith.truncf %9 : vector<4x1024xf32> to vector<4x1024xbf16>
    %c0_9 = arith.constant 0 : index
    %c0_10 = arith.constant 0 : index
    %11 = vector.load %arg12[%c0_9, %c0_10] : memref<36x1024xbf16, #tpu.memory_space<vmem>>, vector<4x1024xbf16>
    tpu.vector_store %arg12[%c0_9, %c0_10], %10 {strides = array<i32>} : memref<36x1024xbf16, #tpu.memory_space<vmem>>, vector<4x1024xbf16>,
    %c0_11 = arith.constant 0 : index
    %c112 = arith.constant 112 : index
    %12 = vector.load %arg11[%c0_11, %c112] : memref<4x1280xf32, #tpu.memory_space<vmem>>, vector<4x1024xf32>
    %c1 = arith.constant 1 : index
    %c0_12 = arith.constant 0 : index
    %13 = vector.load %arg2[%c1, %c0_12] : memref<9x1024xf32, #tpu.memory_space<vmem>>, vector<1x1024xf32>
    %14 = vector.broadcast %13 : vector<1x1024xf32> to vector<4x1024xf32>
    %15 = arith.mulf %12, %14 : vector<4x1024xf32>
    %16 = arith.truncf %15 : vector<4x1024xf32> to vector<4x1024xbf16>
    %c4 = arith.constant 4 : index
    %c0_13 = arith.constant 0 : index
    %17 = vector.load %arg12[%c4, %c0_13] : memref<36x1024xbf16, #tpu.memory_space<vmem>>, vector<4x1024xbf16>
    tpu.vector_store %arg12[%c4, %c0_13], %16 {strides = array<i32>} : memref<36x1024xbf16, #tpu.memory_space<vmem>>, vector<4x1024xbf16>,
    %c0_14 = arith.constant 0 : index
    %c113 = arith.constant 113 : index
    %18 = vector.load %arg11[%c0_14, %c113] : memref<4x1280xf32, #tpu.memory_space<vmem>>, vector<4x1024xf32>
    %c2 = arith.constant 2 : index
    %c0_15 = arith.constant 0 : index
    %19 = vector.load %arg2[%c2, %c0_15] : memref<9x1024xf32, #tpu.memory_space<vmem>>, vector<1x1024xf32>
    %20 = vector.broadcast %19 : vector<1x1024xf32> to vector<4x1024xf32>
    %21 = arith.mulf %18, %20 : vector<4x1024xf32>
    %22 = arith.truncf %21 : vector<4x1024xf32> to vector<4x1024xbf16>
    %c8 = arith.constant 8 : index
    %c0_16 = arith.constant 0 : index
    %23 = vector.load %arg12[%c8, %c0_16] : memref<36x1024xbf16, #tpu.memory_space<vmem>>, vector<4x1024xbf16>
    tpu.vector_store %arg12[%c8, %c0_16], %22 {strides = array<i32>} : memref<36x1024xbf16, #tpu.memory_space<vmem>>, vector<4x1024xbf16>,
    %c0_17 = arith.constant 0 : index
    %c127 = arith.constant 127 : index
    %24 = vector.load %arg11[%c0_17, %c127] : memref<4x1280xf32, #tpu.memory_space<vmem>>, vector<4x1024xf32>
    %c3 = arith.constant 3 : index
    %c0_18 = arith.constant 0 : index
    %25 = vector.load %arg2[%c3, %c0_18] : memref<9x1024xf32, #tpu.memory_space<vmem>>, vector<1x1024xf32>
    %26 = vector.broadcast %25 : vector<1x1024xf32> to vector<4x1024xf32>
    %27 = arith.mulf %24, %26 : vector<4x1024xf32>
    %28 = arith.truncf %27 : vector<4x1024xf32> to vector<4x1024xbf16>
    %c12 = arith.constant 12 : index
    %c0_19 = arith.constant 0 : index
    %29 = vector.load %arg12[%c12, %c0_19] : memref<36x1024xbf16, #tpu.memory_space<vmem>>, vector<4x1024xbf16>
    tpu.vector_store %arg12[%c12, %c0_19], %28 {strides = array<i32>} : memref<36x1024xbf16, #tpu.memory_space<vmem>>, vector<4x1024xbf16>,
    %c0_20 = arith.constant 0 : index
    %c128_21 = arith.constant 128 : index
    %30 = vector.load %arg11[%c0_20, %c128_21] : memref<4x1280xf32, #tpu.memory_space<vmem>>, vector<4x1024xf32>
    %31 = arith.truncf %30 : vector<4x1024xf32> to vector<4x1024xbf16>
    %c16 = arith.constant 16 : index
    %c0_22 = arith.constant 0 : index
    %32 = vector.load %arg12[%c16, %c0_22] : memref<36x1024xbf16, #tpu.memory_space<vmem>>, vector<4x1024xbf16>
    tpu.vector_store %arg12[%c16, %c0_22], %31 {strides = array<i32>} : memref<36x1024xbf16, #tpu.memory_space<vmem>>, vector<4x1024xbf16>,
    %c0_23 = arith.constant 0 : index
    %c129 = arith.constant 129 : index
    %33 = vector.load %arg11[%c0_23, %c129] : memref<4x1280xf32, #tpu.memory_space<vmem>>, vector<4x1024xf32>
    %c5 = arith.constant 5 : index
    %c0_24 = arith.constant 0 : index
    %34 = vector.load %arg2[%c5, %c0_24] : memref<9x1024xf32, #tpu.memory_space<vmem>>, vector<1x1024xf32>
    %35 = vector.broadcast %34 : vector<1x1024xf32> to vector<4x1024xf32>
    %36 = arith.mulf %33, %35 : vector<4x1024xf32>
    %37 = arith.truncf %36 : vector<4x1024xf32> to vector<4x1024xbf16>
    %c20 = arith.constant 20 : index
    %c0_25 = arith.constant 0 : index
    %38 = vector.load %arg12[%c20, %c0_25] : memref<36x1024xbf16, #tpu.memory_space<vmem>>, vector<4x1024xbf16>
    tpu.vector_store %arg12[%c20, %c0_25], %37 {strides = array<i32>} : memref<36x1024xbf16, #tpu.memory_space<vmem>>, vector<4x1024xbf16>,
    %c0_26 = arith.constant 0 : index
    %c143 = arith.constant 143 : index
    %39 = vector.load %arg11[%c0_26, %c143] : memref<4x1280xf32, #tpu.memory_space<vmem>>, vector<4x1024xf32>
    %c6 = arith.constant 6 : index
    %c0_27 = arith.constant 0 : index
    %40 = vector.load %arg2[%c6, %c0_27] : memref<9x1024xf32, #tpu.memory_space<vmem>>, vector<1x1024xf32>
    %41 = vector.broadcast %40 : vector<1x1024xf32> to vector<4x1024xf32>
    %42 = arith.mulf %39, %41 : vector<4x1024xf32>
    %43 = arith.truncf %42 : vector<4x1024xf32> to vector<4x1024xbf16>
    %c24 = arith.constant 24 : index
    %c0_28 = arith.constant 0 : index
    %44 = vector.load %arg12[%c24, %c0_28] : memref<36x1024xbf16, #tpu.memory_space<vmem>>, vector<4x1024xbf16>
    tpu.vector_store %arg12[%c24, %c0_28], %43 {strides = array<i32>} : memref<36x1024xbf16, #tpu.memory_space<vmem>>, vector<4x1024xbf16>,
    %c0_29 = arith.constant 0 : index
    %c144 = arith.constant 144 : index
    %45 = vector.load %arg11[%c0_29, %c144] : memref<4x1280xf32, #tpu.memory_space<vmem>>, vector<4x1024xf32>
    %c7 = arith.constant 7 : index
    %c0_30 = arith.constant 0 : index
    %46 = vector.load %arg2[%c7, %c0_30] : memref<9x1024xf32, #tpu.memory_space<vmem>>, vector<1x1024xf32>
    %47 = vector.broadcast %46 : vector<1x1024xf32> to vector<4x1024xf32>
    %48 = arith.mulf %45, %47 : vector<4x1024xf32>
    %49 = arith.truncf %48 : vector<4x1024xf32> to vector<4x1024xbf16>
    %c28 = arith.constant 28 : index
    %c0_31 = arith.constant 0 : index
    %50 = vector.load %arg12[%c28, %c0_31] : memref<36x1024xbf16, #tpu.memory_space<vmem>>, vector<4x1024xbf16>
    tpu.vector_store %arg12[%c28, %c0_31], %49 {strides = array<i32>} : memref<36x1024xbf16, #tpu.memory_space<vmem>>, vector<4x1024xbf16>,
    %c0_32 = arith.constant 0 : index
    %c145 = arith.constant 145 : index
    %51 = vector.load %arg11[%c0_32, %c145] : memref<4x1280xf32, #tpu.memory_space<vmem>>, vector<4x1024xf32>
    %c8_33 = arith.constant 8 : index
    %c0_34 = arith.constant 0 : index
    %52 = vector.load %arg2[%c8_33, %c0_34] : memref<9x1024xf32, #tpu.memory_space<vmem>>, vector<1x1024xf32>
    %53 = vector.broadcast %52 : vector<1x1024xf32> to vector<4x1024xf32>
    %54 = arith.mulf %51, %53 : vector<4x1024xf32>
    %55 = arith.truncf %54 : vector<4x1024xf32> to vector<4x1024xbf16>
    %c32 = arith.constant 32 : index
    %c0_35 = arith.constant 0 : index
    %56 = vector.load %arg12[%c32, %c0_35] : memref<36x1024xbf16, #tpu.memory_space<vmem>>, vector<4x1024xbf16>
    tpu.vector_store %arg12[%c32, %c0_35], %55 {strides = array<i32>} : memref<36x1024xbf16, #tpu.memory_space<vmem>>, vector<4x1024xbf16>,
    %c0_36 = arith.constant 0 : index
    %c0_37 = arith.constant 0 : index
    %57 = vector.load %arg4[%c0_36, %c0_37] : memref<8x36xbf16, #tpu.memory_space<vmem>>, vector<8x36xbf16>
    %c0_38 = arith.constant 0 : index
    %c0_39 = arith.constant 0 : index
    %58 = vector.load %arg12[%c0_38, %c0_39] : memref<36x1024xbf16, #tpu.memory_space<vmem>>, vector<36x1024xbf16>
    %cst_40 = arith.constant dense<0.000000e+00> : vector<8x1024xf32>
    %59 = tpu.matmul %57, %58, %cst_40 {dimension_numbers = #tpu.dot_dimension_numbers<[1], [0], [0], [1], [0, 0, 1, 1], [], []>} : vector<8x36xbf16>, vector<36x1024xbf16>, vector<8x1024xf32> -> vector<8x1024xf32>
    %c0_41 = arith.constant 0 : index
    %c0_42 = arith.constant 0 : index
    %60 = vector.load %arg5[%c0_41, %c0_42] : memref<8x1xf32, #tpu.memory_space<vmem>>, vector<8x1xf32>
    %61 = vector.broadcast %60 : vector<8x1xf32> to vector<8x1024xf32>
    %62 = arith.addf %59, %61 : vector<8x1024xf32>
    %cst_43 = arith.constant 0.000000e+00 : f32
    %63 = vector.broadcast %cst_43 : f32 to vector<8x1024xf32>
    %64 = arith.maximumf %62, %63 : vector<8x1024xf32>
    %cst_44 = arith.constant 0.000000e+00 : f32
    %65 = vector.broadcast %cst_44 : f32 to vector<8x128xf32>
    %c0_45 = arith.constant 0 : index
    %c0_46 = arith.constant 0 : index
    %66 = vector.load %arg13[%c0_45, %c0_46] : memref<8x1280xf32, #tpu.memory_space<vmem>>, vector<8x128xf32>
    tpu.vector_store %arg13[%c0_45, %c0_46], %65 {strides = array<i32>} : memref<8x1280xf32, #tpu.memory_space<vmem>>, vector<8x128xf32>,
    %cst_47 = arith.constant 0.000000e+00 : f32
    %67 = vector.broadcast %cst_47 : f32 to vector<8x128xf32>
    %c0_48 = arith.constant 0 : index
    %c1152_49 = arith.constant 1152 : index
    %68 = vector.load %arg13[%c0_48, %c1152_49] : memref<8x1280xf32, #tpu.memory_space<vmem>>, vector<8x128xf32>
    tpu.vector_store %arg13[%c0_48, %c1152_49], %67 {strides = array<i32>} : memref<8x1280xf32, #tpu.memory_space<vmem>>, vector<8x128xf32>,
    %c0_50 = arith.constant 0 : index
    %c128_51 = arith.constant 128 : index
    %69 = vector.load %arg13[%c0_50, %c128_51] : memref<8x1280xf32, #tpu.memory_space<vmem>>, vector<8x1024xf32>
    tpu.vector_store %arg13[%c0_50, %c128_51], %64 {strides = array<i32>} : memref<8x1280xf32, #tpu.memory_space<vmem>>, vector<8x1024xf32>,
    %c0_52 = arith.constant 0 : index
    %c111_53 = arith.constant 111 : index
    %70 = vector.load %arg13[%c0_52, %c111_53] : memref<8x1280xf32, #tpu.memory_space<vmem>>, vector<8x1024xf32>
    %c0_54 = arith.constant 0 : index
    %c0_55 = arith.constant 0 : index
    %71 = vector.load %arg2[%c0_54, %c0_55] : memref<9x1024xf32, #tpu.memory_space<vmem>>, vector<1x1024xf32>
    %72 = vector.broadcast %71 : vector<1x1024xf32> to vector<8x1024xf32>
    %73 = arith.mulf %70, %72 : vector<8x1024xf32>
    %74 = arith.truncf %73 : vector<8x1024xf32> to vector<8x1024xbf16>
    %c0_56 = arith.constant 0 : index
    %c0_57 = arith.constant 0 : index
    %75 = vector.load %arg14[%c0_56, %c0_57] : memref<72x1024xbf16, #tpu.memory_space<vmem>>, vector<8x1024xbf16>
    tpu.vector_store %arg14[%c0_56, %c0_57], %74 {strides = array<i32>} : memref<72x1024xbf16, #tpu.memory_space<vmem>>, vector<8x1024xbf16>,
    %c0_58 = arith.constant 0 : index
    %c112_59 = arith.constant 112 : index
    %76 = vector.load %arg13[%c0_58, %c112_59] : memref<8x1280xf32, #tpu.memory_space<vmem>>, vector<8x1024xf32>
    %c1_60 = arith.constant 1 : index
    %c0_61 = arith.constant 0 : index
    %77 = vector.load %arg2[%c1_60, %c0_61] : memref<9x1024xf32, #tpu.memory_space<vmem>>, vector<1x1024xf32>
    %78 = vector.broadcast %77 : vector<1x1024xf32> to vector<8x1024xf32>
    %79 = arith.mulf %76, %78 : vector<8x1024xf32>
    %80 = arith.truncf %79 : vector<8x1024xf32> to vector<8x1024xbf16>
    %c8_62 = arith.constant 8 : index
    %c0_63 = arith.constant 0 : index
    %81 = vector.load %arg14[%c8_62, %c0_63] : memref<72x1024xbf16, #tpu.memory_space<vmem>>, vector<8x1024xbf16>
    tpu.vector_store %arg14[%c8_62, %c0_63], %80 {strides = array<i32>} : memref<72x1024xbf16, #tpu.memory_space<vmem>>, vector<8x1024xbf16>,
    %c0_64 = arith.constant 0 : index
    %c113_65 = arith.constant 113 : index
    %82 = vector.load %arg13[%c0_64, %c113_65] : memref<8x1280xf32, #tpu.memory_space<vmem>>, vector<8x1024xf32>
    %c2_66 = arith.constant 2 : index
    %c0_67 = arith.constant 0 : index
    %83 = vector.load %arg2[%c2_66, %c0_67] : memref<9x1024xf32, #tpu.memory_space<vmem>>, vector<1x1024xf32>
    %84 = vector.broadcast %83 : vector<1x1024xf32> to vector<8x1024xf32>
    %85 = arith.mulf %82, %84 : vector<8x1024xf32>
    %86 = arith.truncf %85 : vector<8x1024xf32> to vector<8x1024xbf16>
    %c16_68 = arith.constant 16 : index
    %c0_69 = arith.constant 0 : index
    %87 = vector.load %arg14[%c16_68, %c0_69] : memref<72x1024xbf16, #tpu.memory_space<vmem>>, vector<8x1024xbf16>
    tpu.vector_store %arg14[%c16_68, %c0_69], %86 {strides = array<i32>} : memref<72x1024xbf16, #tpu.memory_space<vmem>>, vector<8x1024xbf16>,
    %c0_70 = arith.constant 0 : index
    %c127_71 = arith.constant 127 : index
    %88 = vector.load %arg13[%c0_70, %c127_71] : memref<8x1280xf32, #tpu.memory_space<vmem>>, vector<8x1024xf32>
    %c3_72 = arith.constant 3 : index
    %c0_73 = arith.constant 0 : index
    %89 = vector.load %arg2[%c3_72, %c0_73] : memref<9x1024xf32, #tpu.memory_space<vmem>>, vector<1x1024xf32>
    %90 = vector.broadcast %89 : vector<1x1024xf32> to vector<8x1024xf32>
    %91 = arith.mulf %88, %90 : vector<8x1024xf32>
    %92 = arith.truncf %91 : vector<8x1024xf32> to vector<8x1024xbf16>
    %c24_74 = arith.constant 24 : index
    %c0_75 = arith.constant 0 : index
    %93 = vector.load %arg14[%c24_74, %c0_75] : memref<72x1024xbf16, #tpu.memory_space<vmem>>, vector<8x1024xbf16>
    tpu.vector_store %arg14[%c24_74, %c0_75], %92 {strides = array<i32>} : memref<72x1024xbf16, #tpu.memory_space<vmem>>, vector<8x1024xbf16>,
    %c0_76 = arith.constant 0 : index
    %c128_77 = arith.constant 128 : index
    %94 = vector.load %arg13[%c0_76, %c128_77] : memref<8x1280xf32, #tpu.memory_space<vmem>>, vector<8x1024xf32>
    %95 = arith.truncf %94 : vector<8x1024xf32> to vector<8x1024xbf16>
    %c32_78 = arith.constant 32 : index
    %c0_79 = arith.constant 0 : index
    %96 = vector.load %arg14[%c32_78, %c0_79] : memref<72x1024xbf16, #tpu.memory_space<vmem>>, vector<8x1024xbf16>
    tpu.vector_store %arg14[%c32_78, %c0_79], %95 {strides = array<i32>} : memref<72x1024xbf16, #tpu.memory_space<vmem>>, vector<8x1024xbf16>,
    %c0_80 = arith.constant 0 : index
    %c129_81 = arith.constant 129 : index
    %97 = vector.load %arg13[%c0_80, %c129_81] : memref<8x1280xf32, #tpu.memory_space<vmem>>, vector<8x1024xf32>
    %c5_82 = arith.constant 5 : index
    %c0_83 = arith.constant 0 : index
    %98 = vector.load %arg2[%c5_82, %c0_83] : memref<9x1024xf32, #tpu.memory_space<vmem>>, vector<1x1024xf32>
    %99 = vector.broadcast %98 : vector<1x1024xf32> to vector<8x1024xf32>
    %100 = arith.mulf %97, %99 : vector<8x1024xf32>
    %101 = arith.truncf %100 : vector<8x1024xf32> to vector<8x1024xbf16>
    %c40 = arith.constant 40 : index
    %c0_84 = arith.constant 0 : index
    %102 = vector.load %arg14[%c40, %c0_84] : memref<72x1024xbf16, #tpu.memory_space<vmem>>, vector<8x1024xbf16>
    tpu.vector_store %arg14[%c40, %c0_84], %101 {strides = array<i32>} : memref<72x1024xbf16, #tpu.memory_space<vmem>>, vector<8x1024xbf16>,
    %c0_85 = arith.constant 0 : index
    %c143_86 = arith.constant 143 : index
    %103 = vector.load %arg13[%c0_85, %c143_86] : memref<8x1280xf32, #tpu.memory_space<vmem>>, vector<8x1024xf32>
    %c6_87 = arith.constant 6 : index
    %c0_88 = arith.constant 0 : index
    %104 = vector.load %arg2[%c6_87, %c0_88] : memref<9x1024xf32, #tpu.memory_space<vmem>>, vector<1x1024xf32>
    %105 = vector.broadcast %104 : vector<1x1024xf32> to vector<8x1024xf32>
    %106 = arith.mulf %103, %105 : vector<8x1024xf32>
    %107 = arith.truncf %106 : vector<8x1024xf32> to vector<8x1024xbf16>
    %c48 = arith.constant 48 : index
    %c0_89 = arith.constant 0 : index
    %108 = vector.load %arg14[%c48, %c0_89] : memref<72x1024xbf16, #tpu.memory_space<vmem>>, vector<8x1024xbf16>
    tpu.vector_store %arg14[%c48, %c0_89], %107 {strides = array<i32>} : memref<72x1024xbf16, #tpu.memory_space<vmem>>, vector<8x1024xbf16>,
    %c0_90 = arith.constant 0 : index
    %c144_91 = arith.constant 144 : index
    %109 = vector.load %arg13[%c0_90, %c144_91] : memref<8x1280xf32, #tpu.memory_space<vmem>>, vector<8x1024xf32>
    %c7_92 = arith.constant 7 : index
    %c0_93 = arith.constant 0 : index
    %110 = vector.load %arg2[%c7_92, %c0_93] : memref<9x1024xf32, #tpu.memory_space<vmem>>, vector<1x1024xf32>
    %111 = vector.broadcast %110 : vector<1x1024xf32> to vector<8x1024xf32>
    %112 = arith.mulf %109, %111 : vector<8x1024xf32>
    %113 = arith.truncf %112 : vector<8x1024xf32> to vector<8x1024xbf16>
    %c56 = arith.constant 56 : index
    %c0_94 = arith.constant 0 : index
    %114 = vector.load %arg14[%c56, %c0_94] : memref<72x1024xbf16, #tpu.memory_space<vmem>>, vector<8x1024xbf16>
    tpu.vector_store %arg14[%c56, %c0_94], %113 {strides = array<i32>} : memref<72x1024xbf16, #tpu.memory_space<vmem>>, vector<8x1024xbf16>,
    %c0_95 = arith.constant 0 : index
    %c145_96 = arith.constant 145 : index
    %115 = vector.load %arg13[%c0_95, %c145_96] : memref<8x1280xf32, #tpu.memory_space<vmem>>, vector<8x1024xf32>
    %c8_97 = arith.constant 8 : index
    %c0_98 = arith.constant 0 : index
    %116 = vector.load %arg2[%c8_97, %c0_98] : memref<9x1024xf32, #tpu.memory_space<vmem>>, vector<1x1024xf32>
    %117 = vector.broadcast %116 : vector<1x1024xf32> to vector<8x1024xf32>
    %118 = arith.mulf %115, %117 : vector<8x1024xf32>
    %119 = arith.truncf %118 : vector<8x1024xf32> to vector<8x1024xbf16>
    %c64 = arith.constant 64 : index
    %c0_99 = arith.constant 0 : index
    %120 = vector.load %arg14[%c64, %c0_99] : memref<72x1024xbf16, #tpu.memory_space<vmem>>, vector<8x1024xbf16>
    tpu.vector_store %arg14[%c64, %c0_99], %119 {strides = array<i32>} : memref<72x1024xbf16, #tpu.memory_space<vmem>>, vector<8x1024xbf16>,
    %c0_100 = arith.constant 0 : index
    %c0_101 = arith.constant 0 : index
    %121 = vector.load %arg6[%c0_100, %c0_101] : memref<16x72xbf16, #tpu.memory_space<vmem>>, vector<16x72xbf16>
    %c0_102 = arith.constant 0 : index
    %c0_103 = arith.constant 0 : index
    %122 = vector.load %arg14[%c0_102, %c0_103] : memref<72x1024xbf16, #tpu.memory_space<vmem>>, vector<72x1024xbf16>
    %cst_104 = arith.constant dense<0.000000e+00> : vector<16x1024xf32>
    %123 = tpu.matmul %121, %122, %cst_104 {dimension_numbers = #tpu.dot_dimension_numbers<[1], [0], [0], [1], [0, 0, 1, 1], [], []>} : vector<16x72xbf16>, vector<72x1024xbf16>, vector<16x1024xf32> -> vector<16x1024xf32>
    %c0_105 = arith.constant 0 : index
    %c0_106 = arith.constant 0 : index
    %124 = vector.load %arg7[%c0_105, %c0_106] : memref<16x1xf32, #tpu.memory_space<vmem>>, vector<16x1xf32>
    %125 = vector.broadcast %124 : vector<16x1xf32> to vector<16x1024xf32>
    %126 = arith.addf %123, %125 : vector<16x1024xf32>
    %cst_107 = arith.constant 0.000000e+00 : f32
    %127 = vector.broadcast %cst_107 : f32 to vector<16x1024xf32>
    %128 = arith.maximumf %126, %127 : vector<16x1024xf32>
    %c0_108 = arith.constant 0 : index
    %c0_109 = arith.constant 0 : index
    %129 = vector.load %arg3[%c0_108, %c0_109] : memref<4x1024xf32, #tpu.memory_space<vmem>>, vector<4x1024xf32>
    %cst_110 = arith.constant dense<0.000000e+00> : vector<4x16xf32>
    %130 = tpu.matmul %129, %128, %cst_110 {dimension_numbers = #tpu.dot_dimension_numbers<[1], [1], [0], [0], [0, 0, 1, 0], [], []>} : vector<4x1024xf32>, vector<16x1024xf32>, vector<4x16xf32> -> vector<4x16xf32>
    %c0_111 = arith.constant 0 : index
    %c0_112 = arith.constant 0 : index
    %131 = vector.load %arg8[%c0_111, %c0_112] : memref<16x128xf32, #tpu.memory_space<vmem>>, vector<16x128xf32>
    %cst_113 = arith.constant dense<0.000000e+00> : vector<4x128xf32>
    %132 = tpu.matmul %130, %131, %cst_113 {dimension_numbers = #tpu.dot_dimension_numbers<[1], [0], [0], [1], [0, 0, 1, 1], [], []>} : vector<4x16xf32>, vector<16x128xf32>, vector<4x128xf32> -> vector<4x128xf32>
    %c0_114 = arith.constant 0 : index
    %c0_115 = arith.constant 0 : index
    %133 = vector.load %arg9[%c0_114, %c0_115] : memref<1x128xf32, #tpu.memory_space<vmem>>, vector<1x128xf32>
    %134 = vector.broadcast %133 : vector<1x128xf32> to vector<4x128xf32>
    %135 = arith.addf %132, %134 : vector<4x128xf32>
    %c0_116 = arith.constant 0 : index
    %c0_117 = arith.constant 0 : index
    %c0_118 = arith.constant 0 : index
    %136 = vector.load %arg10[%c0_116, %c0_117, %c0_118] : memref<1x4x128xf32, #tpu.memory_space<vmem>>, vector<1x4x128xf32>
    %137 = vector.shape_cast %136 : vector<1x4x128xf32> to vector<4x128xf32>
    %138 = vector.shape_cast %135 : vector<4x128xf32> to vector<1x4x128xf32>
    tpu.vector_store %arg10[%c0_116, %c0_117, %c0_118], %138 {strides = array<i32>} : memref<1x4x128xf32, #tpu.memory_space<vmem>>, vector<1x4x128xf32>,
    return
  }
  func.func @transform_0(%arg0: i32) -> (i32, i32) {
    %c0_i32 = arith.constant 0 : i32
    %c0_i32_0 = arith.constant 0 : i32
    return %c0_i32, %arg0 : i32, i32
  }
  func.func @transform_1(%arg0: i32) -> (i32, i32) {
    %c0_i32 = arith.constant 0 : i32
    %c0_i32_0 = arith.constant 0 : i32
    %c0_i32_1 = arith.constant 0 : i32
    return %c0_i32, %c0_i32_0 : i32, i32
  }
  func.func @transform_2(%arg0: i32) -> (i32, i32) {
    %c0_i32 = arith.constant 0 : i32
    %c0_i32_0 = arith.constant 0 : i32
    %c0_i32_1 = arith.constant 0 : i32
    return %c0_i32, %c0_i32_0 : i32, i32
  }
  func.func @transform_3(%arg0: i32) -> (i32, i32) {
    %c0_i32 = arith.constant 0 : i32
    %c0_i32_0 = arith.constant 0 : i32
    %c0_i32_1 = arith.constant 0 : i32
    return %c0_i32, %c0_i32_0 : i32, i32
  }
  func.func @transform_4(%arg0: i32) -> (i32, i32) {
    %c0_i32 = arith.constant 0 : i32
    %c0_i32_0 = arith.constant 0 : i32
    %c0_i32_1 = arith.constant 0 : i32
    return %c0_i32, %c0_i32_0 : i32, i32
  }
  func.func @transform_5(%arg0: i32) -> (i32, i32) {
    %c0_i32 = arith.constant 0 : i32
    %c0_i32_0 = arith.constant 0 : i32
    %c0_i32_1 = arith.constant 0 : i32
    return %c0_i32, %c0_i32_0 : i32, i32
  }
  func.func @transform_6(%arg0: i32) -> (i32, i32) {
    %c0_i32 = arith.constant 0 : i32
    %c0_i32_0 = arith.constant 0 : i32
    %c0_i32_1 = arith.constant 0 : i32
    return %c0_i32, %c0_i32_0 : i32, i32
  }
  func.func @transform_7(%arg0: i32) -> (i32, i32) {
    %c0_i32 = arith.constant 0 : i32
    %c0_i32_0 = arith.constant 0 : i32
    %c0_i32_1 = arith.constant 0 : i32
    return %c0_i32, %c0_i32_0 : i32, i32
  }
  func.func @transform_8(%arg0: i32) -> (i32, i32) {
    %c0_i32 = arith.constant 0 : i32
    %c0_i32_0 = arith.constant 0 : i32
    %c0_i32_1 = arith.constant 0 : i32
    return %c0_i32, %c0_i32_0 : i32, i32
  }
  func.func @transform_9(%arg0: i32) -> (i32, i32, i32) {
    %c0_i32 = arith.constant 0 : i32
    %c0_i32_0 = arith.constant 0 : i32
    %c0_i32_1 = arith.constant 0 : i32
    return %arg0, %c0_i32, %c0_i32_0 : i32, i32, i32
  }
}

</mosaic_0001>

<bundles_post_ra>
// kernel: custom-call.4
= control target key start
LH: loop header
LB: loop body
LE: loop exit
PB: predicated region body
PF: predicated region fallthrough
CT: control target
= control target key end

     0   :  { %11 = vsyncpa [#allocation14], 0  ;;  %s1851_s0 = inlined_call_operand.vmem [shape: f32[4,4], index: 0, kind: input, shape index: {}]   ;;  %s1852_s1 = inlined_call_operand.vmem [shape: f32[4,4], index: 1, kind: input, shape index: {}]   ;;  %s1853_s2 = inlined_call_operand.vmem [shape: f32[4,4], index: 2, kind: input, shape index: {}]   ;;  %s1854_s3 = inlined_call_operand.vmem [shape: f32[4,4], index: 3, kind: input, shape index: {}]   ;;  %s1855_s4 = inlined_call_operand.vmem [shape: f32[4], index: 4, kind: output, shape index: {0}]   ;;  %s1856_s5 = inlined_call_operand.vmem [shape: f32[4], index: 5, kind: output, shape index: {1}]   ;;  %s1857_s6 = inlined_call_operand.hbm [shape: f32[4,4], index: 6, kind: output, shape index: {2}]   ;;  %s1858_s7 = inlined_call_operand.hbm [shape: f32[4,4], index: 7, kind: output, shape index: {3}]   ;;  %s1859_s8 = inlined_call_operand.hbm [shape: f32[4,4], index: 8, kind: output, shape index: {4}]   ;;  %s1860_s9 = inlined_call_operand.hbm [shape: f32[4,4], index: 9, kind: output, shape index: {5}]  }
   0x1   :  { %12 = vsyncpa [#allocation17], 0 }
   0x2   :  { %13 = vsyncpa [#allocation22], 0  ;;  %v74_v0 = vld [vmem:[%s1851_s0] sm:$0xf]  ;;  %v295_v2 = vlaneseq  ;;  %v1527_v7 = vmov 0.0   ;;  %s294_s0 = smov [#allocation12] }
   0x3   :  { %v136_v1 = vld [vmem:[%s1852_s1] sm:$0xf]  ;;  %75 = vst [vmem:[#allocation1] sm:$0xf] %v74_v0  ;;  %290 = vst [vmem:[#allocation12] sm:$0xff] %v1527_v7  ;;  %s307_s1 = smov [#allocation20] }
   0x4   :  { %137 = vst [vmem:[#allocation3] sm:$0xf] %v136_v1  ;;  %v198_v3 = vld [vmem:[%s1853_s2] sm:$0xf]  ;;  %v1596_v5 = vand.u32 127, %v295_v2  ;;  %v1598_v6 = vshrl.u32 %v295_v2, 7 }
   0x5   :  { %v260_v4 = vld [vmem:[%s1854_s3] sm:$0xf]  ;;  %199 = vst [vmem:[#allocation5] sm:$0xf] %v198_v3  ;;  %291 = vst [vmem:[#allocation15] sm:$0xff] %v1527_v7  ;;  %s278_s2 = smov [#allocation23] }
   0x6   :  { %261 = vst [vmem:[#allocation7] sm:$0xf] %v260_v4  ;;  %292 = vst [vmem:[#allocation18] sm:$0xff] %v1527_v7  ;;  %v297_v5 = vmov %v1596_v5  ;;  %v300_v6 = vmov %v1598_v6  ;;  %s281_s3 = smov [#allocation24]  ;;  %s284_s17 = smov [#allocation25]  ;;  %vm1223_vm2 = vcmp.lt.s32.totalorder %v1596_v5, 4 }
   0x7   :  { %293 = vst [vmem:[#allocation20] sm:$0xff] %v1527_v7  ;;  %v310_v5 = vmov %v1596_v5  ;;  %v313_v6 = vmov %v1598_v6  ;;  %vm304_vm0 = vcmp.eq.s32.totalorder %v300_v6, %v297_v5  ;;  %s287_s18 = smov [#allocation26]  ;;  %s1219_s19 = smov [#allocation23] }
   0x8   :  { %vm317_vm1 = vcmp.eq.s32.totalorder %v313_v6, %v310_v5  ;;  %s1236_s20 = smov [#allocation24]  ;;  %v1215_v5 = vmov %v1596_v5  ;;  %v1218_v6 = vmov %v1598_v6  ;;  %s1253_s21 = smov [#allocation25] }
   0x9   :  { %s1270_s22 = smov [#allocation26]  ;;  %vm1228_vm3 = vcmp.eq.s32.totalorder %v1218_v6, %v1215_v5  ;;  %v1266_v5 = vmov %v1596_v5  ;;  %v1235_v6 = vmov %v1598_v6 }
   0xa   :  { %v264_v8 = vld [vmem:[#allocation1] sm:$0xf]  ;;  %v301_v12 = vld [vmem:[%s294_s0] sm:$0xf]  ;;  %v1232_v5 = vmov %v1596_v5  ;;  %v1269_v6 = vmov %v1598_v6 }
   0xb   :  { %v268_v9 = vld [vmem:[#allocation3] sm:$0xf]  ;;  %265 = vst [vmem:[#allocation0] sm:$0xf] %v264_v8  ;;  %v305_v14 = vsel %vm304_vm0, 1.0, %v301_v12  ;;  %v1249_v5 = vmov %v1596_v5  ;;  %v1252_v6 = vmov %v1598_v6  ;;  %vm1279_vm4 = vcmp.eq.s32.totalorder %v1269_v6, %v1266_v5 }
   0xc   :  { %269 = vst [vmem:[#allocation2] sm:$0xf] %v268_v9  ;;  %v272_v10 = vld [vmem:[#allocation5] sm:$0xf]  ;;  %306 = vst [vmem:[%s294_s0] sm:$0xf] %v305_v14 }
   0xd   :  { %v276_v11 = vld [vmem:[#allocation7] sm:$0xf]  ;;  %273 = vst [vmem:[#allocation4] sm:$0xf] %v272_v10 }
   0xe   :  { %277 = vst [vmem:[#allocation6] sm:$0xf] %v276_v11  ;;  %v314_v13 = vld [vmem:[%s307_s1] sm:$0xf] }
   0xf   :  { %v318_v15 = vsel %vm317_vm1, 1.0, %v314_v13 }
  0x10   :  { %319 = vst [vmem:[%s307_s1] sm:$0xf] %v318_v15 }
  0x12   :  { %v279_v16 = vld [vmem:[#allocation0] sm:$0xff] }
  0x13   :  { %v282_v17 = vld [vmem:[#allocation2] sm:$0xff]  ;;  %280 = vst [vmem:[%s278_s2] sm:$0xff] %v279_v16 }
  0x14   :  { %283 = vst [vmem:[%s281_s3] sm:$0xff] %v282_v17  ;;  %v285_v18 = vld [vmem:[#allocation4] sm:$0xff] }
  0x15   :  { %v288_v19 = vld [vmem:[#allocation6] sm:$0xff]  ;;  %286 = vst [vmem:[%s284_s17] sm:$0xff] %v285_v18 }
  0x16   :  { %289 = vst [vmem:[%s287_s18] sm:$0xff] %v288_v19 }
  0x1a   :  { %v1225_v20 = vld [vmem:[%s1219_s19] sm:$0xf] }
  0x1b   :  { %v1242_v21 = vld [vmem:[%s1236_s20] sm:$0xf]  ;;  %v1226_v22 = vsel %vm1223_vm2, %v1225_v20, 0.0 }
  0x1c   :  { %v1243_v23 = vsel %vm1223_vm2, %v1242_v21, 0.0  ;;  %v1259_v24 = vld [vmem:[%s1253_s21] sm:$0xf]  ;;  %v1227_v26 = vmul.f32 %v1226_v22, %v1226_v22 }
  0x1d   :  { %v1276_v25 = vld [vmem:[%s1270_s22] sm:$0xf]  ;;  %v1244_v27 = vmul.f32 %v1243_v23, %v1243_v23  ;;  %v1260_v28 = vsel %vm1223_vm2, %v1259_v24, 0.0 }
  0x1e   :  { %v1277_v29 = vsel %vm1223_vm2, %v1276_v25, 0.0  ;;  %v1261_v30 = vmul.f32 %v1260_v28, %v1260_v28  ;;  %v1229_v33 = vsel %vm1228_vm3, 0.0, %v1227_v26 }
  0x1f   :  { %v1246_v31 = vadd.f32 %v1244_v27, %v1227_v26  ;;  %v1278_v32 = vmul.f32 %v1277_v29, %v1277_v29  ;;  %v1245_v34 = vadd.f32 %v1244_v27, %v1229_v33 }
  0x21   :  { %v1263_v35 = vadd.f32 %v1261_v30, %v1246_v31  ;;  %v1262_v36 = vadd.f32 %v1261_v30, %v1245_v34  ;;  %v1280_v37 = vsel %vm1279_vm4, 0.0, %v1278_v32 }
  0x23   :  { %v1282_v38 = vadd.f32 %v1278_v32, %v1263_v35  ;;  %v1281_v39 = vadd.f32 %v1280_v37, %v1262_v36 }
  0x25   :  { %1283 = vadd.xlane.f32.xlu0 %v1282_v38 }
  0x29   :  { %1291 = vadd.xlane.f32.xlu0 %v1281_v39 }
  0xb2   :  { %v1284_v40 = vpop.xlane.xlu0 %1283 }
  0xb3   :  { %v1285_v41 = vrot.slane %v1284_v40, 4 }
  0xb5   :  { %v1286_v42 = vadd.f32 %v1285_v41, %v1284_v40 }
  0xb6   :  { %v1292_v43 = vpop.xlane.xlu0 %1291 }
  0xb7   :  { %v1287_v44 = vrot.slane %v1286_v42, 2  ;;  %v1293_v45 = vrot.slane %v1292_v43, 4 }
  0xb9   :  { %v1294_v46 = vadd.f32 %v1293_v45, %v1292_v43  ;;  %v1288_v47 = vadd.f32 %v1287_v44, %v1286_v42 }
  0xbb   :  { %v1295_v48 = vrot.slane %v1294_v46, 2  ;;  %v1289_v50 = vrot.slane %v1288_v47, 1 }
  0xbd   :  { %v1296_v49 = vadd.f32 %v1295_v48, %v1294_v46  ;;  %v1290_v53 = vadd.f32 %v1289_v50, %v1288_v47 }
  0xbf   :  { %v1297_v51 = vrot.slane %v1296_v49, 1 }
  0xc1   :  { %v1298_v52 = vadd.f32 %v1297_v51, %v1296_v49 }
  0xc3   :  { %1378 = vpush %v1298_v52 }
  0xc4   :  { %1380 = vpush %v1290_v53 }
  0xf4   :  { %s1379_s23 = spop %1378 }
  0xf5   :  { %s1381_s24 = spop %1380 }
  0xf6   :  { %s1301_s25 = smul.f32 1e-10, %s1381_s24 }
  0xf8   :  { %p1302_p0 = scmp.le.f32.partialorder %s1379_s23, %s1301_s25 }
  0xf9   :  { %s1622_s26 = smov (!%p1302_p0), 0  }
  0xfa   :  { %1305 = sbr.rel (%p1302_p0) target bundleno = 932 (0x3a4), region = 324 }
 0x101 LB: > { %s1627_s27 = smov 0   ;;  %s1521_s26 = sphi %s1622_s26, %s1861_s26  }
 0x102 LB: >> { %s424_s28 = smov [#allocation23]  ;;  %v428_v5 = vmov %v1596_v5  ;;  %v431_v6 = vmov %v1598_v6  ;;  %s444_s29 = smov [#allocation24]  ;;  %vm747_vm14 = vcmp.eq.s32.totalorder %v1598_v6, 0  ;;  %vm759_vm15 = vcmp.eq.s32.totalorder %v1598_v6, 3  ;;  %s1525_s27 = sphi %s1627_s27, %s423_s27  }
 0x103   : >> { %v448_v5 = vmov %v1596_v5  ;;  %v451_v6 = vmov %v1598_v6  ;;  %v432_v54 = vld [vmem:[%s424_s28] sm:$0xf]  ;;  %vm435_vm5 = vcmp.eq.s32.totalorder %v431_v6, %v428_v5  ;;  %s464_s30 = smov [#allocation26]  ;;  %s425_s10 = smov [#allocation27] }
 0x104   : >> { %vm455_vm6 = vcmp.eq.s32.totalorder %v451_v6, %v448_v5  ;;  %v468_v5 = vmov %v1596_v5  ;;  %v471_v6 = vmov %v1598_v6  ;;  %v436_v55 = vsel %vm435_vm5, %v432_v54, 0.0  ;;  %v452_v56 = vld [vmem:[%s444_s29] sm:$0xf]  ;;  %s445_s11 = smov [#allocation28]  ;;  %s465_s12 = smov [#allocation29] }
 0x105   : >> { %vm475_vm7 = vcmp.eq.s32.totalorder %v471_v6, %v468_v5  ;;  %v437_v57 = vrot.slane %v436_v55, 4  ;;  %v456_v58 = vsel %vm455_vm6, %v452_v56, 0.0  ;;  %v472_v59 = vld [vmem:[%s464_s30] sm:$0xf]  ;;  %s488_s13 = smov [#allocation28]  ;;  %s486_s14 = smov [#allocation27]  ;;  %v537_v5 = vmov %v1596_v5 }
 0x106   : >> { %v457_v60 = vrot.slane %v456_v58, 4  ;;  %v476_v61 = vsel %vm475_vm7, %v472_v59, 0.0  ;;  %s490_s15 = smov [#allocation29]  ;;  %s525_s16 = smov [#allocation30]  ;;  %v540_v6 = vmov %v1598_v6  ;;  %v552_v5 = vmov %v1596_v5 }
 0x107   : >> { %v438_v62 = vadd.f32 %v437_v57, %v436_v55  ;;  %v477_v63 = vrot.slane %v476_v61, 4  ;;  %s527_s0 = smov [#allocation31]  ;;  %s484_s1 = smov [#allocation32]  ;;  %v555_v6 = vmov %v1598_v6  ;;  %vm542_vm12 = vcmp.eq.s32.totalorder %v540_v6, %v537_v5 }
 0x108   : >> { %v458_v0 = vadd.f32 %v457_v60, %v456_v58  ;;  %s485_s2 = smov [#allocation33]  ;;  %s529_s1 = smov %s484_s1  ;;  %vm557_vm13 = vcmp.eq.s32.totalorder %v555_v6, %v552_v5  ;;  %v650_v5 = vmov %v1596_v5  ;;  %v653_v6 = vmov %v1598_v6 }
 0x109   : >> { %v439_v1 = vrot.slane %v438_v62, 2  ;;  %v478_v2 = vadd.f32 %v477_v63, %v476_v61  ;;  %s531_s2 = smov %s485_s2  ;;  %s533_s3 = smov [#allocation32]  ;;  %v664_v5 = vmov %v1596_v5  ;;  %v667_v6 = vmov %v1598_v6 }
 0x10a   : >> { %v459_v3 = vrot.slane %v458_v0, 2  ;;  %s548_s17 = smov [#allocation33]  ;;  %s546_s18 = smov [#allocation34]  ;;  %vm657_vm0 = vcmp.eq.s32.totalorder %v653_v6, %v650_v5  ;;  %v623_v5 = vmov %v1596_v5  ;;  %v626_v6 = vmov %v1598_v6 }
 0x10b   : >> { %v440_v4 = vadd.f32 %v439_v1, %v438_v62  ;;  %v479_v7 = vrot.slane %v478_v2, 2  ;;  %s563_s19 = smov [#allocation34]  ;;  %s1642_s20 = smov [#allocation23]  ;;  %v637_v5 = vmov %v1596_v5  ;;  %v640_v6 = vmov %v1598_v6 }
 0x10c   : >> { %v460_v8 = vadd.f32 %v459_v3, %v458_v0  ;;  %s561_s21 = smov [#allocation35]  ;;  %s1644_s22 = smov [#allocation24]  ;;  %v571_v53 = vld [vmem:[%s1642_s20] sm:$0xf]  ;;  %vm672_vm1 = vcmp.eq.s32.totalorder %v667_v6, %v664_v5  ;;  %vm631_vm3 = vcmp.eq.s32.totalorder %v626_v6, %v623_v5  ;;  %vm644_vm4 = vcmp.eq.s32.totalorder %v640_v6, %v637_v5 }
 0x10d   : >> { %v441_v9 = vrot.slane %v440_v4, 1  ;;  %v480_v10 = vadd.f32 %v479_v7, %v478_v2  ;;  %s1646_s23 = smov [#allocation25]  ;;  %s1648_s24 = smov [#allocation26]  ;;  %v572_v54 = vld [vmem:[%s1644_s22] sm:$0xf]  ;;  %vm686_vm5 = vcmp.eq.s32.totalorder %v1596_v5, 0 }
 0x10e   : >> { %v461_v11 = vrot.slane %v460_v8, 1  ;;  %s1650_s25 = smov [#allocation12]  ;;  %s1652_s28 = smov [#allocation15]  ;;  %v573_v55 = vld [vmem:[%s1646_s23] sm:$0xf]  ;;  %vm690_vm6 = vcmp.eq.s32.totalorder %v1596_v5, 1 }
 0x10f   : >> { %v442_v12 = vadd.f32 %v441_v9, %v440_v4  ;;  %v481_v13 = vrot.slane %v480_v10, 1  ;;  %s1654_s29 = smov [#allocation18]  ;;  %s787_s30 = smov [#allocation34]  ;;  %v574_v56 = vld [vmem:[%s1648_s24] sm:$0xf]  ;;  %vm703_vm7 = vcmp.eq.s32.totalorder %v1596_v5, 3 }
 0x110   : >> { %v462_v14 = vadd.f32 %v461_v11, %v460_v8  ;;  %v795_v57 = vld [vmem:[%s1650_s25] sm:$0xf]  ;;  %s423_s27 = sadd.s32 1, %s1525_s27  }
 0x111   : >> { %443 = vst [vmem:[%s425_s10] sm:$0x1] %v442_v12  ;;  %v482_v15 = vadd.f32 %v481_v13, %v480_v10  ;;  %s1658_s10 = smov [#allocation20]  ;;  %v796_v58 = vld [vmem:[%s1652_s28] sm:$0xf]  ;;  %p420_p1 = scmp.ge.s32.totalorder %s423_s27, 7  }
 0x112   : >> { %463 = vst [vmem:[%s445_s11] sm:$0x1] %v462_v14  ;;  %v797_v59 = vld [vmem:[%s1654_s29] sm:$0xf]  ;;  %s565_s11 = smov [#allocation35]  ;;  %v324_v5 = vmov (%p420_p1), %v1596_v5  ;;  %v327_v6 = vmov (%p420_p1), %v1598_v6 }
 0x113   : >> { %483 = vst [vmem:[%s465_s12] sm:$0x1] %v482_v15  ;;  %v798_v61 = vld [vmem:[%s1658_s10] sm:$0xf]  ;;  %s789_s12 = smov [#allocation35]  ;;  %v377_v5 = vmov (%p420_p1), %v1596_v5 }
 0x118   : >> { %v487_v18 = vld [vmem:[%s486_s14] sm:$0xff]  ;;  %s593_s14 = smov [#allocation33] }
 0x119   : >> { %v489_v16 = vld [vmem:[%s488_s13] sm:$0xff]  ;;  %v510_v31 = vand.u32 2147483647, %v487_v18  ;;  %s591_s13 = smov [#allocation32] }
 0x11a   : >> { %v493_v17 = vmul.f32 2.0, %v489_v16  ;;  %v491_v19 = vld [vmem:[%s490_s15] sm:$0xff]  ;;  %v511_v36 = vand.u32 2147483647, %v489_v16  ;;  %s1674_s15 = smov [#allocation12] }
 0x11b   : >> { %v492_v20 = vsub.f32 %v491_v19, %v487_v18  ;;  %v512_v32 = vand.u32 2147483647, %v491_v19 }
 0x11c   : >> { %1409 = vrcp.f32 %v493_v17 }
 0x11d   : >> { %v513_v35 = vmin.f32 %v510_v31, %v512_v32 }
 0x11f   : >> { %v514_v37 = vmul.f32 1.1920929e-08, %v513_v35 }
 0x121   : >> { %vm515_vm11 = vcmp.le.f32.partialorder %v511_v36, %v514_v37 }
 0x126   : >> { %v1410_v21 = vpop.eup %1409 }
 0x127   : >> { %v495_v22 = vmul.f32 %v1410_v21, %v492_v20 }
 0x129   : >> { %v497_v23 = vmul.f32 %v495_v22, %v495_v22  ;;  %vm496_vm10 = vcmp.ge.f32.partialorder %v495_v22, 0.0 }
 0x12b   : >> { %v498_v24 = vadd.f32 1.0, %v497_v23 }
 0x12d   : >> { %1411 = vrsqrt.f32 %v498_v24  ;;  %vm501_vm8 = vcmp.eq.f32.partialorder %v498_v24, inf  ;;  %v504_v26 = vand.u32 2147483648, %v498_v24  ;;  %vm503_vm9 = vcmp.eq.f32.partialorder %v498_v24, 0.0 }
 0x137   : >> { %v1412_v25 = vpop.eup %1411 }
 0x138   : >> { %v500_v27 = vmul.f32 %v1412_v25, %v498_v24 }
 0x13a   : >> { %v502_v28 = vsel %vm501_vm8, %v498_v24, %v500_v27  ;;  %vm339_vm8 = vcmp.eq.s32.totalorder (%p420_p1), %v327_v6, %v324_v5  ;;  %v380_v6 = vmov (%p420_p1), %v1598_v6  ;;  %v343_v5 = vmov (%p420_p1), %v1596_v5 }
 0x13b   : >> { %v505_v29 = vsel %vm503_vm9, %v504_v26, %v502_v28  ;;  %v346_v6 = vmov (%p420_p1), %v1598_v6  ;;  %v360_v5 = vmov (%p420_p1), %v1596_v5  ;;  %vm392_vm9 = vcmp.eq.s32.totalorder (%p420_p1), %v380_v6, %v377_v5 }
 0x13c   : >> { %v506_v30 = vxor.u32 2147483648, %v505_v29  ;;  %v363_v6 = vmov (%p420_p1), %v1598_v6 }
 0x13e   : >> { %v507_v33 = vsel %vm496_vm10, %v505_v29, %v506_v30 }
 0x13f   : >> { %v508_v34 = vadd.f32 %v507_v33, %v495_v22 }
 0x141   : >> { %1413 = vrcp.f32 %v508_v34 }
 0x14b   : >> { %v1414_v38 = vpop.eup %1413 }
 0x14c   : >> { %v516_v39 = vsel %vm515_vm11, 0.0, %v1414_v38 }
 0x14d   : >> { %v517_v40 = vmul.f32 %v516_v39, %v516_v39  ;;  %v521_v41 = vmul.f32 %v516_v39, %v489_v16 }
 0x14f   : >> { %v518_v42 = vadd.f32 1.0, %v517_v40  ;;  %v522_v43 = vsub.f32 %v487_v18, %v521_v41  ;;  %v524_v44 = vadd.f32 %v521_v41, %v491_v19 }
 0x151   : >> { %1415 = vrsqrt.f32 %v518_v42  ;;  %526 = vst [vmem:[%s525_s16] sm:$0xff] %v522_v43  ;;  %528 = vst [vmem:[%s527_s0] sm:$0xff] %v524_v44  ;;  %s1676_s16 = smov [#allocation25]  ;;  %s1678_s0 = smov [#allocation26] }
 0x15b   : >> { %v1416_v45 = vpop.eup %1415 }
 0x15c   : >> { %530 = vst [vmem:[%s529_s1] sm:$0xff] %v1416_v45  ;;  %v520_v46 = vmul.f32 %v1416_v45, %v516_v39  ;;  %s1680_s1 = smov [#allocation23] }
 0x15e   : >> { %532 = vst [vmem:[%s531_s2] sm:$0xff] %v520_v46  ;;  %s1682_s2 = smov [#allocation18] }
 0x163   : >> { %v534_v47 = vld [vmem:[%s533_s3] ss:$0 sm:$0xff]  ;;  %s1684_s3 = smov [#allocation15] }
 0x164   : >> { %v543_v48 = vsel %vm542_vm12, %v534_v47, 0.0  ;;  %v592_v27 = vld [vmem:[%s591_s13] ss:$0 sm:$0xff]  ;;  %s763_s13 = smov [#allocation24] }
 0x165   : >> { %544 = vadd.xlane.f32.xlu0 %v543_v48  ;;  %v549_v49 = vld [vmem:[%s548_s17] ss:$0 sm:$0xff]  ;;  %s1688_s17 = smov [#allocation20] }
 0x166   : >> { %v558_v50 = vsel %vm557_vm13, %v549_v49, 0.0  ;;  %v594_v28 = vld [vmem:[%s593_s14] ss:$0 sm:$0xff]  ;;  %s740_s14 = smov [#allocation25] }
 0x169   : >> { %559 = vadd.xlane.f32.xlu0 %v558_v50 }
 0x1f2   : >> { %v545_v51 = vpop.xlane.xlu0 %544 }
 0x1f3   : >> { %547 = vst [vmem:[%s546_s18] sm:$0xff] %v545_v51  ;;  %s1690_s18 = smov [#allocation24] }
 0x1f6   : >> { %v560_v52 = vpop.xlane.xlu0 %559 }
 0x1f7   : >> { %562 = vst [vmem:[%s561_s21] sm:$0xff] %v560_v52  ;;  %s660_s21 = smov [#allocation26] }
 0x1fa   : >> { %v564_v60 = vld [vmem:[%s563_s19] sm:$0xff]  ;;  %s661_s19 = smov [#allocation31] }
 0x1fb   : >> { %v788_v62 = vld [vmem:[%s787_s30] sm:$0xff]  ;;  %v575_v63 = vmul.f32 %v571_v53, %v564_v60  ;;  %v578_v0 = vmul.f32 %v572_v54, %v564_v60  ;;  %v582_v1 = vmul.f32 %v573_v55, %v564_v60  ;;  %v585_v2 = vmul.f32 %v574_v56, %v564_v60  ;;  %s676_s30 = smov [#allocation24] }
 0x1fc   : >> { %v799_v3 = vmul.f32 %v795_v57, %v788_v62  ;;  %v802_v4 = vmul.f32 %v796_v58, %v788_v62  ;;  %v806_v7 = vmul.f32 %v797_v59, %v788_v62  ;;  %v809_v8 = vmul.f32 %v798_v61, %v788_v62 }
 0x1fe   : >> { %v566_v9 = vld [vmem:[%s565_s11] sm:$0xff]  ;;  %s1735_s11 = smov [#allocation26] }
 0x1ff   : >> { %v790_v10 = vld [vmem:[%s789_s12] sm:$0xff]  ;;  %v576_v11 = vmul.f32 %v573_v55, %v566_v9  ;;  %v579_v12 = vmul.f32 %v574_v56, %v566_v9  ;;  %v581_v13 = vmul.f32 %v571_v53, %v566_v9  ;;  %v584_v14 = vmul.f32 %v572_v54, %v566_v9  ;;  %s739_s12 = smov [#allocation23] }
 0x200   : >> { %v800_v15 = vmul.f32 %v797_v59, %v790_v10  ;;  %v803_v16 = vmul.f32 %v798_v61, %v790_v10  ;;  %v805_v17 = vmul.f32 %v795_v57, %v790_v10  ;;  %v808_v18 = vmul.f32 %v796_v58, %v790_v10  ;;  %v668_v59 = vld [vmem:[%s661_s19] ss:$0 sm:$0xff] }
 0x201   : >> { %v577_v19 = vsub.f32 %v575_v63, %v576_v11  ;;  %v580_v20 = vsub.f32 %v578_v0, %v579_v12  ;;  %v583_v21 = vadd.f32 %v582_v1, %v581_v13  ;;  %v586_v22 = vadd.f32 %v585_v2, %v584_v14 }
 0x202   : >> { %v801_v23 = vsub.f32 %v799_v3, %v800_v15  ;;  %v804_v24 = vsub.f32 %v802_v4, %v803_v16  ;;  %v807_v25 = vadd.f32 %v806_v7, %v805_v17  ;;  %v810_v26 = vadd.f32 %v809_v8, %v808_v18 }
 0x203   : >> { %588 = vst [vmem:[%s1644_s22] sm:$0xf] %v580_v20  ;;  %590 = vst [vmem:[%s1648_s24] sm:$0xf] %v586_v22  ;;  %s620_s22 = smov [#allocation30]  ;;  %s634_s24 = smov [#allocation24] }
 0x204   : >> { %587 = vst [vmem:[%s1642_s20] sm:$0xf] %v577_v19  ;;  %589 = vst [vmem:[%s1646_s23] sm:$0xf] %v583_v21  ;;  %s647_s20 = smov [#allocation25]  ;;  %s619_s23 = smov [#allocation23]  ;;  %v627_v63 = vld [vmem:[%s620_s22] ss:$0 sm:$0xff] }
 0x205   : >> { %811 = vst [vmem:[%s1650_s25] sm:$0xf] %v801_v23  ;;  %812 = vst [vmem:[%s1652_s28] sm:$0xf] %v804_v24  ;;  %s1732_s25 = smov [#allocation25]  ;;  %s1528_s28 = smov 1  }
 0x206   : >> { %813 = vst [vmem:[%s1654_s29] sm:$0xf] %v807_v25  ;;  %814 = vst [vmem:[%s1658_s10] sm:$0xf] %v810_v26  ;;  %s675_s29 = smov [#allocation23]  ;;  %s1529_s10 = smov 127  }
 0x20a   : >> { %v602_v30 = vld [vmem:[%s1678_s0] sm:$0xf] }
 0x20b   : >> { %v601_v29 = vld [vmem:[%s1676_s16] sm:$0xf]  ;;  %v610_v36 = vmul.f32 %v602_v30, %v594_v28  ;;  %v613_v42 = vmul.f32 %v602_v30, %v592_v27 }
 0x20c   : >> { %v599_v31 = vld [vmem:[%s1680_s1] sm:$0xf]  ;;  %v609_v35 = vmul.f32 %v601_v29, %v592_v27  ;;  %v612_v37 = vmul.f32 %v601_v29, %v594_v28 }
 0x20d   : >> { %v817_v32 = vld [vmem:[%s1674_s15] ss:$0 sm:$0xff]  ;;  %v1365_v34 = vld [vmem:[%s1674_s15 + $0x3] ss:$0 sm:$0xff]  ;;  %v603_v48 = vmul.f32 %v599_v31, %v592_v27  ;;  %v606_v49 = vmul.f32 %v599_v31, %v594_v28 }
 0x20e   : >> { %v1364_v33 = vld [vmem:[%s1674_s15 - $0x1] sm:$0xe]  ;;  %v1369_v45 = vld [vmem:[%s1684_s3 + $0x3] ss:$0 sm:$0xff]  ;;  %v611_v47 = vsub.f32 %v609_v35, %v610_v36  ;;  %v614_v53 = vadd.f32 %v613_v42, %v612_v37 }
 0x20f   : >> { %v824_v38 = vsel %vm747_vm14, %v817_v32, %v1364_v33  ;;  %v828_v39 = vld [vmem:[%s1682_s2] ss:$0 sm:$0xff]  ;;  %v1367_v40 = vld [vmem:[%s1682_s2 + $0x1] sm:$0x7] }
 0x210   : >> { %v841_v41 = vld [vmem:[%s1684_s3] ss:$0 sm:$0xff]  ;;  %827 = vst [vmem:[%s1674_s15] sm:$0xf] %v824_v38  ;;  %v836_v43 = vsel %vm759_vm15, %v1365_v34, %v1367_v40  ;;  %v1371_v51 = vld [vmem:[%s1688_s17 + $0x1] sm:$0x7]  ;;  %617 = vst [vmem:[%s1676_s16] sm:$0xf] %v611_v47 }
 0x211   : >> { %v1368_v44 = vld [vmem:[%s1684_s3 - $0x1] sm:$0xe]  ;;  %1366 = vst [vmem:[%s1674_s15 + $0x1] sm:$0x1] %v828_v39  ;;  %838 = vst [vmem:[%s1682_s2] sm:$0xf] %v836_v43  ;;  %v860_v54 = vsel %vm759_vm15, %v1369_v45, %v1371_v51  ;;  %s764_s15 = smov [#allocation26] }
 0x212   : >> { %v852_v46 = vld [vmem:[%s1688_s17] ss:$0 sm:$0xff]  ;;  %v848_v50 = vsel %vm747_vm14, %v841_v41, %v1368_v44  ;;  %618 = vst [vmem:[%s1678_s0] sm:$0xf] %v614_v53  ;;  %s863_s16 = sadd.s32 (%p420_p1), 1, %s1521_s26   ;;  %s328_s0 = smov (%p420_p1), [#allocation23] }
 0x213   : >> { %v600_v52 = vld [vmem:[%s1690_s18] sm:$0xf]  ;;  %851 = vst [vmem:[%s1684_s3] sm:$0xf] %v848_v50  ;;  %862 = vst [vmem:[%s1688_s17] sm:$0xf] %v860_v54  ;;  %s364_s2 = smov (%p420_p1), [#allocation25]  ;;  %p416_p2 = scmp.ge.s32.totalorder (%p420_p1), %s863_s16, 15 }
 0x214   : >> { %v604_v55 = vmul.f32 %v600_v52, %v594_v28  ;;  %v607_v56 = vmul.f32 %v600_v52, %v592_v27  ;;  %1370 = vst [vmem:[%s1684_s3 + $0x1] sm:$0x1] %v852_v46  ;;  %s381_s3 = smov (%p420_p1), [#allocation26]  ;;  %s1861_s26 = smov (%p420_p1), %s863_s16 }
 0x216   : >> { %v605_v57 = vsub.f32 %v603_v48, %v604_v55  ;;  %v608_v58 = vadd.f32 %v607_v56, %v606_v49 }
 0x217   : >> { %v654_v60 = vld [vmem:[%s647_s20] sm:$0xf] }
 0x218   : >> { %615 = vst [vmem:[%s1680_s1] sm:$0xf] %v605_v57  ;;  %616 = vst [vmem:[%s1690_s18] sm:$0xf] %v608_v58  ;;  %v658_v61 = vsel %vm657_vm0, 0.0, %v654_v60  ;;  %s347_s1 = smov (%p420_p1), [#allocation24] }
 0x219   : >> { %v669_v62 = vld [vmem:[%s660_s21] sm:$0xf]  ;;  %659 = vst [vmem:[%s647_s20] sm:$0xf] %v658_v61 }
 0x21a   : >> { %v673_v0 = vsel %vm672_vm1, %v668_v59, %v669_v62 }
 0x21b   : >> { %674 = vst [vmem:[%s660_s21] sm:$0xf] %v673_v0 }
 0x21f   : >> { %v628_v1 = vld [vmem:[%s619_s23] sm:$0xf] }
 0x220   : >> { %v641_v2 = vld [vmem:[%s634_s24] sm:$0xf]  ;;  %v632_v3 = vsel %vm631_vm3, %v627_v63, %v628_v1 }
 0x221   : >> { %v645_v4 = vsel %vm644_vm4, 0.0, %v641_v2  ;;  %633 = vst [vmem:[%s619_s23] sm:$0xf] %v632_v3  ;;  %v713_v7 = vld [vmem:[%s1732_s25] sm:$0xf] }
 0x222   : >> { %646 = vst [vmem:[%s634_s24] sm:$0xf] %v645_v4  ;;  %714 = vrot.lane.b32.xlu0 %v713_v7, %s1528_s28  ;;  %v709_v11 = vld [vmem:[%s1735_s11] sm:$0xf] }
 0x223   : >> { %v730_v12 = vld [vmem:[%s1735_s11] sm:$0xf] }
 0x224   : >> { %v712_v30 = vld [vmem:[%s1732_s25] sm:$0xf] }
 0x228   : >> { %v681_v8 = vld [vmem:[%s675_s29] sm:$0xf] }
 0x229   : >> { %682 = vrot.lane.b32.xlu1 %v681_v8, %s1528_s28  ;;  %v677_v9 = vld [vmem:[%s676_s30] sm:$0xf] }
 0x22a   : >> { %v698_v10 = vld [vmem:[%s676_s30] sm:$0xf] }
 0x22b   : >> { %v680_v18 = vld [vmem:[%s675_s29] sm:$0xf] }
 0x22d   : >> { %678 = vrot.lane.b32.xlu1 %v677_v9, %s1528_s28 }
 0x231   : >> { %699 = vrot.lane.b32.xlu1 %v698_v10, %s1529_s10 }
 0x235   : >> { %710 = vrot.lane.b32.xlu1 %v709_v11, %s1528_s28 }
 0x239   : >> { %731 = vrot.lane.b32.xlu1 %v730_v12, %s1529_s10 }
 0x294   : >> { %v715_v20 = vpop.permute.xlu0 %714 }
 0x295   : >> { %v719_v22 = vsel %vm686_vm5, %v713_v7, %v715_v20 }
 0x29b   : >> { %v683_v13 = vpop.permute.xlu1 %682 }
 0x29c   : >> { %v687_v14 = vsel %vm686_vm5, %v681_v8, %v683_v13 }
 0x29f   : >> { %v679_v15 = vpop.permute.xlu1 %678 }
 0x2a0   : >> { %v691_v16 = vsel %vm690_vm6, %v679_v15, %v687_v14 }
 0x2a1   : >> { %v697_v17 = vsel %vm1223_vm2, %v691_v16, 0.0 }
 0x2a2   : >> { %705 = vst [vmem:[%s675_s29] sm:$0xf] %v697_v17 }
 0x2a3   : >> { %v700_v19 = vpop.permute.xlu1 %699 }
 0x2a4   : >> { %v704_v21 = vsel %vm703_vm7, %v680_v18, %v700_v19 }
 0x2a5   : >> { %706 = vst [vmem:[%s676_s30] sm:$0xf] %v704_v21 }
 0x2a7   : >> { %v711_v23 = vpop.permute.xlu1 %710 }
 0x2a8   : >> { %v723_v24 = vsel %vm690_vm6, %v711_v23, %v719_v22 }
 0x2a9   : >> { %v741_v25 = vld [vmem:[%s739_s12] ss:$0 sm:$0xff]  ;;  %v1357_v27 = vld [vmem:[%s739_s12 + $0x3] ss:$0 sm:$0xff]  ;;  %v729_v29 = vsel %vm1223_vm2, %v723_v24, 0.0 }
 0x2aa   : >> { %v1356_v26 = vld [vmem:[%s739_s12 - $0x1] sm:$0xe]  ;;  %737 = vst [vmem:[%s1732_s25] sm:$0xf] %v729_v29 }
 0x2ab   : >> { %v748_v28 = vsel %vm747_vm14, %v741_v25, %v1356_v26  ;;  %v732_v31 = vpop.permute.xlu1 %731 }
 0x2ac   : >> { %751 = vst [vmem:[%s739_s12] sm:$0xf] %v748_v28  ;;  %v765_v32 = vld [vmem:[%s763_s13] ss:$0 sm:$0xff]  ;;  %v1361_v34 = vld [vmem:[%s763_s13 + $0x3] ss:$0 sm:$0xff]  ;;  %v736_v35 = vsel %vm703_vm7, %v712_v30, %v732_v31 }
 0x2ad   : >> { %v1360_v33 = vld [vmem:[%s763_s13 - $0x1] sm:$0xe]  ;;  %738 = vst [vmem:[%s1735_s11] sm:$0xf] %v736_v35 }
 0x2ae   : >> { %v772_v36 = vsel %vm747_vm14, %v765_v32, %v1360_v33 }
 0x2af   : >> { %775 = vst [vmem:[%s763_s13] sm:$0xf] %v772_v36 }
 0x2b1   : >> { %v752_v37 = vld [vmem:[%s740_s14] ss:$0 sm:$0xff]  ;;  %v1359_v38 = vld [vmem:[%s740_s14 + $0x1] sm:$0x7] }
 0x2b2   : >> { %1358 = vst [vmem:[%s739_s12 + $0x1] sm:$0x1] %v752_v37  ;;  %v760_v39 = vsel %vm759_vm15, %v1357_v27, %v1359_v38  ;;  %422 = sbr.rel (!%p420_p1) target bundleno = 258 (0x102), region = 319 }
 0x2b3   : >> { %762 = vst [vmem:[%s740_s14] sm:$0xf] %v760_v39 }
 0x2b4   : >> { %v776_v40 = vld [vmem:[%s764_s15] ss:$0 sm:$0xff]  ;;  %v1363_v41 = vld [vmem:[%s764_s15 + $0x1] sm:$0x7] }
 0x2b5   : >> { %1362 = vst [vmem:[%s763_s13 + $0x1] sm:$0x1] %v776_v40  ;;  %v784_v42 = vsel %vm759_vm15, %v1361_v34, %v1363_v41 }
 0x2b6   : >> { %786 = vst [vmem:[%s764_s15] sm:$0xf] %v784_v42 }
 0x2b9   : > { %v334_v43 = vld [vmem:[%s328_s0] sm:$0xf] }
 0x2ba   : > { %v335_v45 = vsel %vm1223_vm2, %v334_v43, 0.0  ;;  %v370_v47 = vld [vmem:[%s364_s2] sm:$0xf] }
 0x2bb   : > { %v336_v49 = vmul.f32 %v335_v45, %v335_v45  ;;  %v371_v51 = vsel %vm1223_vm2, %v370_v47, 0.0 }
 0x2bc   : > { %v353_v44 = vld [vmem:[%s347_s1] sm:$0xf]  ;;  %v372_v53 = vmul.f32 %v371_v51, %v371_v51 }
 0x2bd   : > { %v354_v46 = vsel %vm1223_vm2, %v353_v44, 0.0  ;;  %v387_v48 = vld [vmem:[%s381_s3] sm:$0xf]  ;;  %v340_v56 = vsel %vm339_vm8, 0.0, %v336_v49 }
 0x2be   : > { %v355_v50 = vmul.f32 %v354_v46, %v354_v46  ;;  %v388_v52 = vsel %vm1223_vm2, %v387_v48, 0.0 }
 0x2bf   : > { %v389_v55 = vmul.f32 %v388_v52, %v388_v52 }
 0x2c0   : > { %v357_v54 = vadd.f32 %v355_v50, %v336_v49  ;;  %v356_v57 = vadd.f32 %v355_v50, %v340_v56 }
 0x2c1   : > { %v393_v60 = vsel %vm392_vm9, 0.0, %v389_v55 }
 0x2c2   : > { %v374_v58 = vadd.f32 %v372_v53, %v357_v54  ;;  %v373_v59 = vadd.f32 %v372_v53, %v356_v57 }
 0x2c4   : > { %v395_v61 = vadd.f32 %v389_v55, %v374_v58  ;;  %v394_v62 = vadd.f32 %v393_v60, %v373_v59 }
 0x2c6   : > { %396 = vadd.xlane.f32.xlu0 %v395_v61 }
 0x2ca   : > { %404 = vadd.xlane.f32.xlu0 %v394_v62 }
 0x353   : > { %v397_v63 = vpop.xlane.xlu0 %396 }
 0x354   : > { %v398_v0 = vrot.slane %v397_v63, 4 }
 0x356   : > { %v399_v1 = vadd.f32 %v398_v0, %v397_v63 }
 0x357   : > { %v405_v2 = vpop.xlane.xlu0 %404 }
 0x358   : > { %v400_v3 = vrot.slane %v399_v1, 2  ;;  %v406_v4 = vrot.slane %v405_v2, 4 }
 0x35a   : > { %v407_v7 = vadd.f32 %v406_v4, %v405_v2  ;;  %v401_v8 = vadd.f32 %v400_v3, %v399_v1 }
 0x35c   : > { %v408_v9 = vrot.slane %v407_v7, 2  ;;  %v402_v11 = vrot.slane %v401_v8, 1 }
 0x35e   : > { %v409_v10 = vadd.f32 %v408_v9, %v407_v7  ;;  %v403_v14 = vadd.f32 %v402_v11, %v401_v8 }
 0x360   : > { %v410_v12 = vrot.slane %v409_v10, 1 }
 0x362   : > { %v411_v13 = vadd.f32 %v410_v12, %v409_v10 }
 0x364   : > { %1382 = vpush %v411_v13 }
 0x365   : > { %1384 = vpush %v403_v14 }
 0x395   : > { %s1383_s27 = spop %1382 }
 0x396   : > { %s1385_s17 = spop %1384 }
 0x397   : > { %s414_s18 = smul.f32 1e-10, %s1385_s17 }
 0x399   : > { %p415_p3 = scmp.le.f32.partialorder %s1383_s27, %s414_s18 }
 0x39b   : > { %p417_p4 = por %p416_p2, %p415_p3 }
 0x39d   :  { %865 = sbr.rel (!%p417_p4) target bundleno = 257 (0x101), region = 330 }
 0x3a4 PF:  { %v927_v15 = vld [vmem:[#allocation15] sm:$0xf]  ;;  %s866_s19 = smov [#allocation23]  ;;  %v870_v5 = vmov %v1596_v5  ;;  %v873_v6 = vmov %v1598_v6  ;;  %v921_v16 = vld [vmem:[#allocation12] sm:$0xf]  ;;  %s1530_s20 = smov [#allocation16]  }
 0x3a5   :  { %v890_v5 = vmov %v1596_v5  ;;  %v893_v6 = vmov %v1598_v6  ;;  %929 = vst [vmem:[#allocation16] sm:$0xf] %v927_v15  ;;  %s1080_s21 = sshll.u32 %s1530_s20, 4  ;;  %v874_v17 = vld [vmem:[%s866_s19] sm:$0xf]  ;;  %vm877_vm10 = vcmp.eq.s32.totalorder %v873_v6, %v870_v5  ;;  %s886_s26 = smov [#allocation26]  ;;  %s1081_s21 = int_to_ptr.vmem [resolvable:$true] %s1080_s21 }
 0x3a6   :  { %vm897_vm11 = vcmp.eq.s32.totalorder %v893_v6, %v890_v5  ;;  %923 = vst [vmem:[#allocation13] sm:$0xf] %v921_v16  ;;  %v933_v18 = vld [vmem:[#allocation18] sm:$0xf]  ;;  %v878_v19 = vsel %vm877_vm10, %v874_v17, 0.0  ;;  %s1417_s22 = scalar_lea.vmem %s1081_s21, 64  ;;  %p1422_p6 = scmp.lt.s32.totalorder %s1081_s21, %s1081_s21 }
 0x3a7   :  { %935 = vst [vmem:[#allocation19] sm:$0xf] %v933_v18  ;;  %v939_v20 = vld [vmem:[#allocation20] sm:$0xf]  ;;  %p1418_p5 = scmp.ne.s32.totalorder %s1081_s21, %s1417_s22  ;;  %p1423_p7 = scmp.lt.s32.totalorder %s1417_s22, %s1417_s22 }
 0x3a9   :  { %p1424_p8 = por %p1423_p7, %p1422_p6 }
 0x3ab   :  { %p1425_p9 = pnand %p1424_p8, %p1418_p5 }
 0x3ad   :  { %1428 = shalt.err (!%p1425_p9)
}
 0x3ae   :  { %s1429_s25 = scalar_lea.hbm %s1858_s7, 64 }
 0x3af   :  { %p1430_p10 = scmp.ne.s32.totalorder %s1858_s7, %s1429_s25  ;;  %p1433_p11 = scmp.lt.u32.totalorder %s1429_s25, %s1858_s7 }
 0x3b1   :  { %p1435_p12 = pnand %p1433_p11, %p1430_p10 }
 0x3b3   :  { %1438 = shalt.err (!%p1435_p12)
}
 0x3b4   :  { %1083 = dma.vmem_to_hbm [thread:$0]  %s1081_s21, 64, %s1858_s7, [#allocation17]   ;;  %v879_v21 = vrot.slane %v878_v19, 4  ;;  %v894_v22 = vld [vmem:[%s886_s26] sm:$0xf] }
 0x3b5   :  { %941 = vst [vmem:[#allocation21] sm:$0xf] %v939_v20  ;;  %v898_v23 = vsel %vm897_vm11, %v894_v22, 0.0  ;;  %s1531_s13 = smov [#allocation13]   ;;  %s1532_s15 = smov [#allocation19]  }
 0x3b6   :  { %v880_v24 = vadd.f32 %v879_v21, %v878_v19  ;;  %v899_v25 = vrot.slane %v898_v23, 4  ;;  %s1073_s14 = sshll.u32 %s1531_s13, 4  ;;  %s1087_s16 = sshll.u32 %s1532_s15, 4  ;;  %s1074_s14 = int_to_ptr.vmem [resolvable:$true] %s1073_s14  ;;  %s1088_s16 = int_to_ptr.vmem [resolvable:$true] %s1087_s16 }
 0x3b7   :  { %s1439_s0 = scalar_lea.vmem %s1074_s14, 64  ;;  %p1444_p0 = scmp.lt.s32.totalorder %s1074_s14, %s1074_s14 }
 0x3b8   :  { %v881_v26 = vrot.slane %v880_v24, 2  ;;  %v900_v27 = vadd.f32 %v899_v25, %v898_v23  ;;  %p1440_p13 = scmp.ne.s32.totalorder %s1074_s14, %s1439_s0  ;;  %p1445_p1 = scmp.lt.s32.totalorder %s1439_s0, %s1439_s0 }
 0x3ba   :  { %p1446_p2 = por %p1445_p1, %p1444_p0 }
 0x3bc   :  { %p1447_p3 = pnand %p1446_p2, %p1440_p13 }
 0x3be   :  { %1450 = shalt.err (!%p1447_p3)
}
 0x3bf   :  { %s1451_s2 = scalar_lea.hbm %s1857_s6, 64 }
 0x3c0   :  { %p1452_p4 = scmp.ne.s32.totalorder %s1857_s6, %s1451_s2  ;;  %p1455_p5 = scmp.lt.u32.totalorder %s1451_s2, %s1857_s6 }
 0x3c2   :  { %p1457_p6 = pnand %p1455_p5, %p1452_p4 }
 0x3c4   :  { %1460 = shalt.err (!%p1457_p6)
}
 0x3c5   :  { %1076 = dma.vmem_to_hbm [thread:$0]  %s1074_s14, 64, %s1857_s6, [#allocation14]   ;;  %v882_v5 = vadd.f32 %v881_v26, %v880_v24  ;;  %v901_v6 = vrot.slane %v900_v27, 2 }
 0x3c6   :  { %s1461_s21 = scalar_lea.vmem %s1088_s16, 64  ;;  %p1466_p8 = scmp.lt.s32.totalorder %s1088_s16, %s1088_s16 }
 0x3c7   :  { %p1462_p7 = scmp.ne.s32.totalorder %s1088_s16, %s1461_s21  ;;  %p1467_p9 = scmp.lt.s32.totalorder %s1461_s21, %s1461_s21 }
 0x3c9   :  { %p1468_p10 = por %p1467_p9, %p1466_p8 }
 0x3cb   :  { %p1469_p11 = pnand %p1468_p10, %p1462_p7 }
 0x3cd   :  { %1472 = shalt.err (!%p1469_p11)
}
 0x3ce   :  { %s1473_s23 = scalar_lea.hbm %s1859_s8, 64 }
 0x3cf   :  { %p1474_p12 = scmp.ne.s32.totalorder %s1859_s8, %s1473_s23  ;;  %p1477_p13 = scmp.lt.u32.totalorder %s1473_s23, %s1859_s8 }
 0x3d1   :  { %p1479_p0 = pnand %p1477_p13, %p1474_p12 }
 0x3d3   :  { %1482 = shalt.err (!%p1479_p0)
}
 0x3d4   :  { %1090 = dma.vmem_to_hbm [thread:$0]  %s1088_s16, 64, %s1859_s8, [#allocation17]   ;;  %v883_v28 = vrot.slane %v882_v5, 1  ;;  %v902_v29 = vadd.f32 %v901_v6, %v900_v27 }
 0x3d5   :  { %s1533_s10 = smov [#allocation21]   ;;  %s867_s12 = smov [#allocation8] }
 0x3d6   :  { %s1094_s11 = sshll.u32 %s1533_s10, 4  ;;  %s1095_s11 = int_to_ptr.vmem [resolvable:$true] %s1094_s11 }
 0x3d7   :  { %s1483_s13 = scalar_lea.vmem %s1095_s11, 64  ;;  %p1488_p2 = scmp.lt.s32.totalorder %s1095_s11, %s1095_s11 }
 0x3d8   :  { %p1484_p1 = scmp.ne.s32.totalorder %s1095_s11, %s1483_s13  ;;  %p1489_p3 = scmp.lt.s32.totalorder %s1483_s13, %s1483_s13 }
 0x3da   :  { %p1490_p4 = por %p1489_p3, %p1488_p2 }
 0x3dc   :  { %p1491_p5 = pnand %p1490_p4, %p1484_p1 }
 0x3de   :  { %1494 = shalt.err (!%p1491_p5)
}
 0x3df   :  { %s1495_s0 = scalar_lea.hbm %s1860_s9, 64 }
 0x3e0   :  { %p1496_p6 = scmp.ne.s32.totalorder %s1860_s9, %s1495_s0  ;;  %p1499_p7 = scmp.lt.u32.totalorder %s1495_s0, %s1860_s9 }
 0x3e2   :  { %p1501_p8 = pnand %p1499_p7, %p1496_p6 }
 0x3e4   :  { %1504 = shalt.err (!%p1501_p8)
}
 0x3e5   :  { %1097 = dma.vmem_to_hbm [thread:$0]  %s1095_s11, 64, %s1860_s9, [#allocation22]   ;;  %v884_v30 = vadd.f32 %v883_v28, %v882_v5  ;;  %v903_v31 = vrot.slane %v902_v29, 1 }
 0x3e6   :  { %s887_s27 = smov [#allocation10] }
 0x3e7   :  { %885 = vst [vmem:[%s867_s12] sm:$0x1] %v884_v30  ;;  %v904_v32 = vadd.f32 %v903_v31, %v902_v29 }
 0x3e9   :  { %905 = vst [vmem:[%s887_s27] sm:$0x1] %v904_v32 }
 0x3ee   :  { %v909_v33 = vld [vmem:[#allocation8] sm:$0x1] }
 0x3ef   :  { %911 = vst [vmem:[#allocation9] sm:$0x1] %v909_v33 }
 0x3f0   :  { %v915_v34 = vld [vmem:[#allocation10] sm:$0x1] }
 0x3f1   :  { %917 = vst [vmem:[#allocation11] sm:$0x1] %v915_v34 }
 0x3f6   :  { %v1004_v35 = vld [vmem:[#allocation9] sm:$0x1] }
 0x3f7   :  { %1005 = vst [vmem:[%s1855_s4] sm:$0x1] %v1004_v35 }
 0x3f8   :  { %v1068_v36 = vld [vmem:[#allocation11] sm:$0x1] }
 0x3f9   :  { %1069 = vst [vmem:[%s1856_s5] sm:$0x1] %v1068_v36 }
 0x3fa   :  { %1513 = dma.done.wait [#allocation14], 64  }
 0x3fb   :  { %1514 = vsyncadd [#allocation14], 4294967232 }
 0x3fc   :  { %1515 = dma.done.wait [#allocation17], 128  }
 0x3fd   :  { %1516 = vsyncadd [#allocation17], 4294967168 }
 0x3fe   :  { %1517 = dma.done.wait [#allocation22], 64  }
 0x3ff   :  { %1518 = vsyncadd [#allocation22], 4294967232 }
 0x400   :  { %1106 = vsyncpa [#allocation14], 1 }
 0x401   :  { %1107 = vsyncpa [#allocation17], 1 }
 0x402   :  { %1108 = vsyncpa [#allocation22], 1 }

// kernel: forward.3
= control target key start
LH: loop header
LB: loop body
LE: loop exit
PB: predicated region body
PF: predicated region fallthrough
CT: control target
= control target key end

     0   :  { %vm14_vm0 = vcmask 64512   ;;  %vm88_vm1 = vcmask 72704   ;;  %v306_v0 = vmov 0.0   ;;  %vm307_vm2 = vmmov 0   ;;  %s348_s0 = inlined_call_operand.vmem [shape: f32[8,128], index: 0, kind: input, shape index: {}]   ;;  %s349_s1 = inlined_call_operand.vmem [shape: f32[8,4], index: 1, kind: input, shape index: {}]   ;;  %s350_s3 = inlined_call_operand.vmem [shape: f32[8,8], index: 3, kind: output, shape index: {1}]   ;;  %s351_s2 = inlined_call_operand.vmem [shape: f32[8,8], index: 2, kind: output, shape index: {0}]  }
   0x1   :  { %287 = vmatprep.subr.mxu0 %v306_v0  ;;  %292 = vmatprep.subr.mxu1 %v306_v0  ;;  %v13_v1 = vld [vmem:[%s348_s0] sm:$0xff]  ;;  %vm191_vm3 = vcmask 31744   ;;  %v166_v5 = vlaneseq }
   0x2   :  { %288 = vmatpush3.xpose.msk.msra.mxu0 %vm14_vm0, %v13_v1  ;;  %293 = vmatpush3.xpose.msk.msra.mxu1 %vm88_vm1, %v13_v1  ;;  %v162_v2 = vmul.f32 %v13_v1, %v13_v1  ;;  %v189_v3 = vld [vmem:[%s349_s1] sm:$0xff] }
   0x3   :  { %289 = vmatprep.mubr.msk.f32.mxu0 %vm307_vm2, %v306_v0  ;;  %294 = vmatprep.mubr.msk.f32.mxu1 %vm307_vm2, %v306_v0  ;;  %v167_v6 = vshrl.u32 %v166_v5, 7  ;;  %v169_v7 = vand.u32 127, %v166_v5 }
   0x4   :  { %297 = vmatprep.subr.mxu0 %v306_v0  ;;  %v163_v4 = vsel %vm14_vm0, %v162_v2, 0.0 }
   0x5   :  { %290 = vmatmul.mubr.msk.f32.vlgmr.msra.gmra.mrb[0].mxu0 %vm14_vm0, %v13_v1  ;;  %295 = vmatmul.mubr.msk.f32.vlgmr.msra.gmra.mrb[0].mxu1 %vm88_vm1, %v13_v1  ;;  %vm170_vm4 = vcmp.eq.s32.totalorder %v167_v6, %v169_v7 }
   0x6   :  { %298 = vmatpush3.xpose.msk.msra.mxu0 %vm191_vm3, %v189_v3  ;;  %299 = vmatprep.mubr.msk.f32.mxu0 %vm307_vm2, %v306_v0  ;;  %v278_v8 = vsel %vm170_vm4, 1.0, %v306_v0 }
   0x7   :  { %164 = vadd.xlane.f32.xlu0 %v163_v4 }
   0x9   :  { %300 = vmatmul.mubr.msk.f32.vlgmr.msra.gmra.mrb[2].mxu0 %vm191_vm3, %v189_v3 }
  0x94   :  { %v165_v23 = vpop.xlane.xlu0 %164 }
  0xd8   :  { %v84_v9 = vpop.f32.mrb[0].mxu0  ;;  %v157_v10 = vpop.f32.mrb[0].mxu1 }
  0xd9   :  { %v173_v11 = vmul.f32 %v278_v8, %v84_v9  ;;  %v161_v12 = vsub.f32 %v157_v10, %v84_v9  ;;  %v291_v13 = vpop.f32.mrb[1].mxu0  ;;  %v296_v14 = vpop.f32.mrb[1].mxu1  ;;  %v182_v25 = vmul.f32 2.0, %v84_v9 }
  0xdb   :  { %v174_v15 = vsel %vm14_vm0, %v173_v11, 0.0 }
  0xdc   :  { %v175_v16 = vrot.slane %v174_v15, 4  ;;  %v261_v17 = vpop.f32.mrb[2].mxu0 }
  0xdd   :  { %v301_v18 = vpop.f32.mrb[3].mxu0 }
  0xde   :  { %v176_v19 = vadd.f32 %v175_v16, %v174_v15 }
  0xe0   :  { %v177_v20 = vrot.slane %v176_v19, 2 }
  0xe2   :  { %v178_v21 = vadd.f32 %v177_v20, %v176_v19 }
  0xe4   :  { %v179_v22 = vrot.slane %v178_v21, 1 }
  0xe6   :  { %v180_v24 = vadd.f32 %v179_v22, %v178_v21 }
  0xe8   :  { %v181_v26 = vadd.f32 %v180_v24, %v165_v23 }
  0xea   :  { %v183_v27 = vsub.f32 %v181_v26, %v182_v25 }
  0xec   :  { %v184_v28 = vmax.f32 %v183_v27, 0.0 }
  0xee   :  { %v185_v29 = vsub.f32 0.0, %v184_v28 }
  0xf0   :  { %v186_v30 = vmul.f32 1.442695, %v185_v29 }
  0xf2   :  { %304 = vpow2.f32 %v186_v30 }
  0xfc   :  { %v305_v31 = vpop.eup %304 }
  0xfd   :  { %v188_v32 = vmul.f32 %v305_v31, %v161_v12 }
  0xff   :  { %190 = vst.msk [vmem:[%s350_s3] sm:$0xff] %vm14_vm0, %v188_v32  ;;  %v262_v33 = vadd.f32 %v261_v17, %v188_v32 }
 0x101   :  { %265 = vst.msk [vmem:[%s351_s2] sm:$0xff] %vm14_vm0, %v262_v33 }

// kernel: forward.2
= control target key start
LH: loop header
LB: loop body
LE: loop exit
PB: predicated region body
PF: predicated region fallthrough
CT: control target
= control target key end

     0   :  { %s4531_s30 = smov 0   ;;  %s6390_s0 = inlined_call_operand.vmem [shape: f32[4,2048], index: 0, kind: input, shape index: {}]   ;;  %s6391_s1 = inlined_call_operand.vmem [shape: f32[9,1024], index: 1, kind: input, shape index: {}]   ;;  %s6392_s2 = inlined_call_operand.vmem [shape: f32[4,1024], index: 2, kind: input, shape index: {}]   ;;  %s6393_s3 = inlined_call_operand.vmem [shape: bf16[8,36], index: 3, kind: input, shape index: {}]   ;;  %s6394_s4 = inlined_call_operand.vmem [shape: f32[8,1], index: 4, kind: input, shape index: {}]   ;;  %s6395_s5 = inlined_call_operand.vmem [shape: bf16[16,72], index: 5, kind: input, shape index: {}]   ;;  %s6396_s6 = inlined_call_operand.vmem [shape: f32[16,1], index: 6, kind: input, shape index: {}]   ;;  %s6397_s7 = inlined_call_operand.vmem [shape: f32[16,128], index: 7, kind: input, shape index: {}]   ;;  %s6398_s8 = inlined_call_operand.vmem [shape: f32[1,128], index: 8, kind: input, shape index: {}]   ;;  %s6399_s9 = inlined_call_operand.vmem [shape: f32[2,4,128], index: 9, kind: output, shape index: {}]  }
   0x1 LB: > { %s4537_s10 = sadd.s32 4294967295, %s4467_s30   ;;  %p4094_p0 = scmp.ge.s32.totalorder %s4467_s30, 1  ;;  %s4467_s30 = sphi %s4531_s30, %s19_s30  }
   0x2   : > { %p288_p1 = scmp.lt.s32.totalorder %s4467_s30, 3 }
   0x4   : > { %p289_p2 = pnand %p4094_p0, %p288_p1 }
   0x6   : > { %292 = sbr.rel (%p289_p2) target bundleno = 1444 (0x5a4), region = 56 }
   0xd   : > { %v353_v0 = vlaneseq  ;;  %v4117_v1 = vld [vmem:[%s6391_s1 + $0x3] ss:$8 sm:$0xf]  ;;  %v4103_v3 = vld [vmem:[%s6391_s1 + $0x1] ss:$8 sm:$0xf] }
   0xe   : > { %v4118_v2 = vld [vmem:[%s6391_s1 + $0x3] ss:$8 sm:$0xf0]  ;;  %v4104_v6 = vld [vmem:[%s6391_s1 + $0x1] ss:$8 sm:$0xf0] }
   0xf   : > { %v4550_v4 = vshrl.u32 %v353_v0, 7  ;;  %v4552_v5 = vor.u32 %v4118_v2, %v4117_v1  ;;  %v4557_v7 = vor.u32 %v4104_v6, %v4103_v3  ;;  %v349_v8 = vld [vmem:[%s6391_s1] ss:$8 sm:$0xf]  ;;  %s4469_s29 = smov 127   ;;  %s4470_s11 = smov 112  }
  0x10   : > { %v350_v9 = vld [vmem:[%s6391_s1] ss:$8 sm:$0xf0]  ;;  %v4110_v23 = vld [vmem:[%s6391_s1 + $0x2] ss:$8 sm:$0xf] }
  0x11   : > { %v4566_v10 = vsub.s32 0, %v4550_v4  ;;  %v4569_v11 = vsub.s32 1, %v4550_v4  ;;  %v4572_v12 = vsub.s32 2, %v4550_v4  ;;  %v4575_v13 = vsub.s32 3, %v4550_v4  ;;  %s4095_s14 = sshll.u32 %s4537_s10, 3  ;;  %s4471_s23 = smov 111  }
  0x12   : > { %v4577_v14 = vor.u32 %v350_v9, %v349_v8  ;;  %v4111_v24 = vld [vmem:[%s6391_s1 + $0x2] ss:$8 sm:$0xf0]  ;;  %v4128_v31 = vld [vmem:[%s6391_s1 + $0x5] ss:$8 sm:$0xf] }
  0x13   : > { %v819_v15 = vrot.slane %v4552_v5, %v4566_v10  ;;  %v823_v16 = vrot.slane %v4552_v5, %v4569_v11  ;;  %v510_v17 = vrot.slane %v4557_v7, %v4566_v10  ;;  %v514_v18 = vrot.slane %v4557_v7, %v4569_v11  ;;  %v4129_v35 = vld [vmem:[%s6391_s1 + $0x5] ss:$8 sm:$0xf0]  ;;  %p324_p3 = scmp.lt.s32.totalorder %s4095_s14, 15  ;;  %s4472_s28 = smov 113  }
  0x14   : > { %v827_v19 = vrot.slane %v4552_v5, %v4572_v12  ;;  %v831_v20 = vrot.slane %v4552_v5, %v4575_v13  ;;  %v518_v21 = vrot.slane %v4557_v7, %v4572_v12  ;;  %v522_v22 = vrot.slane %v4557_v7, %v4575_v13  ;;  %v4142_v36 = vld [vmem:[%s6391_s1 + $0x7] ss:$8 sm:$0xf]  ;;  %v4135_v54 = vld [vmem:[%s6391_s1 + $0x6] ss:$8 sm:$0xf] }
  0x15   : > { %v848_v25 = vcombine.low %v819_v15, %v823_v16  ;;  %v539_v26 = vcombine.low %v510_v17, %v514_v18  ;;  %v364_v27 = vrot.slane %v4577_v14, %v4572_v12  ;;  %v368_v28 = vrot.slane %v4577_v14, %v4575_v13  ;;  %v4143_v41 = vld [vmem:[%s6391_s1 + $0x7] ss:$8 sm:$0xf0]  ;;  %s6447_s14 = smov (!%p324_p3, %s4095_s14), 15  ;;  %s4473_s16 = smov 1  }
  0x16   : > { %v356_v29 = vrot.slane %v4577_v14, %v4566_v10  ;;  %v360_v30 = vrot.slane %v4577_v14, %v4569_v11  ;;  %v849_v32 = vcombine.low %v827_v19, %v831_v20  ;;  %v540_v33 = vcombine.low %v518_v21, %v522_v22  ;;  %s4096_s19 = sshll.u32 %s6447_s14, 2  ;;  %v4136_v55 = vld [vmem:[%s6391_s1 + $0x6] ss:$8 sm:$0xf0]  ;;  %s4475_s17 = smov 16  }
  0x17   : > { %852 = vrot.lane.b32.xlu1 %v848_v25, %s4469_s29  ;;  %543 = vrot.lane.b32.xlu0 %v539_v26, %s4470_s11  ;;  %v4614_v34 = vor.u32 %v4111_v24, %v4110_v23  ;;  %v386_v37 = vcombine.low %v364_v27, %v368_v28  ;;  %v4625_v40 = vor.u32 %v4129_v35, %v4128_v31  ;;  %s4643_s22 = scalar_lea.vmem %s6390_s0, %s4096_s19  ;;  %v4149_v63 = vld [vmem:[%s6391_s1 + $0x40] ss:$8 sm:$0xf]  ;;  %v6400_v17 = vmov 0.0   ;;  %s4476_s18 = smov 15  }
  0x18   : > { %v385_v38 = vcombine.low %v356_v29, %v360_v30  ;;  %v4638_v45 = vor.u32 %v4143_v41, %v4142_v36  ;;  %v4654_v50 = vld [vmem:[%s4643_s22] sm:$0xff]  ;;  %v4657_v51 = vld [vmem:[%s4643_s22 + $0x8] sm:$0xff]  ;;  %v4671_v59 = vor.u32 %v4136_v55, %v4135_v54  ;;  %v4688_v1 = vld [vmem:[%s4643_s22 + $0x10] sm:$0xff]  ;;  %338 = vst [vmem:[#allocation2] sm:$0xf] %v6400_v17  ;;  %v4706_v18 = vsub.s32 4, %v4550_v4 }
  0x19   : > { %v675_v39 = vrot.slane %v4614_v34, %v4572_v12  ;;  %v679_v42 = vrot.slane %v4614_v34, %v4575_v13  ;;  %v667_v43 = vrot.slane %v4614_v34, %v4566_v10  ;;  %v671_v44 = vrot.slane %v4614_v34, %v4569_v11  ;;  %340 = vst [vmem:[#allocation2 + $0x4] sm:$0xff] %v4654_v50  ;;  %v4150_v0 = vld [vmem:[%s6391_s1 + $0x40] ss:$8 sm:$0xf0]  ;;  %s4477_s19 = smov 17   ;;  %p329_p4 = scmp.lt.s32.totalorder %s4537_s10, 1 }
  0x1a   : > { %v1036_v46 = vrot.slane %v4625_v40, %v4572_v12  ;;  %v1040_v47 = vrot.slane %v4625_v40, %v4575_v13  ;;  %v1028_v48 = vrot.slane %v4625_v40, %v4566_v10  ;;  %v1032_v49 = vrot.slane %v4625_v40, %v4569_v11  ;;  %341 = vst [vmem:[#allocation2 + $0xc] sm:$0xff] %v4657_v51 }
  0x1b   : > { %854 = vrot.lane.b32.xlu1 %v849_v32, %s4469_s29  ;;  %545 = vrot.lane.b32.xlu0 %v540_v33, %s4470_s11  ;;  %v697_v52 = vcombine.low %v675_v39, %v679_v42  ;;  %v696_v53 = vcombine.low %v667_v43, %v671_v44  ;;  %v1345_v58 = vrot.slane %v4638_v45, %v4572_v12  ;;  %v4713_v22 = vsub.s32 5, %v4550_v4  ;;  %v4732_v32 = vld [vmem:[%s4643_s22 + $0x18] sm:$0xff]  ;;  %s6449_s10 = smov (!%p329_p4, %s4537_s10), 1 }
  0x1c   : > { %v1058_v56 = vcombine.low %v1036_v46, %v1040_v47  ;;  %v1057_v57 = vcombine.low %v1028_v48, %v1032_v49  ;;  %v1349_v60 = vrot.slane %v4638_v45, %v4575_v13  ;;  %v1337_v61 = vrot.slane %v4638_v45, %v4566_v10  ;;  %342 = vst [vmem:[#allocation2 + $0x14] sm:$0xff] %v4688_v1  ;;  %s4097_s22 = sshll.u32 %s6449_s10, 2 }
  0x1d   : > { %v1341_v62 = vrot.slane %v4638_v45, %v4569_v11  ;;  %v1193_v2 = vrot.slane %v4671_v59, %v4572_v12  ;;  %v1197_v3 = vrot.slane %v4671_v59, %v4575_v13  ;;  %v1185_v6 = vrot.slane %v4671_v59, %v4566_v10  ;;  %339 = vst [vmem:[#allocation2 + $0x24] sm:$0xf] %v6400_v17 }
  0x1e   : > { %v4696_v8 = vor.u32 %v4150_v0, %v4149_v63  ;;  %v1367_v9 = vcombine.low %v1345_v58, %v1349_v60  ;;  %v1189_v16 = vrot.slane %v4671_v59, %v4569_v11  ;;  %v835_v27 = vrot.slane %v4552_v5, %v4706_v18  ;;  %343 = vst [vmem:[#allocation2 + $0x1c] sm:$0xff] %v4732_v32 }
  0x1f   : > { %391 = vrot.lane.b32.xlu1 %v386_v37, %s4471_s23  ;;  %389 = vrot.lane.b32.xlu0 %v385_v38, %s4471_s23  ;;  %v1366_v15 = vcombine.low %v1337_v61, %v1341_v62  ;;  %v1215_v19 = vcombine.low %v1193_v2, %v1197_v3  ;;  %v839_v28 = vrot.slane %v4552_v5, %v4713_v22  ;;  %v4746_v41 = vsub.s32 6, %v4550_v4 }
  0x20   : > { %v1502_v20 = vrot.slane %v4696_v8, %v4572_v12  ;;  %v1506_v21 = vrot.slane %v4696_v8, %v4575_v13  ;;  %v1214_v23 = vcombine.low %v1185_v6, %v1189_v16  ;;  %v1494_v24 = vrot.slane %v4696_v8, %v4566_v10 }
  0x21   : > { %v1498_v25 = vrot.slane %v4696_v8, %v4569_v11  ;;  %v526_v30 = vrot.slane %v4557_v7, %v4706_v18  ;;  %v530_v31 = vrot.slane %v4557_v7, %v4713_v22  ;;  %v683_v33 = vrot.slane %v4614_v34, %v4706_v18 }
  0x22   : > { %v1524_v26 = vcombine.low %v1502_v20, %v1506_v21  ;;  %v687_v35 = vrot.slane %v4614_v34, %v4713_v22  ;;  %v372_v36 = vrot.slane %v4577_v14, %v4706_v18  ;;  %v376_v37 = vrot.slane %v4577_v14, %v4713_v22 }
  0x23   : > { %702 = vrot.lane.b32.xlu1 %v697_v52, %s4472_s28  ;;  %700 = vrot.lane.b32.xlu0 %v696_v53, %s4472_s28  ;;  %v1523_v29 = vcombine.low %v1494_v24, %v1498_v25  ;;  %v850_v38 = vcombine.low %v835_v27, %v839_v28  ;;  %v541_v39 = vcombine.low %v526_v30, %v530_v31  ;;  %v4751_v46 = vsub.s32 7, %v4550_v4 }
  0x24   : > { %v698_v42 = vcombine.low %v683_v33, %v687_v35  ;;  %v387_v43 = vcombine.low %v372_v36, %v376_v37  ;;  %v1353_v44 = vrot.slane %v4638_v45, %v4706_v18  ;;  %v1357_v47 = vrot.slane %v4638_v45, %v4713_v22  ;;  %v4826_v35 = vld [vmem:[#allocation2] sm:$0xff] }
  0x25   : > { %v1044_v48 = vrot.slane %v4625_v40, %v4706_v18  ;;  %v1048_v49 = vrot.slane %v4625_v40, %v4713_v22  ;;  %v534_v52 = vrot.slane %v4557_v7, %v4746_v41  ;;  %v538_v4 = vrot.slane %v4557_v7, %v4751_v46 }
  0x26   : > { %v1201_v53 = vrot.slane %v4671_v59, %v4706_v18  ;;  %v1368_v54 = vcombine.low %v1353_v44, %v1357_v47  ;;  %v380_v58 = vrot.slane %v4577_v14, %v4746_v41  ;;  %v384_v60 = vrot.slane %v4577_v14, %v4751_v46 }
  0x27   : > { %1063 = vrot.lane.b32.xlu1 %v1058_v56, %s4473_s16  ;;  %1061 = vrot.lane.b32.xlu0 %v1057_v57, %s4473_s16  ;;  %v1059_v55 = vcombine.low %v1044_v48, %v1048_v49  ;;  %v1205_v56 = vrot.slane %v4671_v59, %v4713_v22  ;;  %v542_v57 = vcombine.low %v534_v52, %v538_v4  ;;  %vm401_vm0 = vcmask 908288  }
  0x28   : > { %v843_v61 = vrot.slane %v4552_v5, %v4746_v41  ;;  %v847_v62 = vrot.slane %v4552_v5, %v4751_v46  ;;  %v388_v63 = vcombine.low %v380_v58, %v384_v60  ;;  %v1510_v0 = vrot.slane %v4696_v8, %v4706_v18 }
  0x29   : > { %v1216_v7 = vcombine.low %v1201_v53, %v1205_v56  ;;  %v1514_v2 = vrot.slane %v4696_v8, %v4713_v22  ;;  %v691_v3 = vrot.slane %v4614_v34, %v4746_v41  ;;  %v695_v6 = vrot.slane %v4614_v34, %v4751_v46 }
  0x2a   : > { %v851_v14 = vcombine.low %v843_v61, %v847_v62  ;;  %v1361_v5 = vrot.slane %v4638_v45, %v4746_v41  ;;  %v1056_v16 = vrot.slane %v4625_v40, %v4751_v46  ;;  %v1522_v24 = vrot.slane %v4696_v8, %v4751_v46 }
  0x2b   : > { %1372 = vrot.lane.b32.xlu1 %v1367_v9, %s4475_s17  ;;  %1370 = vrot.lane.b32.xlu0 %v1366_v15, %s4475_s17  ;;  %v1365_v9 = vrot.slane %v4638_v45, %v4751_v46  ;;  %v1052_v15 = vrot.slane %v4625_v40, %v4746_v41  ;;  %v699_v20 = vcombine.low %v691_v3, %v695_v6  ;;  %vm403_vm1 = vcmask 1043456  }
  0x2c   : > { %v1213_v45 = vrot.slane %v4671_v59, %v4751_v46  ;;  %v1518_v40 = vrot.slane %v4696_v8, %v4746_v41  ;;  %vm712_vm2 = vcmask 924672   ;;  %vm790_vm3 = vcmask 121856  }
  0x2d   : > { %v1369_v21 = vcombine.low %v1361_v5, %v1365_v9  ;;  %v1060_v34 = vcombine.low %v1052_v15, %v1056_v16  ;;  %vm481_vm4 = vcmask 138240   ;;  %vm555_vm5 = vcmask 916480  }
  0x2e   : > { %vm864_vm6 = vcmask 1039360   ;;  %vm947_vm7 = vcmask 7168   ;;  %vm638_vm8 = vcmask 130048   ;;  %vm1764_vm9 = vcmask 1041408  }
  0x2f   : > { %1220 = vrot.lane.b32.xlu1 %v1215_v19, %s4476_s18  ;;  %1218 = vrot.lane.b32.xlu0 %v1214_v23, %s4476_s18  ;;  %v1525_v19 = vcombine.low %v1510_v0, %v1514_v2  ;;  %v1209_v23 = vrot.slane %v4671_v59, %v4746_v41  ;;  %vm1760_vm10 = vcmask 293888   ;;  %vm3442_vm11 = vcmask 588800  }
  0x30   : > { %vm4480_vm12 = vmmov 0  }
  0x31   : > { %v1217_v25 = vcombine.low %v1209_v23, %v1213_v45 }
  0x33   : > { %1529 = vrot.lane.b32.xlu1 %v1524_v26, %s4477_s19  ;;  %1527 = vrot.lane.b32.xlu0 %v1523_v29, %s4477_s19  ;;  %v1526_v26 = vcombine.low %v1518_v40, %v1522_v24 }
  0x37   : > { %856 = vrot.lane.b32.xlu1 %v850_v38, %s4469_s29  ;;  %547 = vrot.lane.b32.xlu0 %v541_v39, %s4470_s11  ;;  %v4832_v38 = vld [vmem:[#allocation2 + $0x8] sm:$0xff] }
  0x3b   : > { %704 = vrot.lane.b32.xlu1 %v698_v42, %s4472_s28  ;;  %393 = vrot.lane.b32.xlu0 %v387_v43, %s4471_s23 }
  0x3f   : > { %1374 = vrot.lane.b32.xlu1 %v1368_v54, %s4475_s17  ;;  %1065 = vrot.lane.b32.xlu0 %v1059_v55, %s4473_s16 }
  0x43   : > { %549 = vrot.lane.b32.xlu1 %v542_v57, %s4470_s11  ;;  %1222 = vrot.lane.b32.xlu0 %v1216_v7, %s4476_s18 }
  0x47   : > { %395 = vrot.lane.b32.xlu1 %v388_v63, %s4471_s23  ;;  %858 = vrot.lane.b32.xlu0 %v851_v14, %s4469_s29 }
  0x4b   : > { %1531 = vrot.lane.b32.xlu1 %v1525_v19, %s4477_s19  ;;  %706 = vrot.lane.b32.xlu0 %v699_v20, %s4472_s28 }
  0x4f   : > { %1376 = vrot.lane.b32.xlu1 %v1369_v21, %s4475_s17  ;;  %1067 = vrot.lane.b32.xlu0 %v1060_v34, %s4473_s16 }
  0x53   : > { %1224 = vrot.lane.b32.xlu0 %v1217_v25, %s4476_s18  ;;  %1533 = vrot.lane.b32.xlu1 %v1526_v26, %s4477_s19 }
  0x89   : > { %v4815_v27 = vpop.permute.xlu1 %852  ;;  %v4817_v28 = vpop.permute.xlu0 %543 }
  0x8d   : > { %v4819_v59 = vpop.permute.xlu1 %854  ;;  %v4821_v29 = vpop.permute.xlu0 %545 }
  0x91   : > { %v4823_v30 = vpop.permute.xlu1 %391  ;;  %v390_v8 = vpop.permute.xlu0 %389 }
  0x92   : > { %v398_v31 = vrot.slane %v4823_v30, 4  ;;  %v397_v33 = vrot.slane %v390_v8, 4 }
  0x94   : > { %v402_v36 = vsel %vm401_vm0, %v397_v33, %v390_v8  ;;  %v404_v37 = vsel %vm403_vm1, %v397_v33, %v398_v31 }
  0x95   : > { %v415_v39 = vmul.f32 %v4826_v35, %v402_v36  ;;  %v4835_v42 = vpop.permute.xlu1 %702  ;;  %v701_v43 = vpop.permute.xlu0 %700  ;;  %v405_v44 = vsel %vm401_vm0, %v404_v37, %v4823_v30 }
  0x96   : > { %v709_v47 = vrot.slane %v4835_v42, 4  ;;  %v708_v48 = vrot.slane %v701_v43, 4  ;;  %v416_v49 = vmul.f32 %v4832_v38, %v405_v44 }
  0x97   : > { %v424_v52 = vcombine.high %v415_v39, %v415_v39 }
  0x98   : > { %v713_v4 = vsel %vm712_vm2, %v708_v48, %v701_v43  ;;  %v714_v53 = vsel %vm403_vm1, %v708_v48, %v709_v47  ;;  %v425_v54 = vcombine.high %v416_v49, %v416_v49 }
  0x99   : > { %v725_v55 = vmul.f32 %v4826_v35, %v713_v4  ;;  %v4846_v56 = vpop.permute.xlu1 %1063  ;;  %v4848_v57 = vpop.permute.xlu0 %1061  ;;  %v4299_v58 = vpack.c.bf16 %v424_v52, %v415_v39  ;;  %v715_v60 = vsel %vm712_vm2, %v714_v53, %v4835_v42  ;;  %v551_v52 = vrot.slane %v4817_v28, 4 }
  0x9a   : > { %v4300_v7 = vpack.c.bf16 %v425_v54, %v416_v49  ;;  %v726_v61 = vmul.f32 %v4832_v38, %v715_v60  ;;  %v860_v60 = vrot.slane %v4815_v27, 4 }
  0x9b   : > { %464 = vrot.lane.b32.xlu0 %v4299_v58, %s4477_s19  ;;  %v734_v62 = vcombine.high %v725_v55, %v725_v55 }
  0x9c   : > { %466 = vrot.lane.b32.xlu1 %v4300_v7, %s4477_s19  ;;  %v735_v63 = vcombine.high %v726_v61, %v726_v61  ;;  %v865_v42 = vsel %vm864_vm6, %v860_v60, %v4815_v27  ;;  %v1069_v27 = vrot.slane %v4848_v57, 4 }
  0x9d   : > { %v4855_v0 = vpop.permute.xlu1 %1372  ;;  %v4857_v2 = vpop.permute.xlu0 %1370  ;;  %v4309_v14 = vpack.c.bf16 %v734_v62, %v725_v55  ;;  %v556_v62 = vsel %vm555_vm5, %v551_v52, %v4817_v28 }
  0x9e   : > { %v4310_v3 = vpack.c.bf16 %v735_v63, %v726_v61  ;;  %v568_v30 = vmul.f32 %v4826_v35, %v556_v62 }
  0x9f   : > { %774 = vrot.lane.b32.xlu0 %v4309_v14, %s4476_s18 }
  0xa0   : > { %776 = vrot.lane.b32.xlu1 %v4310_v3, %s4476_s18 }
  0xa1   : > { %v4861_v6 = vpop.permute.xlu1 %1220  ;;  %v1219_v5 = vpop.permute.xlu0 %1218 }
  0xa2   : > { %v1227_v9 = vrot.slane %v4861_v6, 4  ;;  %v1226_v15 = vrot.slane %v1219_v5, 4 }
  0xa4   : > { %v1231_v16 = vsel %vm790_vm3, %v1226_v15, %v1219_v5  ;;  %v1232_v19 = vsel %vm403_vm1, %v1226_v15, %v1227_v9  ;;  %v4905_v5 = vld [vmem:[#allocation2 + $0x10] sm:$0xff] }
  0xa5   : > { %v1243_v20 = vmul.f32 %v1231_v16, %v4654_v50  ;;  %v4869_v21 = vpop.permute.xlu1 %1529  ;;  %v1528_v34 = vpop.permute.xlu0 %1527  ;;  %v1233_v23 = vsel %vm790_vm3, %v1232_v19, %v4861_v6 }
  0xa6   : > { %v1536_v45 = vrot.slane %v4869_v21, 4  ;;  %v1535_v40 = vrot.slane %v1528_v34, 4  ;;  %v1244_v24 = vmul.f32 %v1233_v23, %v4657_v51 }
  0xa7   : > { %v1252_v25 = vcombine.high %v1243_v20, %v1243_v20 }
  0xa8   : > { %v1540_v26 = vsel %vm481_vm4, %v1535_v40, %v1528_v34  ;;  %v1541_v8 = vsel %vm403_vm1, %v1535_v40, %v1536_v45  ;;  %v1253_v33 = vcombine.high %v1244_v24, %v1244_v24  ;;  %v552_v34 = vrot.slane %v4821_v29, 4 }
  0xa9   : > { %v1552_v36 = vmul.f32 %v1540_v26, %v4654_v50  ;;  %v4880_v37 = vpop.permute.xlu1 %856  ;;  %v4882_v39 = vpop.permute.xlu0 %547  ;;  %v4328_v43 = vpack.c.bf16 %v1252_v25, %v1243_v20  ;;  %v1542_v44 = vsel %vm481_vm4, %v1541_v8, %v4869_v21  ;;  %v6401_v20 = vmov 0  }
  0xaa   : > { %v4329_v48 = vpack.c.bf16 %v1253_v33, %v1244_v24  ;;  %v1553_v49 = vmul.f32 %v1542_v44, %v4657_v51  ;;  %4442 = vset.pattern.permute.xlu0 %v6401_v20  ;;  %1821 = vmatprep.mubr.bf16.mxu1 %v6401_v20  ;;  %v877_v24 = vmul.f32 %v865_v42, %v4826_v35  ;;  %v1378_v44 = vrot.slane %v4857_v2, 4 }
  0xab   : > { %1292 = vrot.lane.b32.xlu0 %v4328_v43, %s4472_s28  ;;  %v1561_v4 = vcombine.high %v1552_v36, %v1552_v36  ;;  %1903 = vmatprep.mubr.bf16.mxu0 %v6401_v20  ;;  %v557_v43 = vsel %vm403_vm1, %v551_v52, %v552_v34 }
  0xac   : > { %1294 = vrot.lane.b32.xlu1 %v4329_v48, %s4472_s28  ;;  %v1562_v53 = vcombine.high %v1553_v49, %v1553_v49 }
  0xad   : > { %v4890_v54 = vpop.permute.xlu1 %704  ;;  %v394_v55 = vpop.permute.xlu0 %393  ;;  %v4338_v58 = vpack.c.bf16 %v1561_v4, %v1552_v36  ;;  %4443 = vset.pattern.permute.xlu1 %v6401_v20  ;;  %v577_v36 = vcombine.high %v568_v30, %v568_v30 }
  0xae   : > { %v710_v7 = vrot.slane %v4890_v54, 4  ;;  %v399_v61 = vrot.slane %v394_v55, 4  ;;  %v4339_v63 = vpack.c.bf16 %v1562_v53, %v1553_v49  ;;  %v1074_v49 = vsel %vm947_vm7, %v1069_v27, %v4848_v57 }
  0xaf   : > { %1601 = vrot.lane.b32.xlu0 %v4338_v58, %s4471_s23  ;;  %v886_v58 = vcombine.high %v877_v24, %v877_v24  ;;  %v1086_v62 = vmul.f32 %v1074_v49, %v4654_v50 }
  0xb0   : > { %v716_v14 = vsel %vm403_vm1, %v709_v47, %v710_v7  ;;  %v406_v3 = vsel %vm403_vm1, %v398_v31, %v399_v61  ;;  %1603 = vrot.lane.b32.xlu1 %v4339_v63, %s4471_s23  ;;  %v861_v31 = vrot.slane %v4819_v59, 4  ;;  %v1383_v63 = vsel %vm638_vm8, %v1378_v44, %v4857_v2 }
  0xb1   : > { %v717_v15 = vsel %vm712_vm2, %v716_v14, %v4890_v54  ;;  %v407_v28 = vsel %vm401_vm0, %v406_v3, %v394_v55  ;;  %v4911_v16 = vpop.permute.xlu1 %1374  ;;  %v4913_v19 = vpop.permute.xlu0 %1065  ;;  %v4304_v3 = vpack.c.bf16 %v577_v36, %v568_v30  ;;  %v4314_v30 = vpack.c.bf16 %v886_v58, %v877_v24 }
  0xb2   : > { %v417_v47 = vmul.f32 %v4905_v5, %v407_v28  ;;  %v727_v23 = vmul.f32 %v4905_v5, %v717_v15  ;;  %v866_v8 = vsel %vm403_vm1, %v860_v60, %v861_v31  ;;  %v558_v60 = vsel %vm555_vm5, %v557_v43, %v4821_v29 }
  0xb3   : > { %v867_v57 = vsel %vm864_vm6, %v866_v8, %v4819_v59  ;;  %v1070_v15 = vrot.slane %v4846_v56, 4  ;;  %v4969_v8 = vld [vmem:[#allocation2 + $0x18] sm:$0xff]  ;;  %v1395_v36 = vmul.f32 %v1383_v63, %v4654_v50  ;;  %v926_v63 = vrot.slane %v4314_v30, 6 }
  0xb4   : > { %v426_v40 = vcombine.high %v417_v47, %v417_v47  ;;  %v736_v35 = vcombine.high %v727_v23, %v727_v23 }
  0xb5   : > { %v4928_v25 = vpop.permute.xlu1 %549  ;;  %v4930_v26 = vpop.permute.xlu0 %1222 }
  0xb6   : > { %v1228_v33 = vrot.slane %v4930_v26, 4  ;;  %v4301_v48 = vpack.c.bf16 %v426_v40, %v417_v47  ;;  %v4311_v14 = vpack.c.bf16 %v736_v35, %v727_v23  ;;  %v569_v47 = vmul.f32 %v4832_v38, %v558_v60 }
  0xb7   : > { %v1071_v40 = vrot.slane %v4913_v19, 4  ;;  %v878_v23 = vmul.f32 %v867_v57, %v4832_v38  ;;  %v1379_v35 = vrot.slane %v4855_v0, 4  ;;  %v1075_v60 = vsel %vm403_vm1, %v1069_v27, %v1070_v15 }
  0xb8   : > { %v1234_v4 = vsel %vm403_vm1, %v1227_v9, %v1228_v33  ;;  %468 = vrot.lane.b32.xlu0 %v4301_v48, %s4477_s19  ;;  %v578_v27 = vcombine.high %v569_v47, %v569_v47  ;;  %v554_v30 = vrot.slane %v4928_v25, 4 }
  0xb9   : > { %v1235_v53 = vsel %vm790_vm3, %v1234_v4, %v4930_v26  ;;  %v4950_v52 = vpop.permute.xlu1 %395  ;;  %v4952_v55 = vpop.permute.xlu0 %858  ;;  %v617_v4 = vrot.slane %v4304_v3, 6  ;;  %v1077_v58 = vsel %vm403_vm1, %v1070_v15, %v1071_v40  ;;  %v1404_v3 = vcombine.high %v1395_v36, %v1395_v36 }
  0xba   : > { %v1245_v6 = vmul.f32 %v1235_v53, %v4688_v1  ;;  %v400_v9 = vrot.slane %v4950_v52, 4  ;;  %v1095_v53 = vcombine.high %v1086_v62, %v1086_v62  ;;  %v1384_v54 = vsel %vm403_vm1, %v1378_v44, %v1379_v35 }
  0xbb   : > { %v553_v15 = vrot.slane %v4882_v39, 4  ;;  %v4305_v44 = vpack.c.bf16 %v578_v27, %v569_v47 }
  0xbc   : > { %v408_v28 = vsel %vm403_vm1, %v399_v61, %v400_v9  ;;  %v1254_v42 = vcombine.high %v1245_v6, %v1245_v6  ;;  %778 = vrot.lane.b32.xlu0 %v4311_v14, %s4476_s18  ;;  %v1380_v14 = vrot.slane %v4911_v16, 4 }
  0xbd   : > { %v409_v43 = vsel %vm401_vm0, %v408_v28, %v4950_v52  ;;  %v4974_v2 = vpop.permute.xlu0 %706  ;;  %v4323_v28 = vpack.c.bf16 %v1095_v53, %v1086_v62  ;;  %v887_v62 = vcombine.high %v878_v23, %v878_v23  ;;  %v559_v47 = vsel %vm403_vm1, %v552_v34, %v553_v15 }
  0xbe   : > { %v418_v61 = vmul.f32 %v4969_v8, %v409_v43  ;;  %v711_v48 = vrot.slane %v4974_v2, 4  ;;  %v4330_v49 = vpack.c.bf16 %v1254_v42, %v1245_v6  ;;  %v1076_v42 = vsel %vm947_vm7, %v1075_v60, %v4846_v56 }
  0xbf   : > { %v1386_v43 = vsel %vm403_vm1, %v1379_v35, %v1380_v14  ;;  %v4333_v56 = vpack.c.bf16 %v1404_v3, %v1395_v36  ;;  %v1087_v53 = vmul.f32 %v1076_v42, %v4657_v51  ;;  %v1385_v60 = vsel %vm638_vm8, %v1384_v54, %v4855_v0  ;;  %v348_v36 = vld [vmem:[#allocation2 + $0x20] sm:$0xf] }
  0xc0   : > { %v718_v38 = vsel %vm403_vm1, %v710_v7, %v711_v48  ;;  %v427_v24 = vcombine.high %v418_v61, %v418_v61  ;;  %1296 = vrot.lane.b32.xlu1 %v4330_v49, %s4472_s28  ;;  %622 = vrot.lane.b32.xlu0 %v617_v4, %s4475_s17  ;;  %v1078_v49 = vsel %vm947_vm7, %v1077_v58, %v4913_v19  ;;  %v862_v35 = vrot.slane %v4880_v37, 4 }
  0xc1   : > { %v719_v57 = vsel %vm712_vm2, %v718_v38, %v4974_v2  ;;  %v1387_v38 = vsel %vm638_vm8, %v1386_v43, %v4911_v16  ;;  %v1135_v58 = vrot.slane %v4323_v28, 6  ;;  %v561_v27 = vsel %vm403_vm1, %v553_v15, %v554_v30  ;;  %v5028_v3 = vpop.permute.xlu0 %1067 }
  0xc2   : > { %v728_v6 = vmul.f32 %v719_v57, %v4969_v8  ;;  %v4302_v7 = vpack.c.bf16 %v427_v24, %v418_v61  ;;  %v1088_v24 = vmul.f32 %v1078_v49, %v4688_v1  ;;  %v5018_v57 = vpop.permute.xlu1 %1531  ;;  %v863_v0 = vrot.slane %v4952_v55, 4 }
  0xc3   : > { %v1397_v29 = vmul.f32 %v1387_v38, %v4688_v1  ;;  %v618_v34 = vrot.slane %v4305_v44, 6  ;;  %v1444_v54 = vrot.slane %v4333_v56, 6  ;;  %v868_v28 = vsel %vm403_vm1, %v861_v31, %v862_v35 }
  0xc4   : > { %v737_v4 = vcombine.high %v728_v6, %v728_v6  ;;  %470 = vrot.lane.b32.xlu1 %v4302_v7, %s4477_s19  ;;  %931 = vrot.lane.b32.xlu0 %v926_v63, %s4473_s16  ;;  %v1396_v63 = vmul.f32 %v1385_v60, %v4657_v51  ;;  %v1096_v7 = vcombine.high %v1087_v53, %v1087_v53  ;;  %v1072_v49 = vrot.slane %v5028_v3, 4 }
  0xc5   : > { %v560_v42 = vsel %vm555_vm5, %v559_v47, %v4882_v39  ;;  %v419_v15 = vmul.f32 %v400_v9, %v348_v36  ;;  %v562_v51 = vsel %vm555_vm5, %v561_v27, %v4928_v25  ;;  %v870_v43 = vsel %vm403_vm1, %v862_v35, %v863_v0 }
  0xc6   : > { %v4312_v61 = vpack.c.bf16 %v737_v4, %v728_v6  ;;  %v4315_v6 = vpack.c.bf16 %v887_v62, %v878_v23  ;;  %v1097_v23 = vcombine.high %v1088_v24, %v1088_v24  ;;  %v1405_v59 = vcombine.high %v1396_v63, %v1396_v63  ;;  %v5048_v52 = vpop.permute.xlu1 %1376 }
  0xc7   : > { %v869_v39 = vsel %vm864_vm6, %v868_v28, %v4880_v37  ;;  %v570_v31 = vmul.f32 %v4905_v5, %v560_v42  ;;  %v1406_v4 = vcombine.high %v1397_v29, %v1397_v29  ;;  %v571_v44 = vmul.f32 %v562_v51, %v4969_v8 }
  0xc8   : > { %780 = vrot.lane.b32.xlu1 %v4312_v61, %s4476_s18  ;;  %1140 = vrot.lane.b32.xlu0 %v1135_v58, %s4469_s29  ;;  %v927_v9 = vrot.slane %v4315_v6, 6  ;;  %v4303_v62 = vpack.c.bf16 %v419_v15, %v419_v15  ;;  %v4324_v61 = vpack.c.bf16 %v1096_v7, %v1087_v53  ;;  %v4325_v56 = vpack.c.bf16 %v1097_v23, %v1088_v24  ;;  %v5063_v24 = vpop.permute.xlu0 %1224 }
  0xc9   : > { %v871_v60 = vsel %vm864_vm6, %v870_v43, %v4952_v55  ;;  %v1537_v35 = vrot.slane %v5018_v57, 4  ;;  %v879_v38 = vmul.f32 %v869_v39, %v4905_v5  ;;  %v1381_v37 = vrot.slane %v5048_v52, 4  ;;  %v1980_v55 = vld [vmem:[%s6391_s1] ss:$8 sm:$0xf] }
  0xca   : > { %v1079_v58 = vsel %vm403_vm1, %v1071_v40, %v1072_v49  ;;  %v4334_v53 = vpack.c.bf16 %v1405_v59, %v1396_v63  ;;  %v4335_v47 = vpack.c.bf16 %v1406_v4, %v1397_v29  ;;  %v579_v36 = vcombine.high %v570_v31, %v570_v31  ;;  %v5081_v28 = vpop.permute.xlu1 %1533 }
  0xcb   : > { %v880_v27 = vmul.f32 %v871_v60, %v4969_v8  ;;  %v1136_v5 = vrot.slane %v4324_v61, 6  ;;  %v1137_v6 = vrot.slane %v4325_v56, 6  ;;  %v1543_v19 = vsel %vm403_vm1, %v1536_v45, %v1537_v35 }
  0xcc   : > { %624 = vrot.lane.b32.xlu1 %v618_v34, %s4475_s17  ;;  %1449 = vrot.lane.b32.xlu0 %v1444_v54, %s4470_s11  ;;  %v580_v34 = vcombine.high %v571_v44, %v571_v44  ;;  %v964_v54 = vld [vmem:[#allocation2 + $0xc] sm:$0xff]  ;;  %v1080_v40 = vsel %vm947_vm7, %v1079_v58, %v5028_v3  ;;  %v971_v63 = vcombine.high %v4654_v50, %v4654_v50  ;;  %v1229_v29 = vrot.slane %v5063_v24, 4 }
  0xcd   : > { %v972_v7 = vcombine.high %v964_v54, %v964_v54  ;;  %v1388_v8 = vsel %vm403_vm1, %v1380_v14, %v1381_v37  ;;  %v1445_v21 = vrot.slane %v4334_v53, 6  ;;  %v888_v45 = vcombine.high %v879_v38, %v879_v38 }
  0xce   : > { %v1446_v42 = vrot.slane %v4335_v47, 6  ;;  %v4306_v15 = vpack.c.bf16 %v579_v36, %v570_v31  ;;  %v4319_v23 = vpack.c.bf16 %v971_v63, %v4654_v50  ;;  %v1544_v16 = vsel %vm481_vm4, %v1543_v19, %v5018_v57  ;;  %v658_v19 = vld [vmem:[#allocation2 + $0x20] sm:$0xf]  ;;  %v1019_v63 = vld [vmem:[#allocation2 + $0x24] sm:$0xf] }
  0xcf   : > { %v4320_v51 = vpack.c.bf16 %v972_v7, %v964_v54  ;;  %v1089_v14 = vmul.f32 %v1080_v40, %v4732_v32  ;;  %v4307_v43 = vpack.c.bf16 %v580_v34, %v571_v44  ;;  %v889_v59 = vcombine.high %v880_v27, %v880_v27  ;;  %v501_v40 = vld [vmem:[#allocation2 + $0x20] sm:$0xf] }
  0xd0   : > { %933 = vrot.lane.b32.xlu1 %v927_v9, %s4473_s16  ;;  %472 = vrot.lane.b32.xlu0 %v4303_v62, %s4477_s19  ;;  %v1389_v39 = vsel %vm638_vm8, %v1388_v8, %v5048_v52  ;;  %1011 = vst [vmem:[#allocation3 + $0x40] sm:$0x33] %v4319_v23  ;;  %v1236_v31 = vsel %vm403_vm1, %v1228_v33, %v1229_v29  ;;  %v1538_v50 = vrot.slane %v5081_v28, 4  ;;  %v619_v9 = vrot.slane %v4306_v15, 6 }
  0xd1   : > { %1012 = vst [vmem:[#allocation3 + $0x48] sm:$0x33] %v4320_v51  ;;  %v1554_v57 = vmul.f32 %v1544_v16, %v4688_v1  ;;  %v4316_v4 = vpack.c.bf16 %v888_v45, %v879_v38  ;;  %v1398_v44 = vmul.f32 %v1389_v39, %v4732_v32  ;;  %v620_v62 = vrot.slane %v4307_v43, 6  ;;  %v810_v16 = vld [vmem:[#allocation2 + $0x20] sm:$0xf] }
  0xd2   : > { %v4317_v61 = vpack.c.bf16 %v889_v59, %v880_v27  ;;  %v1098_v56 = vcombine.high %v1089_v14, %v1089_v14  ;;  %v1237_v26 = vsel %vm790_vm3, %v1236_v31, %v5063_v24  ;;  %v1545_v33 = vsel %vm403_vm1, %v1537_v35, %v1538_v50  ;;  %v1176_v31 = vld [vmem:[#allocation2 + $0x24] sm:$0xf]  ;;  %v4194_v24 = vld [vmem:[%s6391_s1 + $0x1] ss:$8 sm:$0xf0] }
  0xd3   : > { %v928_v60 = vrot.slane %v4316_v4, 6  ;;  %v1563_v58 = vcombine.high %v1554_v57, %v1554_v57  ;;  %v1246_v38 = vmul.f32 %v1237_v26, %v4732_v32  ;;  %v1407_v36 = vcombine.high %v1398_v44, %v1398_v44 }
  0xd4   : > { %1142 = vrot.lane.b32.xlu1 %v1136_v5, %s4469_s29  ;;  %1144 = vrot.lane.b32.xlu0 %v1137_v6, %s4469_s29  ;;  %v929_v53 = vrot.slane %v4317_v61, 6  ;;  %v4326_v47 = vpack.c.bf16 %v1098_v56, %v1089_v14  ;;  %v1546_v27 = vsel %vm481_vm4, %v1545_v33, %v5081_v28  ;;  %v973_v7 = vcombine.high %v4688_v1, %v4688_v1  ;;  %v1328_v14 = vld [vmem:[#allocation2 + $0x24] sm:$0xf] }
  0xd5   : > { %v4340_v5 = vpack.c.bf16 %v1563_v58, %v1554_v57  ;;  %v1555_v35 = vmul.f32 %v1546_v27, %v4732_v32  ;;  %v1255_v34 = vcombine.high %v1246_v38, %v1246_v38  ;;  %v4336_v54 = vpack.c.bf16 %v1407_v36, %v1398_v44  ;;  %v1485_v44 = vld [vmem:[#allocation2 + $0x24] sm:$0xf] }
  0xd6   : > { %v1138_v6 = vrot.slane %v4326_v47, 6  ;;  %v729_v8 = vmul.f32 %v711_v48, %v658_v19  ;;  %v4321_v45 = vpack.c.bf16 %v973_v7, %v4688_v1  ;;  %v1090_v51 = vmul.f32 %v1072_v49, %v1019_v63 }
  0xd7   : > { %v1447_v15 = vrot.slane %v4336_v54, 6  ;;  %v1564_v23 = vcombine.high %v1555_v35, %v1555_v35  ;;  %v881_v1 = vmul.f32 %v863_v0, %v810_v16  ;;  %v974_v57 = vcombine.high %v4732_v32, %v4732_v32  ;;  %v1981_v0 = vld [vmem:[%s6391_s1] ss:$8 sm:$0xf0] }
  0xd8   : > { %1451 = vrot.lane.b32.xlu1 %v1445_v21, %s4470_s11  ;;  %1453 = vrot.lane.b32.xlu0 %v1446_v42, %s4470_s11  ;;  %v572_v21 = vmul.f32 %v554_v30, %v501_v40  ;;  %v4331_v42 = vpack.c.bf16 %v1255_v34, %v1246_v38  ;;  %1013 = vst [vmem:[#allocation3 + $0x50] sm:$0x33] %v4321_v45  ;;  %v4201_v38 = vld [vmem:[%s6391_s1 + $0x2] ss:$8 sm:$0xf0] }
  0xd9   : > { %v4313_v2 = vpack.c.bf16 %v729_v8, %v729_v8  ;;  %v4341_v43 = vpack.c.bf16 %v1564_v23, %v1555_v35  ;;  %v4327_v25 = vpack.c.bf16 %v1090_v51, %v1090_v51  ;;  %v1399_v30 = vmul.f32 %v1381_v37, %v1328_v14  ;;  %v4207_v35 = vld [vmem:[%s6391_s1 + $0x3] ss:$8 sm:$0xf] }
  0xda   : > { %v4308_v48 = vpack.c.bf16 %v572_v21, %v572_v21  ;;  %v4318_v59 = vpack.c.bf16 %v881_v1, %v881_v1  ;;  %v4322_v52 = vpack.c.bf16 %v974_v57, %v4732_v32  ;;  %v1247_v4 = vmul.f32 %v1229_v29, %v1176_v31  ;;  %v4193_v32 = vld [vmem:[%s6391_s1 + $0x1] ss:$8 sm:$0xf] }
  0xdb   : > { %v1139_v49 = vrot.slane %v4327_v25, 6  ;;  %v4337_v39 = vpack.c.bf16 %v1399_v30, %v1399_v30  ;;  %v5149_v61 = vor.u32 %v1981_v0, %v1980_v55  ;;  %v1556_v56 = vmul.f32 %v1538_v50, %v1485_v44  ;;  %v4200_v50 = vld [vmem:[%s6391_s1 + $0x2] ss:$8 sm:$0xf] }
  0xdc   : > { %626 = vrot.lane.b32.xlu1 %v619_v9, %s4475_s17  ;;  %628 = vrot.lane.b32.xlu0 %v620_v62, %s4475_s17  ;;  %v621_v3 = vrot.slane %v4308_v48, 6  ;;  %v930_v37 = vrot.slane %v4318_v59, 6  ;;  %1014 = vst [vmem:[#allocation3 + $0x58] sm:$0x33] %v4322_v52  ;;  %v1654_v62 = vld [vmem:[%s6394_s4] sm:$0xff]  ;;  %v4332_v29 = vpack.c.bf16 %v1247_v4, %v1247_v4  ;;  %v5162_v33 = vor.u32 %v4194_v24, %v4193_v32 }
  0xdd   : > { %v1448_v9 = vrot.slane %v4337_v39, 6  ;;  %v1995_v26 = vrot.slane %v5149_v61, %v4572_v12  ;;  %v1987_v28 = vrot.slane %v5149_v61, %v4566_v10  ;;  %v5179_v47 = vor.u32 %v4201_v38, %v4200_v50  ;;  %v4225_v50 = vld [vmem:[%s6391_s1 + $0x6] ss:$8 sm:$0xf] }
  0xde   : > { %v2136_v58 = vrot.slane %v5162_v33, %v4566_v10  ;;  %v1991_v36 = vrot.slane %v5149_v61, %v4569_v11  ;;  %v2140_v19 = vrot.slane %v5162_v33, %v4569_v11  ;;  %v2148_v7 = vrot.slane %v5162_v33, %v4575_v13  ;;  %v4226_v38 = vld [vmem:[%s6391_s1 + $0x6] ss:$8 sm:$0xf0] }
  0xdf   : > { %v2285_v27 = vrot.slane %v5179_v47, %v4566_v10  ;;  %v2293_v34 = vrot.slane %v5179_v47, %v4572_v12  ;;  %v2289_v51 = vrot.slane %v5179_v47, %v4569_v11  ;;  %v2003_v25 = vrot.slane %v5149_v61, %v4706_v18 }
  0xe0   : > { %935 = vrot.lane.b32.xlu1 %v928_v60, %s4473_s16  ;;  %937 = vrot.lane.b32.xlu0 %v929_v53, %s4473_s16  ;;  %v4342_v60 = vpack.c.bf16 %v1556_v56, %v1556_v56  ;;  %v2144_v53 = vrot.slane %v5162_v33, %v4572_v12  ;;  %v2297_v1 = vrot.slane %v5179_v47, %v4575_v13 }
  0xe1   : > { %v2152_v59 = vrot.slane %v5162_v33, %v4706_v18  ;;  %v2007_v32 = vrot.slane %v5149_v61, %v4713_v22 }
  0xe4   : > { %1605 = vrot.lane.b32.xlu1 %v4340_v5, %s4471_s23  ;;  %1146 = vrot.lane.b32.xlu0 %v1138_v6, %s4469_s29  ;;  %v1999_v5 = vrot.slane %v5149_v61, %v4575_v13  ;;  %v4208_v6 = vld [vmem:[%s6391_s1 + $0x3] ss:$8 sm:$0xf0] }
  0xe5   : > { %v5199_v54 = vor.u32 %v4208_v6, %v4207_v35 }
  0xe7   : > { %v2434_v63 = vrot.slane %v5199_v54, %v4566_v10  ;;  %v2442_v23 = vrot.slane %v5199_v54, %v4572_v12  ;;  %v2438_v31 = vrot.slane %v5199_v54, %v4569_v11  ;;  %v2446_v0 = vrot.slane %v5199_v54, %v4575_v13 }
  0xe8   : > { %1298 = vrot.lane.b32.xlu1 %v4331_v42, %s4472_s28  ;;  %1455 = vrot.lane.b32.xlu0 %v1447_v15, %s4470_s11 }
  0xec   : > { %1607 = vrot.lane.b32.xlu1 %v4341_v43, %s4471_s23  ;;  %782 = vrot.lane.b32.xlu0 %v4313_v2, %s4476_s18 }
  0xf0   : > { %630 = vrot.lane.b32.xlu1 %v621_v3, %s4475_s17  ;;  %1148 = vrot.lane.b32.xlu0 %v1139_v49, %s4469_s29  ;;  %v4218_v3 = vld [vmem:[%s6391_s1 + $0x5] ss:$8 sm:$0xf] }
  0xf1   : > { %v4219_v49 = vld [vmem:[%s6391_s1 + $0x5] ss:$8 sm:$0xf0] }
  0xf2   : > { %v5245_v39 = vor.u32 %v4219_v49, %v4218_v3 }
  0xf4   : > { %939 = vrot.lane.b32.xlu1 %v930_v37, %s4473_s16  ;;  %1457 = vrot.lane.b32.xlu0 %v1448_v9, %s4470_s11  ;;  %v2627_v55 = vrot.slane %v5245_v39, %v4566_v10 }
  0xf8   : > { %1300 = vrot.lane.b32.xlu1 %v4332_v29, %s4472_s28  ;;  %1657 = vperm.xlu0 %4442, %v1654_v62   ;;  %v2635_v62 = vrot.slane %v5245_v39, %v4572_v12 }
  0xfc   : > { %1609 = vrot.lane.b32.xlu1 %v4342_v60, %s4471_s23  ;;  %2020 = vrot.lane.b32.xlu0 %v1995_v26, %s4471_s23  ;;  %v2301_v60 = vrot.slane %v5179_v47, %v4706_v18 }
 0x100   : > { %2165 = vrot.lane.b32.xlu0 %v2136_v58, %s4470_s11  ;;  %2016 = vrot.lane.b32.xlu1 %v1987_v28, %s4471_s23  ;;  %v2156_v58 = vrot.slane %v5162_v33, %v4713_v22 }
 0x104   : > { %2169 = vrot.lane.b32.xlu0 %v2144_v53, %s4470_s11  ;;  %2018 = vrot.lane.b32.xlu1 %v1991_v36, %s4471_s23  ;;  %v2450_v36 = vrot.slane %v5199_v54, %v4706_v18 }
 0x108   : > { %2314 = vrot.lane.b32.xlu0 %v2285_v27, %s4472_s28  ;;  %2022 = vrot.lane.b32.xlu1 %v1999_v5, %s4471_s23  ;;  %v5286_v27 = vor.u32 %v4226_v38, %v4225_v50  ;;  %v2631_v5 = vrot.slane %v5245_v39, %v4569_v11 }
 0x10c   : > { %2318 = vrot.lane.b32.xlu0 %v2293_v34, %s4472_s28  ;;  %2167 = vrot.lane.b32.xlu1 %v2140_v19, %s4470_s11  ;;  %v2776_v34 = vrot.slane %v5286_v27, %v4566_v10  ;;  %v2639_v19 = vrot.slane %v5245_v39, %v4575_v13 }
 0x10d   : > { %v465_v40 = vpop.permute.xlu0 %464 }
 0x10e   : > { %v474_v8 = vrot.slane %v465_v40, 4  ;;  %v5210_v21 = vpop.permute.xlu1 %466 }
 0x10f   : > { %v475_v45 = vrot.slane %v5210_v21, 4 }
 0x110   : > { %2463 = vrot.lane.b32.xlu0 %v2434_v63, %s4469_s29  ;;  %2171 = vrot.lane.b32.xlu1 %v2148_v7, %s4470_s11  ;;  %v4232_v63 = vld [vmem:[%s6391_s1 + $0x7] ss:$8 sm:$0xf] }
 0x111   : > { %v480_v42 = vsel %vm403_vm1, %v474_v8, %v475_v45  ;;  %v775_v15 = vpop.permute.xlu0 %774  ;;  %v4233_v7 = vld [vmem:[%s6391_s1 + $0x7] ss:$8 sm:$0xf0] }
 0x112   : > { %v482_v16 = vsel %vm481_vm4, %v465_v40, %v480_v42  ;;  %v784_v14 = vrot.slane %v775_v15, 4  ;;  %v5223_v2 = vpop.permute.xlu1 %776 }
 0x113   : > { %493 = vst [vmem:[#allocation3] sm:$0x33] %v482_v16  ;;  %v785_v48 = vrot.slane %v5223_v2, 4 }
 0x114   : > { %2467 = vrot.lane.b32.xlu0 %v2442_v23, %s4469_s29  ;;  %2316 = vrot.lane.b32.xlu1 %v2289_v51, %s4472_s28  ;;  %v2784_v23 = vrot.slane %v5286_v27, %v4572_v12  ;;  %v2305_v51 = vrot.slane %v5179_v47, %v4713_v22 }
 0x115   : > { %v789_v43 = vsel %vm403_vm1, %v784_v14, %v785_v48 }
 0x116   : > { %v791_v30 = vsel %vm790_vm3, %v775_v15, %v789_v43 }
 0x117   : > { %802 = vst [vmem:[#allocation3 + $0x20] sm:$0x33] %v791_v30  ;;  %v2454_v30 = vrot.slane %v5199_v54, %v4713_v22 }
 0x118   : > { %2024 = vrot.lane.b32.xlu0 %v2003_v25, %s4471_s23  ;;  %2320 = vrot.lane.b32.xlu1 %v2297_v1, %s4472_s28 }
 0x11c   : > { %2173 = vrot.lane.b32.xlu0 %v2152_v59, %s4470_s11  ;;  %2465 = vrot.lane.b32.xlu1 %v2438_v31, %s4469_s29 }
 0x11d   : > { %v1293_v57 = vpop.permute.xlu0 %1292 }
 0x11e   : > { %v1302_v52 = vrot.slane %v1293_v57, 4  ;;  %v1295_v37 = vpop.permute.xlu1 %1294 }
 0x11f   : > { %v1303_v9 = vrot.slane %v1295_v37, 4 }
 0x120   : > { %2656 = vrot.lane.b32.xlu0 %v2627_v55, %s4473_s16  ;;  %2469 = vrot.lane.b32.xlu1 %v2446_v0, %s4469_s29  ;;  %v4239_v0 = vld [vmem:[%s6391_s1 + $0x40] ss:$8 sm:$0xf] }
 0x121   : > { %v1307_v4 = vsel %vm403_vm1, %v1302_v52, %v1303_v9  ;;  %v1602_v44 = vpop.permute.xlu0 %1601  ;;  %v4240_v52 = vld [vmem:[%s6391_s1 + $0x40] ss:$8 sm:$0xf0] }
 0x122   : > { %v1309_v24 = vsel %vm712_vm2, %v1293_v57, %v1307_v4  ;;  %v1611_v29 = vrot.slane %v1602_v44, 4  ;;  %v5264_v56 = vpop.permute.xlu1 %1603  ;;  %v2780_v57 = vrot.slane %v5286_v27, %v4569_v11 }
 0x123   : > { %1320 = vst [vmem:[#allocation3 + $0x60] sm:$0x33] %v1309_v24  ;;  %v1612_v26 = vrot.slane %v5264_v56, 4  ;;  %v2788_v24 = vrot.slane %v5286_v27, %v4575_v13 }
 0x124   : > { %2660 = vrot.lane.b32.xlu0 %v2635_v62, %s4473_s16  ;;  %2026 = vrot.lane.b32.xlu1 %v2007_v32, %s4471_s23  ;;  %v2643_v62 = vrot.slane %v5245_v39, %v4706_v18  ;;  %v5354_v32 = vor.u32 %v4240_v52, %v4239_v0  ;;  %v2160_v52 = vrot.slane %v5162_v33, %v4746_v41 }
 0x125   : > { %v1616_v28 = vsel %vm403_vm1, %v1611_v29, %v1612_v26 }
 0x126   : > { %v1618_v53 = vsel %vm401_vm0, %v1602_v44, %v1616_v28 }
 0x127   : > { %1629 = vst [vmem:[#allocation3 + $0x80] sm:$0x33] %v1618_v53  ;;  %v3074_v53 = vrot.slane %v5354_v32, %v4566_v10 }
 0x128   : > { %2322 = vrot.lane.b32.xlu0 %v2301_v60, %s4472_s28  ;;  %2175 = vrot.lane.b32.xlu1 %v2156_v58, %s4470_s11 }
 0x12a   : > { %v469_v35 = vpop.permute.xlu0 %468 }
 0x12b   : > { %v476_v6 = vrot.slane %v469_v35, 4 }
 0x12c   : > { %2471 = vrot.lane.b32.xlu0 %v2450_v36, %s4469_s29  ;;  %2658 = vrot.lane.b32.xlu1 %v2631_v5, %s4473_s16 }
 0x12d   : > { %v483_v40 = vsel %vm403_vm1, %v475_v45, %v476_v6  ;;  %v5311_v45 = vor.u32 %v4233_v7, %v4232_v63 }
 0x12e   : > { %v484_v8 = vsel %vm481_vm4, %v5210_v21, %v483_v40  ;;  %v779_v42 = vpop.permute.xlu0 %778 }
 0x12f   : > { %494 = vst [vmem:[#allocation3 + $0x8] sm:$0x33] %v484_v8  ;;  %v786_v15 = vrot.slane %v779_v42, 4  ;;  %v2925_v1 = vrot.slane %v5311_v45, %v4566_v10  ;;  %v2933_v31 = vrot.slane %v5311_v45, %v4572_v12  ;;  %v2929_v36 = vrot.slane %v5311_v45, %v4569_v11 }
 0x130   : > { %2805 = vrot.lane.b32.xlu0 %v2776_v34, %s4476_s18  ;;  %2662 = vrot.lane.b32.xlu1 %v2639_v19, %s4473_s16  ;;  %v3082_v10 = vrot.slane %v5354_v32, %v4572_v12  ;;  %v2937_v7 = vrot.slane %v5311_v45, %v4575_v13 }
 0x131   : > { %v792_v16 = vsel %vm403_vm1, %v785_v48, %v786_v15 }
 0x132   : > { %v793_v21 = vsel %vm790_vm3, %v5223_v2, %v792_v16  ;;  %v5321_v14 = vpop.permute.xlu1 %1296  ;;  %v623_v43 = vpop.permute.xlu0 %622 }
 0x133   : > { %803 = vst [vmem:[#allocation3 + $0x28] sm:$0x33] %v793_v21  ;;  %v1304_v25 = vrot.slane %v5321_v14, 4  ;;  %v632_v50 = vrot.slane %v623_v43, 4 }
 0x134   : > { %2809 = vrot.lane.b32.xlu0 %v2784_v23, %s4476_s18  ;;  %2324 = vrot.lane.b32.xlu1 %v2305_v51, %s4472_s28 }
 0x135   : > { %v1310_v2 = vsel %vm403_vm1, %v1303_v9, %v1304_v25 }
 0x136   : > { %v1311_v48 = vsel %vm712_vm2, %v1295_v37, %v1310_v2  ;;  %v471_v3 = vpop.permute.xlu1 %470  ;;  %v932_v49 = vpop.permute.xlu0 %931 }
 0x137   : > { %1321 = vst [vmem:[#allocation3 + $0x68] sm:$0x33] %v1311_v48  ;;  %v477_v59 = vrot.slane %v471_v3, 4  ;;  %v941_v19 = vrot.slane %v932_v49, 4 }
 0x138   : > { %2954 = vrot.lane.b32.xlu0 %v2925_v1, %s4475_s17  ;;  %2473 = vrot.lane.b32.xlu1 %v2454_v30, %s4469_s29  ;;  %v2011_v1 = vrot.slane %v5149_v61, %v4746_v41  ;;  %v2647_v30 = vrot.slane %v5245_v39, %v4713_v22 }
 0x139   : > { %v485_v55 = vsel %vm403_vm1, %v476_v6, %v477_v59 }
 0x13a   : > { %v486_v37 = vsel %vm481_vm4, %v469_v35, %v485_v55  ;;  %v5348_v9 = vpop.permute.xlu1 %780  ;;  %v1141_v4 = vpop.permute.xlu0 %1140 }
 0x13b   : > { %495 = vst [vmem:[#allocation3 + $0x10] sm:$0x33] %v486_v37  ;;  %v787_v44 = vrot.slane %v5348_v9, 4  ;;  %v1150_v21 = vrot.slane %v1141_v4, 4  ;;  %v3078_v37 = vrot.slane %v5354_v32, %v4569_v11 }
 0x13c   : > { %2958 = vrot.lane.b32.xlu0 %v2933_v31, %s4475_s17  ;;  %2807 = vrot.lane.b32.xlu1 %v2780_v57, %s4476_s18 }
 0x13d   : > { %v794_v29 = vsel %vm403_vm1, %v786_v15, %v787_v44 }
 0x13e   : > { %v795_v60 = vsel %vm790_vm3, %v779_v42, %v794_v29  ;;  %v5363_v58 = vpop.permute.xlu1 %624  ;;  %v1450_v28 = vpop.permute.xlu0 %1449 }
 0x13f   : > { %804 = vst [vmem:[#allocation3 + $0x30] sm:$0x33] %v795_v60  ;;  %v633_v38 = vrot.slane %v5363_v58, 4  ;;  %v1459_v57 = vrot.slane %v1450_v28, 4 }
 0x140   : > { %2664 = vrot.lane.b32.xlu0 %v2643_v62, %s4473_s16  ;;  %2811 = vrot.lane.b32.xlu1 %v2788_v24, %s4476_s18 }
 0x141   : > { %v637_v5 = vsel %vm403_vm1, %v632_v50, %v633_v38 }
 0x142   : > { %v639_v35 = vsel %vm638_vm8, %v623_v43, %v637_v5  ;;  %v5376_v6 = vpop.permute.xlu1 %933  ;;  %v473_v34 = vpop.permute.xlu0 %472 }
 0x143   : > { %650 = vst [vmem:[#allocation3] sm:$0xcc] %v639_v35  ;;  %v942_v40 = vrot.slane %v5376_v6, 4  ;;  %v478_v63 = vrot.slane %v473_v34, 4 }
 0x144   : > { %3103 = vrot.lane.b32.xlu0 %v3074_v53, %s4477_s19  ;;  %2956 = vrot.lane.b32.xlu1 %v2929_v36, %s4475_s17 }
 0x145   : > { %v946_v8 = vsel %vm403_vm1, %v941_v19, %v942_v40  ;;  %v487_v42 = vsel %vm403_vm1, %v477_v59, %v478_v63  ;;  %v2792_v19 = vrot.slane %v5286_v27, %v4706_v18 }
 0x146   : > { %v948_v15 = vsel %vm947_vm7, %v932_v49, %v946_v8  ;;  %v488_v23 = vsel %vm481_vm4, %v471_v3, %v487_v42  ;;  %v1143_v51 = vpop.permute.xlu1 %1142  ;;  %v5391_v16 = vpop.permute.xlu0 %1144 }
 0x147   : > { %959 = vst [vmem:[#allocation3 + $0x20] sm:$0xcc] %v948_v15  ;;  %496 = vst [vmem:[#allocation3 + $0x18] sm:$0x33] %v488_v23  ;;  %v1151_v12 = vrot.slane %v1143_v51, 4  ;;  %v1152_v43 = vrot.slane %v5391_v16, 4 }
 0x148   : > { %3107 = vrot.lane.b32.xlu0 %v3082_v10, %s4477_s19  ;;  %2960 = vrot.lane.b32.xlu1 %v2937_v7, %s4475_s17 }
 0x149   : > { %v1155_v2 = vsel %vm403_vm1, %v1150_v21, %v1151_v12  ;;  %v1158_v48 = vsel %vm403_vm1, %v1151_v12, %v1152_v43 }
 0x14a   : > { %v1157_v3 = vsel %vm864_vm6, %v1141_v4, %v1155_v2  ;;  %v1159_v49 = vsel %vm864_vm6, %v1143_v51, %v1158_v48  ;;  %v1452_v59 = vpop.permute.xlu1 %1451  ;;  %v5406_v31 = vpop.permute.xlu0 %1453  ;;  %v1634_v53 = vld [vmem:[#allocation3] sm:$0xff] }
 0x14b   : > { %1168 = vst [vmem:[#allocation3 + $0x40] sm:$0xcc] %v1157_v3  ;;  %1169 = vst [vmem:[#allocation3 + $0x48] sm:$0xcc] %v1159_v49  ;;  %v1460_v55 = vrot.slane %v1452_v59, 4  ;;  %v1461_v0 = vrot.slane %v5406_v31, 4 }
 0x14c   : > { %2028 = vrot.lane.b32.xlu0 %v2011_v1, %s4471_s23  ;;  %2666 = vrot.lane.b32.xlu1 %v2647_v30, %s4473_s16 }
 0x14d   : > { %v1464_v4 = vsel %vm403_vm1, %v1459_v57, %v1460_v55  ;;  %v1467_v62 = vsel %vm403_vm1, %v1460_v55, %v1461_v0  ;;  %v2164_v55 = vrot.slane %v5162_v33, %v4751_v46 }
 0x14e   : > { %v1466_v24 = vsel %vm555_vm5, %v1450_v28, %v1464_v4  ;;  %v1468_v29 = vsel %vm555_vm5, %v1452_v59, %v1467_v62  ;;  %v627_v60 = vpop.permute.xlu1 %626  ;;  %v5421_v50 = vpop.permute.xlu0 %628  ;;  %v1638_v36 = vld [vmem:[#allocation3 + $0x20] sm:$0xff]  ;;  %v3086_v28 = vrot.slane %v5354_v32, %v4575_v13 }
 0x14f   : > { %1477 = vst [vmem:[#allocation3 + $0x60] sm:$0xcc] %v1466_v24  ;;  %1478 = vst [vmem:[#allocation3 + $0x68] sm:$0xcc] %v1468_v29  ;;  %v634_v5 = vrot.slane %v627_v60, 4  ;;  %v635_v11 = vrot.slane %v5421_v50, 4  ;;  %v4157_v35 = vcombine.high %v1634_v53, %v1638_v36  ;;  %v4156_v34 = vcombine.low %v1634_v53, %v1638_v36 }
 0x150   : > { %2177 = vrot.lane.b32.xlu0 %v2160_v52, %s4470_s11  ;;  %3105 = vrot.lane.b32.xlu1 %v3078_v37, %s4477_s19 }
 0x151   : > { %v640_v63 = vsel %vm403_vm1, %v633_v38, %v634_v5  ;;  %v642_v10 = vsel %vm403_vm1, %v634_v5, %v635_v11  ;;  %1789 = vmatprep.subr.bf16.mxu1 %v4157_v35  ;;  %v2941_v38 = vrot.slane %v5311_v45, %v4706_v18  ;;  %v5508_v35 = vld [vmem:[%s6393_s3] sm:$0xf] }
 0x152   : > { %v641_v7 = vsel %vm638_vm8, %v5363_v58, %v640_v63  ;;  %v643_v8 = vsel %vm638_vm8, %v627_v60, %v642_v10  ;;  %v936_v42 = vpop.permute.xlu1 %935  ;;  %1790 = vmatpush1.bf16.msra.mxu1 %v4156_v34  ;;  %v5439_v15 = vpop.permute.xlu0 %937  ;;  %v2015_v58 = vrot.slane %v5149_v61, %v4751_v46  ;;  %v1642_v48 = vld [vmem:[#allocation3 + $0x40] sm:$0xff] }
 0x153   : > { %651 = vst [vmem:[#allocation3 + $0x8] sm:$0xcc] %v641_v7  ;;  %652 = vst [vmem:[#allocation3 + $0x10] sm:$0xcc] %v643_v8  ;;  %v943_v13 = vrot.slane %v936_v42, 4  ;;  %v944_v23 = vrot.slane %v5439_v15, 4  ;;  %v3090_v8 = vrot.slane %v5354_v32, %v4706_v18 }
 0x154   : > { %2813 = vrot.lane.b32.xlu0 %v2792_v19, %s4476_s18  ;;  %3109 = vrot.lane.b32.xlu1 %v3086_v28, %s4477_s19  ;;  %v1650_v61 = vld [vmem:[#allocation3 + $0x80] sm:$0x33] }
 0x155   : > { %v949_v51 = vsel %vm403_vm1, %v942_v40, %v943_v13  ;;  %v951_v21 = vsel %vm403_vm1, %v943_v13, %v944_v23  ;;  %v4173_v4 = vcombine.high %v1650_v61, %v1650_v61  ;;  %v4172_v62 = vcombine.low %v1650_v61, %v1650_v61 }
 0x156   : > { %v950_v12 = vsel %vm947_vm7, %v5376_v6, %v949_v51  ;;  %v952_v1 = vsel %vm947_vm7, %v936_v42, %v951_v21  ;;  %v5457_v30 = vpop.permute.xlu1 %1605  ;;  %v5459_v2 = vpop.permute.xlu0 %1146  ;;  %v1646_v3 = vld [vmem:[#allocation3 + $0x60] sm:$0xff]  ;;  %v2309_v6 = vrot.slane %v5179_v47, %v4746_v41  ;;  %v1647_v34 = vld [vmem:[#allocation3 + $0x68] sm:$0xff] }
 0x157   : > { %960 = vst [vmem:[#allocation3 + $0x28] sm:$0xcc] %v950_v12  ;;  %961 = vst [vmem:[#allocation3 + $0x30] sm:$0xcc] %v952_v1  ;;  %v1613_v40 = vrot.slane %v5457_v30, 4  ;;  %v1153_v49 = vrot.slane %v5459_v2, 4  ;;  %v4165_v59 = vcombine.high %v1642_v48, %v1646_v3  ;;  %v4164_v57 = vcombine.low %v1642_v48, %v1646_v3 }
 0x158   : > { %2962 = vrot.lane.b32.xlu0 %v2941_v38, %s4475_s17  ;;  %2030 = vrot.lane.b32.xlu1 %v2015_v58, %s4471_s23  ;;  %v1766_v5 = vsel %vm1764_vm9, %v4172_v62, 0  ;;  %v1643_v21 = vld [vmem:[#allocation3 + $0x48] sm:$0xff]  ;;  %v2945_v12 = vrot.slane %v5311_v45, %v4713_v22 }
 0x159   : > { %v1619_v52 = vsel %vm403_vm1, %v1612_v26, %v1613_v40  ;;  %v1160_v37 = vsel %vm403_vm1, %v1152_v43, %v1153_v49  ;;  %1791 = vmatprep.subr.bf16.mxu1 %v4165_v59  ;;  %v4167_v48 = vcombine.high %v1643_v21, %v1647_v34 }
 0x15a   : > { %v1620_v24 = vsel %vm401_vm0, %v5264_v56, %v1619_v52  ;;  %v1161_v29 = vsel %vm864_vm6, %v5391_v16, %v1160_v37  ;;  %v5481_v33 = vpop.permute.xlu1 %1298  ;;  %1792 = vmatpush1.bf16.msra.mxu1 %v4164_v57  ;;  %v5483_v60 = vpop.permute.xlu0 %1455  ;;  %v2458_v56 = vrot.slane %v5199_v54, %v4746_v41  ;;  %v2796_v16 = vrot.slane %v5286_v27, %v4713_v22  ;;  %v1636_v58 = vld [vmem:[#allocation3 + $0x10] sm:$0xff] }
 0x15b   : > { %1630 = vst [vmem:[#allocation3 + $0x88] sm:$0x33] %v1620_v24  ;;  %1170 = vst [vmem:[#allocation3 + $0x50] sm:$0xcc] %v1161_v29  ;;  %v1305_v26 = vrot.slane %v5481_v33, 4  ;;  %v1462_v43 = vrot.slane %v5483_v60, 4  ;;  %4180 = vmatprep.subr.msk.bf16.mxu1 %vm1764_vm9, %v4173_v4 }
 0x15c   : > { %2326 = vrot.lane.b32.xlu0 %v2309_v6, %s4472_s28  ;;  %2179 = vrot.lane.b32.xlu1 %v2164_v55, %s4470_s11  ;;  %v4166_v55 = vcombine.low %v1643_v21, %v1647_v34 }
 0x15d   : > { %v1312_v53 = vsel %vm403_vm1, %v1304_v25, %v1305_v26  ;;  %v1469_v36 = vsel %vm403_vm1, %v1461_v0, %v1462_v43  ;;  %v1635_v0 = vld [vmem:[#allocation3 + $0x8] sm:$0xff] }
 0x15e   : > { %v1313_v19 = vsel %vm712_vm2, %v5321_v14, %v1312_v53  ;;  %v1470_v25 = vsel %vm555_vm5, %v5406_v31, %v1469_v36  ;;  %v5514_v28 = vpop.permute.xlu1 %1607  ;;  %1794 = vmatpush1.bf16.msra.mxu1 %v1766_v5  ;;  %v783_v63 = vpop.permute.xlu0 %782  ;;  %v1639_v10 = vld [vmem:[#allocation3 + $0x28] sm:$0xff]  ;;  %v1640_v7 = vld [vmem:[#allocation3 + $0x30] sm:$0xff] }
 0x15f   : > { %1322 = vst [vmem:[#allocation3 + $0x70] sm:$0x33] %v1313_v19  ;;  %1479 = vst [vmem:[#allocation3 + $0x70] sm:$0xcc] %v1470_v25  ;;  %v1614_v42 = vrot.slane %v5514_v28, 4  ;;  %v788_v13 = vrot.slane %v783_v63, 4  ;;  %v4158_v14 = vcombine.low %v1635_v0, %v1639_v10  ;;  %v4159_v38 = vcombine.high %v1635_v0, %v1639_v10 }
 0x160   : > { %v4161_v31 = vcombine.high %v1636_v58, %v1640_v7  ;;  %v4160_v51 = vcombine.low %v1636_v58, %v1640_v7  ;;  %2475 = vrot.lane.b32.xlu0 %v2458_v56, %s4469_s29  ;;  %2815 = vrot.lane.b32.xlu1 %v2796_v16, %s4476_s18  ;;  %v3098_v58 = vrot.slane %v5354_v32, %v4746_v41 }
 0x161   : > { %v1621_v18 = vsel %vm403_vm1, %v1613_v40, %v1614_v42  ;;  %v796_v1 = vsel %vm403_vm1, %v787_v44, %v788_v13  ;;  %4181 = vmatmul.mubr.msk.bf16.vlgmr.msra.gmra.mrb[0].mxu1 %vm1760_vm10, %v5508_v35  ;;  %1830 = vmatprep.subr.bf16.mxu1 %v4159_v38 }
 0x162   : > { %v1622_v3 = vsel %vm401_vm0, %v5457_v30, %v1621_v18  ;;  %v797_v61 = vsel %vm790_vm3, %v5348_v9, %v796_v1  ;;  %1871 = vmatprep.subr.bf16.mxu0 %v4161_v31  ;;  %v631_v59 = vpop.permute.xlu1 %630  ;;  %1831 = vmatpush1.bf16.msra.mxu1 %v4158_v14  ;;  %v1149_v57 = vpop.permute.xlu0 %1148  ;;  %v1651_v40 = vld [vmem:[#allocation3 + $0x88] sm:$0x33]  ;;  %v2651_v30 = vrot.slane %v5245_v39, %v4746_v41  ;;  %v1644_v16 = vld [vmem:[#allocation3 + $0x50] sm:$0xff] }
 0x163   : > { %1631 = vst [vmem:[#allocation3 + $0x90] sm:$0x33] %v1622_v3  ;;  %805 = vst [vmem:[#allocation3 + $0x38] sm:$0x33] %v797_v61  ;;  %v636_v6 = vrot.slane %v631_v59, 4  ;;  %1872 = vmatpush1.bf16.msra.mxu0 %v4160_v51  ;;  %v1154_v44 = vrot.slane %v1149_v57, 4  ;;  %1832 = vmatprep.subr.bf16.mxu1 %v4167_v48  ;;  %v2313_v9 = vrot.slane %v5179_v47, %v4751_v46 }
 0x164   : > { %1862 = vmatprep.mubr.bf16.mxu1 %v6401_v20  ;;  %3111 = vrot.lane.b32.xlu0 %v3090_v8, %s4477_s19  ;;  %v4175_v4 = vcombine.high %v1651_v40, %v1651_v40  ;;  %v4174_v62 = vcombine.low %v1651_v40, %v1651_v40  ;;  %v2462_v8 = vrot.slane %v5199_v54, %v4751_v46 }
 0x165   : > { %v644_v52 = vsel %vm403_vm1, %v635_v11, %v636_v6  ;;  %v1162_v37 = vsel %vm403_vm1, %v1153_v49, %v1154_v44  ;;  %2964 = vrot.lane.b32.xlu1 %v2945_v12, %s4475_s17  ;;  %v2804_v59 = vrot.slane %v5286_v27, %v4751_v46 }
 0x166   : > { %v645_v24 = vsel %vm638_vm8, %v5421_v50, %v644_v52  ;;  %v1163_v29 = vsel %vm864_vm6, %v5459_v2, %v1162_v37  ;;  %v940_v56 = vpop.permute.xlu1 %939  ;;  %1833 = vmatpush1.bf16.msra.mxu1 %v4166_v55  ;;  %v1458_v47 = vpop.permute.xlu0 %1457  ;;  %v1648_v53 = vld [vmem:[#allocation3 + $0x70] sm:$0xff]  ;;  %v2800_v50 = vrot.slane %v5286_v27, %v4746_v41  ;;  %v1772_v19 = vsel %vm1764_vm9, %v4174_v62, 0 }
 0x167   : > { %653 = vst [vmem:[#allocation3 + $0x18] sm:$0xcc] %v645_v24  ;;  %1171 = vst [vmem:[#allocation3 + $0x58] sm:$0xcc] %v1163_v29  ;;  %v945_v11 = vrot.slane %v940_v56, 4  ;;  %v1463_v36 = vrot.slane %v1458_v47, 4  ;;  %4182 = vmatprep.subr.msk.bf16.mxu1 %vm1764_vm9, %v4175_v4  ;;  %v4169_v49 = vcombine.high %v1644_v16, %v1648_v53  ;;  %v4168_v5 = vcombine.low %v1644_v16, %v1648_v53 }
 0x168   : > { %2668 = vrot.lane.b32.xlu0 %v2651_v30, %s4473_s16  ;;  %v2953_v55 = vrot.slane %v5311_v45, %v4751_v46  ;;  %v3102_v52 = vrot.slane %v5354_v32, %v4751_v46 }
 0x169   : > { %v953_v2 = vsel %vm403_vm1, %v944_v23, %v945_v11  ;;  %v1471_v34 = vsel %vm403_vm1, %v1462_v43, %v1463_v36  ;;  %1873 = vmatprep.subr.bf16.mxu0 %v4169_v49  ;;  %2328 = vrot.lane.b32.xlu1 %v2313_v9, %s4472_s28 }
 0x16a   : > { %v954_v25 = vsel %vm947_vm7, %v5439_v15, %v953_v2  ;;  %v1472_v63 = vsel %vm555_vm5, %v5483_v60, %v1471_v34  ;;  %v1301_v0 = vpop.permute.xlu1 %1300  ;;  %1835 = vmatpush1.bf16.msra.mxu1 %v1772_v19  ;;  %1874 = vmatpush1.bf16.msra.mxu0 %v4168_v5  ;;  %v1652_v10 = vld [vmem:[#allocation3 + $0x90] sm:$0x33]  ;;  %v2949_v15 = vrot.slane %v5311_v45, %v4746_v41 }
 0x16b   : > { %962 = vst [vmem:[#allocation3 + $0x38] sm:$0xcc] %v954_v25  ;;  %1480 = vst [vmem:[#allocation3 + $0x78] sm:$0xcc] %v1472_v63  ;;  %v1306_v23 = vrot.slane %v1301_v0, 4  ;;  %v4177_v7 = vcombine.high %v1652_v10, %v1652_v10  ;;  %v4176_v43 = vcombine.low %v1652_v10, %v1652_v10  ;;  %v2655_v41 = vrot.slane %v5245_v39, %v4751_v46 }
 0x16c   : > { %2817 = vrot.lane.b32.xlu0 %v2800_v50, %s4476_s18 }
 0x16d   : > { %v1314_v60 = vsel %vm403_vm1, %v1305_v26, %v1306_v23  ;;  %4183 = vmatmul.mubr.msk.bf16.vlgmr.msra.gmra.mrb[4].mxu1 %vm1760_vm10, %v5508_v35  ;;  %4184 = vmatprep.subr.msk.bf16.mxu0 %vm1764_vm9, %v4177_v7  ;;  %v1778_v13 = vsel %vm1764_vm9, %v4176_v43, 0  ;;  %v3094_v26 = vrot.slane %v5354_v32, %v4713_v22 }
 0x16e   : > { %v1315_v14 = vsel %vm712_vm2, %v5481_v33, %v1314_v60  ;;  %v1610_v54 = vpop.permute.xlu1 %1609  ;;  %1876 = vmatpush1.bf16.msra.mxu0 %v1778_v13  ;;  %1944 = vmatprep.mubr.bf16.mxu1 %v6401_v20  ;;  %v1637_v51 = vld [vmem:[#allocation3 + $0x18] sm:$0xff] }
 0x16f   : > { %1323 = vst [vmem:[#allocation3 + $0x78] sm:$0x33] %v1315_v14  ;;  %v1615_v38 = vrot.slane %v1610_v54, 4  ;;  %2477 = vrot.lane.b32.xlu1 %v2462_v8, %s4469_s29 }
 0x170   : > { %2966 = vrot.lane.b32.xlu0 %v2949_v15, %s4475_s17 }
 0x171   : > { %v1623_v33 = vsel %vm403_vm1, %v1614_v42, %v1615_v38  ;;  %4185 = vmatmul.mubr.msk.bf16.vlgmr.msra.gmra.mrb[0].mxu0 %vm1760_vm10, %v5508_v35  ;;  %v1645_v42 = vld [vmem:[#allocation3 + $0x58] sm:$0xff] }
 0x172   : > { %v1624_v31 = vsel %vm401_vm0, %v5514_v28, %v1623_v33  ;;  %v1641_v21 = vld [vmem:[#allocation3 + $0x38] sm:$0xff]  ;;  %v5596_v12 = vpop.permute.xlu1 %2016  ;;  %3502 = vmatprep.mubr.bf16.mxu0 %v6401_v20 }
 0x173   : > { %1632 = vst [vmem:[#allocation3 + $0x98] sm:$0x33] %v1624_v31  ;;  %v4162_v22 = vcombine.low %v1637_v51, %v1641_v21  ;;  %v4163_v18 = vcombine.high %v1637_v51, %v1641_v21  ;;  %3113 = vrot.lane.b32.xlu1 %v3094_v26, %s4477_s19 }
 0x174   : > { %3115 = vrot.lane.b32.xlu0 %v3098_v58, %s4477_s19 }
 0x175   : > { %1912 = vmatprep.subr.bf16.mxu1 %v4163_v18 }
 0x176   : > { %1913 = vmatpush1.bf16.msra.mxu1 %v4162_v22  ;;  %v1649_v28 = vld [vmem:[#allocation3 + $0x78] sm:$0xff]  ;;  %v5603_v1 = vpop.permute.xlu1 %2018 }
 0x177   : > { %v4170_v48 = vcombine.low %v1645_v42, %v1649_v28  ;;  %v4171_v3 = vcombine.high %v1645_v42, %v1649_v28  ;;  %v5605_v61 = vpop.permute.xlu0 %1657  ;;  %2670 = vrot.lane.b32.xlu1 %v2655_v41, %s4473_s16 }
 0x179   : > { %1914 = vmatprep.subr.bf16.mxu1 %v4171_v3 }
 0x17a   : > { %1915 = vmatpush1.bf16.msra.mxu1 %v4170_v48  ;;  %v1653_v39 = vld [vmem:[#allocation3 + $0x98] sm:$0x33]  ;;  %v5610_v57 = vpop.permute.xlu1 %2022 }
 0x17b   : > { %v4179_v40 = vcombine.high %v1653_v39, %v1653_v39  ;;  %v4178_v6 = vcombine.low %v1653_v39, %v1653_v39  ;;  %v5612_v44 = vpop.permute.xlu0 %2020  ;;  %2819 = vrot.lane.b32.xlu1 %v2804_v59, %s4476_s18 }
 0x17d   : > { %4186 = vmatprep.subr.msk.bf16.mxu1 %vm1764_vm9, %v4179_v40  ;;  %v1784_v30 = vsel %vm1764_vm9, %v4178_v6, 0 }
 0x17e   : > { %1917 = vmatpush1.bf16.msra.mxu1 %v1784_v30  ;;  %v5619_v27 = vpop.permute.xlu1 %2167 }
 0x17f   : > { %v5621_v9 = vpop.permute.xlu0 %2165  ;;  %2968 = vrot.lane.b32.xlu1 %v2953_v55, %s4475_s17 }
 0x181   : > { %4187 = vmatmul.mubr.msk.bf16.vlgmr.msra.gmra.mrb[8].mxu1 %vm1760_vm10, %v5508_v35 }
 0x182   : > { %v5628_v37 = vpop.permute.xlu1 %2171  ;;  %3545 = vmatprep.mubr.bf16.mxu1 %v6401_v20  ;;  %v2032_v20 = vsel %vm401_vm0, %v5596_v12, %v5603_v1 }
 0x183   : > { %v5631_v45 = vpop.permute.xlu0 %2169  ;;  %3117 = vrot.lane.b32.xlu1 %v3102_v52, %s4477_s19 }
 0x186   : > { %v2317_v4 = vpop.permute.xlu1 %2316 }
 0x187   : > { %v5634_v62 = vpop.permute.xlu0 %2314 }
 0x188   : > { %v5638_v24 = vsel %vm712_vm2, %v5634_v62, %v2317_v4 }
 0x18a   : > { %v2321_v29 = vpop.permute.xlu1 %2320 }
 0x18b   : > { %v2319_v46 = vpop.permute.xlu0 %2318 }
 0x18c   : > { %v5641_v32 = vsel %vm712_vm2, %v2317_v4, %v2319_v46  ;;  %v5644_v35 = vsel %vm712_vm2, %v2319_v46, %v2321_v29 }
 0x18e   : > { %v2466_v56 = vpop.permute.xlu1 %2465 }
 0x18f   : > { %v5646_v47 = vpop.permute.xlu0 %2463 }
 0x190   : > { %v5650_v16 = vsel %vm864_vm6, %v5646_v47, %v2466_v56 }
 0x192   : > { %v2470_v53 = vpop.permute.xlu1 %2469 }
 0x193   : > { %v2468_v11 = vpop.permute.xlu0 %2467 }
 0x194   : > { %v5653_v36 = vsel %vm864_vm6, %v2466_v56, %v2468_v11  ;;  %v5656_v49 = vsel %vm864_vm6, %v2468_v11, %v2470_v53 }
 0x196   : > { %v2027_v5 = vpop.permute.xlu1 %2026 }
 0x197   : > { %v5658_v50 = vpop.permute.xlu0 %2024 }
 0x198   : > { %v5662_v2 = vsel %vm401_vm0, %v5658_v50, %v2027_v5 }
 0x19a   : > { %v5664_v34 = vpop.permute.xlu1 %2175 }
 0x19b   : > { %v5666_v19 = vpop.permute.xlu0 %2173 }
 0x19c   : > { %v5671_v25 = vsel %vm555_vm5, %v5666_v19, %v5664_v34 }
 0x19e   : > { %v2659_v63 = vpop.permute.xlu1 %2658 }
 0x19f   : > { %v5673_v0 = vpop.permute.xlu0 %2656 }
 0x1a2   : > { %v5675_v10 = vpop.permute.xlu1 %2662 }
 0x1a3   : > { %v2661_v23 = vpop.permute.xlu0 %2660 }
 0x1a4   : > { %v5678_v7 = vsel %vm947_vm7, %v2659_v63, %v2661_v23  ;;  %v5682_v43 = vsel %vm947_vm7, %v2661_v23, %v5675_v10 }
 0x1a5   : > { %6407 = vst [vmem:[#allocation6_spill] sm:$0xff] %v5678_v7  ;;  %6408 = vst [vmem:[#allocation7_spill] sm:$0xff] %v5682_v43 }
 0x1a6   : > { %v5684_v8 = vpop.permute.xlu1 %2324 }
 0x1a7   : > { %v2323_v15 = vpop.permute.xlu0 %2322 }
 0x1a8   : > { %v5687_v60 = vsel %vm712_vm2, %v2321_v29, %v2323_v15  ;;  %v5691_v13 = vsel %vm712_vm2, %v2323_v15, %v5684_v8 }
 0x1aa   : > { %v5693_v14 = vpop.permute.xlu1 %2473 }
 0x1ab   : > { %v2472_v54 = vpop.permute.xlu0 %2471 }
 0x1ac   : > { %v5696_v38 = vsel %vm864_vm6, %v2470_v53, %v2472_v54  ;;  %v5700_v26 = vsel %vm864_vm6, %v2472_v54, %v5693_v14 }
 0x1ad   : > { %6409 = vst [vmem:[#allocation8_spill] sm:$0xff] %v5696_v38  ;;  %6410 = vst [vmem:[#allocation9_spill] sm:$0xff] %v5700_v26 }
 0x1ae   : > { %v2808_v58 = vpop.permute.xlu1 %2807 }
 0x1af   : > { %v2806_v33 = vpop.permute.xlu0 %2805 }
 0x1b2   : > { %v5702_v31 = vpop.permute.xlu1 %2811 }
 0x1b3   : > { %v2810_v51 = vpop.permute.xlu0 %2809 }
 0x1b4   : > { %v5705_v21 = vsel %vm790_vm3, %v2808_v58, %v2810_v51  ;;  %v5709_v22 = vsel %vm790_vm3, %v2810_v51, %v5702_v31 }
 0x1b5   : > { %6411 = vst [vmem:[#allocation10_spill] sm:$0xff] %v5705_v21  ;;  %6412 = vst [vmem:[#allocation11_spill] sm:$0xff] %v5709_v22 }
 0x1b6   : > { %v2957_v18 = vpop.permute.xlu1 %2956 }
 0x1b7   : > { %v5711_v41 = vpop.permute.xlu0 %2954 }
 0x1ba   : > { %v5713_v42 = vpop.permute.xlu1 %2960 }
 0x1bb   : > { %v2959_v28 = vpop.permute.xlu0 %2958 }
 0x1bc   : > { %v5716_v48 = vsel %vm638_vm8, %v2957_v18, %v2959_v28  ;;  %v5720_v3 = vsel %vm638_vm8, %v2959_v28, %v5713_v42  ;;  %v2048_v28 = vmul.f32 0.0, %v5596_v12  ;;  %v5777_v12 = vmul.f32 0.0, %v5646_v47 }
 0x1bd   : > { %6413 = vst [vmem:[#allocation12_spill] sm:$0xff] %v5716_v48  ;;  %6414 = vst [vmem:[#allocation13_spill] sm:$0xff] %v5720_v3 }
 0x1be   : > { %v5722_v59 = vpop.permute.xlu1 %2666 }
 0x1bf   : > { %v5724_v39 = vpop.permute.xlu0 %2664 }
 0x1c2   : > { %v5726_v40 = vpop.permute.xlu1 %3105 }
 0x1c3   : > { %v3104_v6 = vpop.permute.xlu0 %3103 }
 0x1c4   : > { %v3119_v47 = vsel %vm481_vm4, %v3104_v6, %v5726_v40 }
 0x1c6   : > { %v5728_v55 = vpop.permute.xlu1 %3109 }
 0x1c7   : > { %v5730_v30 = vpop.permute.xlu0 %3107 }
 0x1ca   : > { %v5732_v4 = vpop.permute.xlu1 %2030 }
 0x1cb   : > { %v2029_v52 = vpop.permute.xlu0 %2028  ;;  %6415 = vst [vmem:[#allocation14_spill] sm:$0xff] %v5732_v4 }
 0x1cc   : > { %v5735_v29 = vsel %vm401_vm0, %v2027_v5, %v2029_v52  ;;  %v5739_v46 = vsel %vm401_vm0, %v2029_v52, %v5732_v4  ;;  %v5763_v4 = vsel %vm401_vm0, %v5603_v1, %v5612_v44  ;;  %v2181_v1 = vsel %vm555_vm5, %v5621_v9, %v5619_v27 }
 0x1cd   : > { %6416 = vst [vmem:[#allocation15_spill] sm:$0xff] %v5735_v29  ;;  %6417 = vst [vmem:[#allocation16_spill] sm:$0xff] %v5739_v46  ;;  %v5768_v46 = vsel %vm401_vm0, %v5612_v44, %v5610_v57 }
 0x1ce   : > { %v5741_v56 = vpop.permute.xlu1 %2179 }
 0x1cf   : > { %6418 = vst [vmem:[#allocation17_spill] sm:$0xff] %v5741_v56  ;;  %v5745_v11 = vpop.permute.xlu0 %2177 }
 0x1d2   : > { %v5743_v53 = vpop.permute.xlu1 %2815 }
 0x1d3   : > { %v5749_v15 = vpop.permute.xlu0 %2813 }
 0x1d7   : > { %v5747_v23 = vpop.permute.xlu1 %2964  ;;  %v5753_v51 = vpop.permute.xlu0 %2962 }
 0x1db   : > { %v5751_v54 = vpop.permute.xlu1 %2328  ;;  %v5782_v3 = vpop.permute.xlu0 %2326 }
 0x1dc   : > { %6419 = vst [vmem:[#allocation18_spill] sm:$0xff] %v5751_v54 }
 0x1e1   : > { %v5771_v29 = vpop.permute.xlu1 %2477 }
 0x1e2   : > { %6420 = vst [vmem:[#allocation19_spill] sm:$0xff] %v5771_v29 }
 0x234   : > { %v1823_v5 = vpop.f32.mrb[0].mxu1 }
 0x235   : > { %v1824_v52 = vadd.f32 %v1823_v5, %v5605_v61  ;;  %v1825_v17 = vpop.f32.mrb[1].mxu1  ;;  %v5774_v5 = vmul.f32 0.0, %v5634_v62  ;;  %v2970_v62 = vsel %vm638_vm8, %v5711_v41, %v2957_v18 }
 0x236   : > { %v1826_v54 = vadd.f32 %v1825_v17, %v5605_v61  ;;  %v1827_v56 = vpop.f32.mrb[2].mxu1  ;;  %v2672_v17 = vsel %vm947_vm7, %v5673_v0, %v2659_v63 }
 0x237   : > { %v1953_v48 = vmax.f32 %v1824_v52, 0.0  ;;  %v1828_v44 = vpop.f32.mrb[3].mxu1  ;;  %v2821_v56 = vsel %vm790_vm3, %v2806_v33, %v2808_v58 }
 0x238   : > { %v1954_v29 = vmax.f32 %v1826_v54, 0.0 }
 0x239   : > { %v2049_v22 = vmul.f32 %v2032_v20, %v1953_v48  ;;  %v3135_v21 = vmul.f32 %v3104_v6, %v1953_v48  ;;  %v2347_v26 = vmul.f32 %v5638_v24, %v1953_v48  ;;  %v5793_v52 = vmul.f32 %v5650_v16, %v1953_v48  ;;  %v5803_v20 = vpop.permute.xlu1 %3113 }
 0x23a   : > { %v3136_v38 = vmul.f32 %v3119_v47, %v1954_v29  ;;  %v5796_v44 = vmul.f32 %v5673_v0, %v1953_v48  ;;  %v5798_v63 = vmul.f32 %v2672_v17, %v1954_v29  ;;  %v2198_v43 = vmul.f32 %v2181_v1, %v1953_v48 }
 0x23b   : > { %v4343_v58 = vpack.c.bf16 %v2049_v22, %v2048_v28  ;;  %v4353_v18 = vpack.c.bf16 %v2347_v26, %v5774_v5  ;;  %v5801_v54 = vmul.f32 %v2806_v33, %v1953_v48  ;;  %v4358_v24 = vpack.c.bf16 %v5793_v52, %v5777_v12  ;;  %v5815_v26 = vpop.permute.xlu0 %2475 }
 0x23c   : > { %v4382_v7 = vpack.c.bf16 %v3136_v38, %v3135_v21  ;;  %v4367_v16 = vpack.c.bf16 %v5798_v63, %v5796_v44  ;;  %v5809_v6 = vmul.f32 %v2821_v56, %v1954_v29  ;;  %v2197_v0 = vmul.f32 0.0, %v5621_v9  ;;  %v6422_v63 = vld [vmem:[#allocation7_spill] sm:$0xff] }
 0x23d   : > { %v2182_v22 = vsel %vm555_vm5, %v5619_v27, %v5631_v45  ;;  %2089 = vrot.lane.b32.xlu0 %v4343_v58, %s4477_s19  ;;  %v5819_v38 = vmul.f32 %v5711_v41, %v1953_v48  ;;  %v5821_v33 = vmul.f32 %v2970_v62, %v1954_v29  ;;  %v5827_v9 = vmul.f32 %v5641_v32, %v1954_v29 }
 0x23e   : > { %3176 = vrot.lane.b32.xlu1 %v4382_v7, %s4471_s23  ;;  %v4372_v21 = vpack.c.bf16 %v5809_v6, %v5801_v54  ;;  %v5830_v28 = vmul.f32 %v5653_v36, %v1954_v29  ;;  %v5832_v27 = vpack.c.bf16 %v1954_v29, %v1953_v48  ;;  %v2035_v41 = vsel %vm401_vm0, %v5610_v57, %v5658_v50 }
 0x23f   : > { %v2183_v5 = vsel %vm555_vm5, %v5631_v45, %v5628_v37  ;;  %v4348_v7 = vpack.c.bf16 %v2198_v43, %v2197_v0  ;;  %v4377_v1 = vpack.c.bf16 %v5821_v33, %v5819_v38  ;;  %v2184_v32 = vsel %vm555_vm5, %v5628_v37, %v5666_v19  ;;  %v3112_v19 = vpop.permute.xlu0 %3111 }
 0x240   : > { %v2675_v36 = vsel %vm947_vm7, %v5675_v10, %v5724_v39  ;;  %v2676_v57 = vsel %vm947_vm7, %v5724_v39, %v5722_v59  ;;  %v3120_v45 = vsel %vm481_vm4, %v5726_v40, %v5730_v30  ;;  %v1864_v50 = vpop.f32.mrb[4].mxu1  ;;  %v5857_v43 = vsel %vm555_vm5, %v5664_v34, %v5745_v11 }
 0x241   : > { %v2824_v37 = vsel %vm790_vm3, %v5702_v31, %v5749_v15  ;;  %v3121_v10 = vsel %vm481_vm4, %v5730_v30, %v5728_v55  ;;  %v1865_v48 = vadd.f32 %v1864_v50, %v5605_v61  ;;  %v1866_v39 = vpop.f32.mrb[5].mxu1  ;;  %2238 = vrot.lane.b32.xlu0 %v4348_v7, %s4475_s17  ;;  %v2973_v40 = vsel %vm638_vm8, %v5713_v42, %v5753_v51  ;;  %v5877_v30 = vpop.permute.xlu1 %2670 }
 0x242   : > { %v2825_v34 = vsel %vm790_vm3, %v5749_v15, %v5743_v53  ;;  %v2974_v31 = vsel %vm638_vm8, %v5753_v51, %v5747_v23  ;;  %v1867_v17 = vadd.f32 %v1866_v39, %v5605_v61  ;;  %v1868_v56 = vpop.f32.mrb[6].mxu1  ;;  %v5882_v62 = vsel %vm712_vm2, %v5684_v8, %v5782_v3 }
 0x243   : > { %v2484_v42 = vsel %vm864_vm6, %v5693_v14, %v5815_v26  ;;  %v3122_v15 = vsel %vm481_vm4, %v5728_v55, %v3112_v19  ;;  %v5889_v47 = vmax.f32 %v1865_v48, 0.0  ;;  %v1869_v51 = vpop.f32.mrb[7].mxu1  ;;  %v3123_v7 = vsel %vm481_vm4, %v3112_v19, %v5803_v20 }
 0x244   : > { %v5891_v58 = vmax.f32 %v1867_v17, 0.0  ;;  %v1905_v0 = vpop.f32.mrb[0].mxu0  ;;  %v5896_v50 = vmul.f32 %v5763_v4, %v1954_v29  ;;  %v5898_v8 = vmul.f32 %v2182_v22, %v1954_v29 }
 0x245   : > { %v1906_v39 = vadd.f32 %v1905_v0, %v5605_v61  ;;  %v1907_v14 = vpop.f32.mrb[1].mxu0  ;;  %2387 = vrot.lane.b32.xlu0 %v4353_v18, %s4476_s18  ;;  %v5904_v55 = vmul.f32 %v5768_v46, %v5889_v47  ;;  %v5907_v48 = vmul.f32 %v2183_v5, %v5889_v47  ;;  %v5911_v19 = vmul.f32 %v5644_v35, %v5889_v47  ;;  %v5925_v5 = vpop.permute.xlu0 %2668 }
 0x246   : > { %v1908_v4 = vadd.f32 %v1907_v14, %v5605_v61  ;;  %v1909_v29 = vpop.f32.mrb[2].mxu0  ;;  %v5915_v22 = vmul.f32 %v2035_v41, %v5891_v58  ;;  %v5919_v18 = vmul.f32 %v5656_v49, %v5889_v47  ;;  %v5923_v46 = vmul.f32 %v5687_v60, %v5891_v58  ;;  %v5933_v49 = vpop.permute.xlu1 %2819 }
 0x247   : > { %v1957_v17 = vmax.f32 %v1906_v39, 0.0  ;;  %v1910_v56 = vpop.f32.mrb[3].mxu0  ;;  %v4344_v35 = vpack.c.bf16 %v5904_v55, %v5896_v50  ;;  %v5938_v14 = vmul.f32 %v2184_v32, %v5891_v58  ;;  %v5941_v39 = vmul.f32 %v3120_v45, %v5889_v47 }
 0x248   : > { %v1958_v0 = vmax.f32 %v1908_v4, 0.0  ;;  %v5965_v52 = vmul.f32 %v3121_v10, %v5891_v58 }
 0x249   : > { %v3139_v29 = vmul.f32 %v3122_v15, %v1957_v17  ;;  %2536 = vrot.lane.b32.xlu0 %v4358_v24, %s4473_s16  ;;  %v2841_v50 = vmul.f32 %v2824_v37, %v1957_v17  ;;  %v5947_v55 = vmul.f32 %v2675_v36, %v1957_v17  ;;  %v5949_v4 = vmul.f32 %v2973_v40, %v1957_v17  ;;  %v5953_v32 = vpop.permute.xlu0 %2817 }
 0x24a   : > { %v3140_v56 = vmul.f32 %v3123_v7, %v1958_v0  ;;  %v2842_v41 = vmul.f32 %v2825_v34, %v1958_v0  ;;  %v2693_v60 = vmul.f32 %v2676_v57, %v1958_v0  ;;  %v5951_v51 = vmul.f32 %v2974_v31, %v1958_v0  ;;  %v5983_v40 = vpop.permute.xlu1 %2968  ;;  %v6421_v34 = vld [vmem:[#allocation6_spill] sm:$0xff]  ;;  %v6423_v7 = vld [vmem:[#allocation8_spill] sm:$0xff] }
 0x24b   : > { %v5956_v45 = vmul.f32 %v5662_v2, %v1957_v17  ;;  %v5959_v15 = vmul.f32 %v5691_v13, %v1957_v17  ;;  %v5962_v12 = vmul.f32 %v5671_v25, %v1957_v17  ;;  %v5987_v44 = vmul.f32 %v6421_v34, %v5889_v47 }
 0x24c   : > { %v4384_v24 = vpack.c.bf16 %v3140_v56, %v3139_v29  ;;  %v4374_v36 = vpack.c.bf16 %v2842_v41, %v2841_v50  ;;  %v4369_v57 = vpack.c.bf16 %v2693_v60, %v5947_v55  ;;  %v4379_v37 = vpack.c.bf16 %v5951_v51, %v5949_v4  ;;  %v6424_v60 = vld [vmem:[#allocation9_spill] sm:$0xff]  ;;  %v6425_v55 = vld [vmem:[#allocation10_spill] sm:$0xff] }
 0x24d   : > { %2729 = vrot.lane.b32.xlu0 %v4367_v16, %s4469_s29  ;;  %v5991_v16 = vmul.f32 %v6422_v63, %v5891_v58  ;;  %v5994_v31 = vmul.f32 %v5857_v43, %v1958_v0  ;;  %v5998_v41 = vmul.f32 %v6423_v7, %v5891_v58  ;;  %v6001_v29 = vmul.f32 %v6424_v60, %v1957_v17  ;;  %v6427_v63 = vld [vmem:[#allocation12_spill] sm:$0xff]  ;;  %v6428_v60 = vld [vmem:[#allocation13_spill] sm:$0xff] }
 0x24e   : > { %2882 = vrot.lane.b32.xlu1 %v4374_v36, %s4472_s28  ;;  %v6003_v50 = vmul.f32 %v2484_v42, %v1958_v0  ;;  %v6007_v56 = vmul.f32 %v6425_v55, %v5889_v47  ;;  %v6426_v36 = vld [vmem:[#allocation11_spill] sm:$0xff]  ;;  %v6017_v7 = vmul.f32 %v6427_v63, %v5889_v47  ;;  %v6021_v10 = vmul.f32 %v6428_v60, %v5891_v58  ;;  %v2967_v55 = vpop.permute.xlu0 %2966 }
 0x24f   : > { %v6011_v34 = vmul.f32 %v6426_v36, %v5891_v58  ;;  %v6429_v42 = vld [vmem:[#allocation15_spill] sm:$0xff]  ;;  %v4360_v36 = vpack.c.bf16 %v6001_v29, %v5998_v41  ;;  %v6035_v43 = vmul.f32 %v5882_v62, %v1958_v0  ;;  %v6039_v60 = vpack.c.bf16 %v5891_v58, %v5889_v47  ;;  %v6430_v62 = vld [vmem:[#allocation17_spill] sm:$0xff] }
 0x250   : > { %v6024_v13 = vmul.f32 %v6429_v42, %v1958_v0  ;;  %v4378_v42 = vpack.c.bf16 %v6021_v10, %v6017_v7  ;;  %v6044_v54 = vpack.c.bf16 %v1958_v0, %v1957_v17  ;;  %v2187_v47 = vsel %vm555_vm5, %v5745_v11, %v6430_v62  ;;  %v6431_v0 = vld [vmem:[#allocation18_spill] sm:$0xff]  ;;  %v6432_v11 = vld [vmem:[#allocation19_spill] sm:$0xff] }
 0x251   : > { %2878 = vrot.lane.b32.xlu0 %v4372_v21, %s4472_s28  ;;  %v6046_v21 = vpop.permute.xlu1 %3117  ;;  %v2678_v10 = vsel %vm947_vm7, %v5925_v5, %v5877_v30  ;;  %v6436_v51 = vpack.c.bf16 %v5956_v45, %v5915_v22  ;;  %v6437_v4 = vpack.c.bf16 %v5919_v18, %v5830_v28  ;;  %v6440_v22 = vpack.c.bf16 %v5965_v52, %v5941_v39  ;;  %v6442_v18 = vld [vmem:[#allocation14_spill] sm:$0xff] }
 0x252   : > { %3180 = vrot.lane.b32.xlu1 %v4384_v24, %s4471_s23  ;;  %v3116_v41 = vpop.permute.xlu0 %3115  ;;  %v2336_v24 = vsel %vm712_vm2, %v5782_v3, %v6431_v0  ;;  %v6441_v28 = vpack.c.bf16 %v5991_v16, %v5987_v44 }
 0x253   : > { %v3125_v38 = vsel %vm481_vm4, %v3116_v41, %v6046_v21  ;;  %v3124_v3 = vsel %vm481_vm4, %v5803_v20, %v3116_v41  ;;  %v2827_v20 = vsel %vm790_vm3, %v5953_v32, %v5933_v49 }
 0x254   : > { %v1946_v6 = vpop.f32.mrb[8].mxu1 }
 0x255   : > { %v1947_v29 = vadd.f32 %v1946_v6, %v5605_v61  ;;  %v1948_v63 = vpop.f32.mrb[9].mxu1  ;;  %3027 = vrot.lane.b32.xlu0 %v4377_v1, %s4470_s11  ;;  %v2485_v1 = vsel %vm864_vm6, %v5815_v26, %v6432_v11 }
 0x256   : > { %v1949_v58 = vadd.f32 %v1948_v63, %v5605_v61  ;;  %2091 = vrot.lane.b32.xlu1 %v4344_v35, %s4477_s19  ;;  %v1950_v17 = vpop.f32.mrb[10].mxu1  ;;  %v2677_v61 = vsel %vm947_vm7, %v5722_v59, %v5925_v5  ;;  %v6433_v59 = vpack.c.bf16 %v5907_v48, %v5898_v8  ;;  %v6434_v5 = vld [vmem:[#allocation16_spill] sm:$0xff]  ;;  %v2826_v48 = vsel %vm790_vm3, %v5743_v53, %v5953_v32 }
 0x257   : > { %v1959_v7 = vmax.f32 %v1947_v29, 0.0  ;;  %v1951_v33 = vpop.f32.mrb[11].mxu1 }
 0x258   : > { %v1960_v35 = vmax.f32 %v1949_v58, 0.0  ;;  %v2976_v33 = vsel %vm638_vm8, %v2967_v55, %v5983_v40  ;;  %v2975_v58 = vsel %vm638_vm8, %v5747_v23, %v2967_v55  ;;  %v6435_v23 = vpack.c.bf16 %v5911_v19, %v5827_v9 }
 0x259   : > { %v3141_v63 = vmul.f32 %v3124_v3, %v1959_v7  ;;  %2733 = vrot.lane.b32.xlu0 %v4369_v57, %s4469_s29  ;;  %v2204_v6 = vmul.f32 %v2187_v47, %v1959_v7  ;;  %v2502_v29 = vmul.f32 %v2485_v1, %v1959_v7  ;;  %v2694_v17 = vmul.f32 %v2677_v61, %v1959_v7 }
 0x25a   : > { %v3142_v25 = vmul.f32 %v3125_v38, %v1960_v35  ;;  %2240 = vrot.lane.b32.xlu1 %v6433_v59, %s4475_s17  ;;  %v2695_v26 = vmul.f32 %v2678_v10, %v1960_v35  ;;  %v2055_v2 = vmul.f32 %v6434_v5, %v1959_v7  ;;  %v2353_v47 = vmul.f32 %v2336_v24, %v1959_v7 }
 0x25b   : > { %v4351_v57 = vpack.c.bf16 %v2204_v6, %v5994_v31  ;;  %v4361_v41 = vpack.c.bf16 %v2502_v29, %v6003_v50  ;;  %v2992_v50 = vmul.f32 %v2975_v58, %v1959_v7  ;;  %v2993_v24 = vmul.f32 %v2976_v33, %v1960_v35 }
 0x25c   : > { %v4385_v38 = vpack.c.bf16 %v3142_v25, %v3141_v63  ;;  %v4370_v61 = vpack.c.bf16 %v2695_v26, %v2694_v17  ;;  %v4346_v8 = vpack.c.bf16 %v2055_v2, %v6024_v13  ;;  %v4356_v31 = vpack.c.bf16 %v2353_v47, %v6035_v43 }
 0x25d   : > { %3031 = vrot.lane.b32.xlu0 %v4379_v37, %s4470_s11  ;;  %v2843_v25 = vmul.f32 %v2826_v48, %v1959_v7  ;;  %v2844_v2 = vmul.f32 %v2827_v20, %v1960_v35  ;;  %v4380_v13 = vpack.c.bf16 %v2993_v24, %v2992_v50  ;;  %v6102_v55 = vpack.c.bf16 %v1960_v35, %v1959_v7 }
 0x25e   : > { %2389 = vrot.lane.b32.xlu1 %v6435_v23, %s4476_s18  ;;  %v6438_v9 = vpack.c.bf16 %v5959_v15, %v5923_v46  ;;  %v6439_v19 = vpack.c.bf16 %v5962_v12, %v5938_v14  ;;  %v2056_v46 = vmul.f32 %v6442_v18, %v1960_v35  ;;  %v6443_v14 = vpack.c.bf16 %v6011_v34, %v6007_v56 }
 0x25f   : > { %v4375_v53 = vpack.c.bf16 %v2844_v2, %v2843_v25  ;;  %v2503_v32 = vmul.f32 %v6432_v11, %v1960_v35  ;;  %v2205_v15 = vmul.f32 %v6430_v62, %v1960_v35  ;;  %v2354_v52 = vmul.f32 %v6431_v0, %v1960_v35  ;;  %v3246_v62 = vld [vmem:[%s6396_s6 + $0x8] sm:$0xff] }
 0x260   : > { %v4347_v39 = vpack.c.bf16 %v2056_v46, %v2056_v46  ;;  %v2994_v37 = vmul.f32 0.0, %v5983_v40  ;;  %v2696_v56 = vmul.f32 0.0, %v5877_v30  ;;  %v3245_v40 = vld [vmem:[%s6396_s6] sm:$0xff]  ;;  %v2845_v43 = vmul.f32 0.0, %v5933_v49 }
 0x261   : > { %2093 = vrot.lane.b32.xlu0 %v6436_v51, %s4477_s19  ;;  %v4362_v45 = vpack.c.bf16 %v2503_v32, %v2503_v32  ;;  %v4352_v12 = vpack.c.bf16 %v2205_v15, %v2205_v15  ;;  %v4357_v44 = vpack.c.bf16 %v2354_v52, %v2354_v52 }
 0x262   : > { %2538 = vrot.lane.b32.xlu1 %v6437_v4, %s4473_s16  ;;  %v4381_v16 = vpack.c.bf16 %v2994_v37, %v2994_v37  ;;  %v4371_v34 = vpack.c.bf16 %v2696_v56, %v2696_v56 }
 0x265   : > { %2391 = vrot.lane.b32.xlu0 %v6438_v9, %s4476_s18 }
 0x266   : > { %2242 = vrot.lane.b32.xlu1 %v6439_v19, %s4475_s17 }
 0x269   : > { %3178 = vrot.lane.b32.xlu0 %v6440_v22, %s4471_s23 }
 0x26a   : > { %2731 = vrot.lane.b32.xlu1 %v6441_v28, %s4469_s29 }
 0x26d   : > { %2244 = vrot.lane.b32.xlu0 %v4351_v57, %s4475_s17 }
 0x26e   : > { %2540 = vrot.lane.b32.xlu1 %v4360_v36, %s4473_s16  ;;  %v4376_v36 = vpack.c.bf16 %v2845_v43, %v2845_v43 }
 0x271   : > { %2542 = vrot.lane.b32.xlu0 %v4361_v41, %s4473_s16 }
 0x272   : > { %2880 = vrot.lane.b32.xlu1 %v6443_v14, %s4472_s28 }
 0x275   : > { %2097 = vrot.lane.b32.xlu0 %v4347_v39, %s4477_s19 }
 0x276   : > { %3029 = vrot.lane.b32.xlu1 %v4378_v42, %s4470_s11  ;;  %v3143_v42 = vmul.f32 0.0, %v6046_v21 }
 0x278   : > { %v4386_v30 = vpack.c.bf16 %v3143_v42, %v3143_v42 }
 0x279   : > { %2735 = vrot.lane.b32.xlu0 %v4370_v61, %s4469_s29 }
 0x27a   : > { %2095 = vrot.lane.b32.xlu1 %v4346_v8, %s4477_s19 }
 0x27d   : > { %2544 = vrot.lane.b32.xlu0 %v4362_v45, %s4473_s16 }
 0x27e   : > { %2393 = vrot.lane.b32.xlu1 %v4356_v31, %s4476_s18 }
 0x281   : > { %3033 = vrot.lane.b32.xlu0 %v4380_v13, %s4470_s11 }
 0x282   : > { %2246 = vrot.lane.b32.xlu1 %v4352_v12, %s4475_s17 }
 0x285   : > { %3182 = vrot.lane.b32.xlu0 %v4385_v38, %s4471_s23 }
 0x286   : > { %2395 = vrot.lane.b32.xlu1 %v4357_v44, %s4476_s18 }
 0x289   : > { %3035 = vrot.lane.b32.xlu0 %v4381_v16, %s4470_s11 }
 0x28a   : > { %2884 = vrot.lane.b32.xlu1 %v4375_v53, %s4472_s28 }
 0x28d   : > { %3249 = vperm.xlu0 %4442, %v3245_v40  }
 0x28e   : > { %2737 = vrot.lane.b32.xlu1 %v4371_v34, %s4469_s29  ;;  %s332_s29 = scalar_lea.vmem %s6399_s9, %s4097_s22 }
 0x292   : > { %2886 = vrot.lane.b32.xlu1 %v4376_v36, %s4472_s28 }
 0x296   : > { %3184 = vrot.lane.b32.xlu1 %v4386_v30, %s4471_s23 }
 0x29a   : > { %3254 = vperm.xlu1 %4443, %v3246_v62  }
 0x2af   : > { %v2090_v0 = vpop.permute.xlu0 %2089 }
 0x2b0   : > { %v6164_v11 = vpop.permute.xlu1 %3176  ;;  %v2099_v17 = vrot.slane %v2090_v0, 4 }
 0x2b3   : > { %v2239_v10 = vpop.permute.xlu0 %2238 }
 0x2b4   : > { %v2248_v26 = vrot.slane %v2239_v10, 4 }
 0x2b7   : > { %v2388_v7 = vpop.permute.xlu0 %2387 }
 0x2b8   : > { %v2397_v31 = vrot.slane %v2388_v7, 4 }
 0x2bb   : > { %v2537_v49 = vpop.permute.xlu0 %2536 }
 0x2bc   : > { %v2546_v23 = vrot.slane %v2537_v49, 4 }
 0x2bf   : > { %v2730_v1 = vpop.permute.xlu0 %2729 }
 0x2c0   : > { %v6166_v3 = vpop.permute.xlu1 %2882  ;;  %v2739_v32 = vrot.slane %v2730_v1, 4 }
 0x2c3   : > { %v6168_v21 = vpop.permute.xlu0 %2878 }
 0x2c4   : > { %v6170_v35 = vpop.permute.xlu1 %3180 }
 0x2c7   : > { %v6172_v63 = vpop.permute.xlu0 %3027 }
 0x2c8   : > { %v2092_v6 = vpop.permute.xlu1 %2091 }
 0x2c9   : > { %v2100_v29 = vrot.slane %v2092_v6, 4 }
 0x2cb   : > { %v6174_v33 = vpop.permute.xlu0 %2733  ;;  %v2104_v5 = vsel %vm403_vm1, %v2099_v17, %v2100_v29 }
 0x2cc   : > { %v2241_v59 = vpop.permute.xlu1 %2240  ;;  %v2105_v58 = vsel %vm481_vm4, %v2090_v0, %v2104_v5  ;;  %v2741_v56 = vrot.slane %v6174_v33, 4 }
 0x2cd   : > { %v2249_v20 = vrot.slane %v2241_v59, 4 }
 0x2cf   : > { %v2253_v57 = vsel %vm403_vm1, %v2248_v26, %v2249_v20  ;;  %v6178_v41 = vpop.permute.xlu0 %3031 }
 0x2d0   : > { %v2390_v47 = vpop.permute.xlu1 %2389  ;;  %v2254_v38 = vsel %vm638_vm8, %v2239_v10, %v2253_v57  ;;  %v3186_v57 = vrot.slane %v6164_v11, 4 }
 0x2d1   : > { %v2398_v61 = vrot.slane %v2390_v47, 4  ;;  %v4247_v8 = vcombine.low %v2105_v58, %v2254_v38  ;;  %v4248_v48 = vcombine.high %v2105_v58, %v2254_v38  ;;  %v2890_v58 = vrot.slane %v6166_v3, 4 }
 0x2d2   : > { %v2888_v38 = vrot.slane %v6168_v21, 4 }
 0x2d3   : > { %3470 = vmatprep.subr.bf16.mxu0 %v4248_v48  ;;  %v6182_v50 = vpop.permute.xlu0 %2093  ;;  %v2402_v25 = vsel %vm403_vm1, %v2397_v31, %v2398_v61  ;;  %v3037_v48 = vrot.slane %v6172_v63, 4 }
 0x2d4   : > { %v2539_v24 = vpop.permute.xlu1 %2538  ;;  %3471 = vmatpush1.bf16.msra.mxu0 %v4247_v8  ;;  %v2101_v2 = vrot.slane %v6182_v50, 4  ;;  %v2403_v9 = vsel %vm790_vm3, %v2388_v7, %v2402_v25 }
 0x2d5   : > { %v2547_v13 = vrot.slane %v2539_v24, 4 }
 0x2d6   : > { %v2106_v22 = vsel %vm403_vm1, %v2100_v29, %v2101_v2 }
 0x2d7   : > { %v2551_v53 = vsel %vm403_vm1, %v2546_v23, %v2547_v13  ;;  %v6187_v51 = vpop.permute.xlu0 %2391  ;;  %v2107_v15 = vsel %vm481_vm4, %v2092_v6, %v2106_v22  ;;  %v3039_v23 = vrot.slane %v6178_v41, 4 }
 0x2d8   : > { %v6189_v4 = vpop.permute.xlu1 %2242  ;;  %v2552_v19 = vsel %vm947_vm7, %v2537_v49, %v2551_v53  ;;  %v2399_v52 = vrot.slane %v6187_v51, 4 }
 0x2d9   : > { %v2250_v28 = vrot.slane %v6189_v4, 4  ;;  %v4255_v18 = vcombine.low %v2403_v9, %v2552_v19  ;;  %v4256_v46 = vcombine.high %v2403_v9, %v2552_v19 }
 0x2da   : > { %v2404_v36 = vsel %vm403_vm1, %v2398_v61, %v2399_v52 }
 0x2db   : > { %v2255_v14 = vsel %vm403_vm1, %v2249_v20, %v2250_v28  ;;  %3472 = vmatprep.subr.bf16.mxu0 %v4256_v46  ;;  %v3179_v39 = vpop.permute.xlu0 %3178 }
 0x2dc   : > { %v2732_v45 = vpop.permute.xlu1 %2731  ;;  %3473 = vmatpush1.bf16.msra.mxu0 %v4255_v18  ;;  %v2256_v12 = vsel %vm638_vm8, %v2241_v59, %v2255_v14  ;;  %v3187_v7 = vrot.slane %v3179_v39, 4  ;;  %v2405_v59 = vsel %vm790_vm3, %v2390_v47, %v2404_v36 }
 0x2dd   : > { %v2740_v37 = vrot.slane %v2732_v45, 4  ;;  %v4249_v44 = vcombine.low %v2107_v15, %v2256_v12  ;;  %v4250_v16 = vcombine.high %v2107_v15, %v2256_v12 }
 0x2de   : > { %v3191_v31 = vsel %vm403_vm1, %v3186_v57, %v3187_v7  ;;  %v6286_v57 = vld [vmem:[%s6395_s5] sm:$0xff]  }
 0x2df   : > { %v2744_v40 = vsel %vm403_vm1, %v2739_v32, %v2740_v37  ;;  %3513 = vmatprep.subr.bf16.mxu1 %v4250_v16  ;;  %v6205_v34 = vpop.permute.xlu0 %2244  ;;  %v2746_v42 = vsel %vm403_vm1, %v2740_v37, %v2741_v56  ;;  %v3192_v32 = vsel %vm401_vm0, %v6164_v11, %v3191_v31 }
 0x2e0   : > { %v6207_v43 = vpop.permute.xlu1 %2540  ;;  %3514 = vmatpush1.bf16.msra.mxu1 %v4249_v44  ;;  %v2745_v62 = vsel %vm864_vm6, %v2730_v1, %v2744_v40  ;;  %v2747_v29 = vsel %vm864_vm6, %v2732_v45, %v2746_v42  ;;  %v3188_v1 = vrot.slane %v6170_v35, 4  ;;  %v2251_v22 = vrot.slane %v6205_v34, 4 }
 0x2e1   : > { %v2548_v30 = vrot.slane %v6207_v43, 4  ;;  %v4263_v0 = vcombine.low %v5832_v27, %v2745_v62  ;;  %v4264_v10 = vcombine.high %v5832_v27, %v2745_v62  ;;  %v4266_v47 = vcombine.high %v6039_v60, %v2747_v29 }
 0x2e2   : > { %v3193_v61 = vsel %vm403_vm1, %v3187_v7, %v3188_v1  ;;  %v4265_v19 = vcombine.low %v6039_v60, %v2747_v29  ;;  %v4279_v7 = vcombine.low %v3192_v32, %v3192_v32  ;;  %v4280_v29 = vcombine.high %v3192_v32, %v3192_v32 }
 0x2e3   : > { %v2553_v49 = vsel %vm403_vm1, %v2547_v13, %v2548_v30  ;;  %v6222_v6 = vpop.permute.xlu0 %2542  ;;  %3474 = vmatprep.subr.bf16.mxu0 %v4264_v10  ;;  %v3194_v9 = vsel %vm401_vm0, %v3179_v39, %v3193_v61 }
 0x2e4   : > { %v2881_v17 = vpop.permute.xlu1 %2880  ;;  %v2554_v26 = vsel %vm947_vm7, %v2539_v24, %v2553_v49  ;;  %3475 = vmatpush1.bf16.msra.mxu0 %v4263_v0  ;;  %v4281_v36 = vcombine.low %v3194_v9, %v3194_v9  ;;  %v4282_v62 = vcombine.high %v3194_v9, %v3194_v9  ;;  %v2549_v11 = vrot.slane %v6222_v6, 4 }
 0x2e5   : > { %v2889_v5 = vrot.slane %v2881_v17, 4  ;;  %v4257_v27 = vcombine.low %v2405_v59, %v2554_v26  ;;  %v4258_v20 = vcombine.high %v2405_v59, %v2554_v26 }
 0x2e6   : > { %v3453_v26 = vsel %vm403_vm1, %v4281_v36, 0 }
 0x2e7   : > { %3515 = vmatprep.subr.bf16.mxu1 %v4258_v20  ;;  %v2098_v8 = vpop.permute.xlu0 %2097  ;;  %v2893_v25 = vsel %vm403_vm1, %v2888_v38, %v2889_v5  ;;  %v2895_v13 = vsel %vm403_vm1, %v2889_v5, %v2890_v58  ;;  %v3447_v20 = vsel %vm403_vm1, %v4279_v7, 0 }
 0x2e8   : > { %v3030_v24 = vpop.permute.xlu1 %3029  ;;  %3516 = vmatpush1.bf16.msra.mxu1 %v4257_v27  ;;  %v2896_v45 = vsel %vm712_vm2, %v2881_v17, %v2895_v13  ;;  %v2894_v60 = vsel %vm712_vm2, %v6168_v21, %v2893_v25  ;;  %v2257_v21 = vsel %vm403_vm1, %v2250_v28, %v2251_v22  ;;  %v2103_v59 = vrot.slane %v2098_v8, 4 }
 0x2e9   : > { %v3038_v53 = vrot.slane %v3030_v24, 4  ;;  %3517 = vmatprep.subr.bf16.mxu1 %v4266_v47  ;;  %v2555_v28 = vsel %vm403_vm1, %v2548_v30, %v2549_v11 }
 0x2eb   : > { %v3042_v18 = vsel %vm403_vm1, %v3037_v48, %v3038_v53  ;;  %v3044_v46 = vsel %vm403_vm1, %v3038_v53, %v3039_v23  ;;  %v6249_v14 = vpop.permute.xlu0 %2735  ;;  %v2556_v48 = vsel %vm947_vm7, %v6207_v43, %v2555_v28 }
 0x2ec   : > { %v3045_v15 = vsel %vm555_vm5, %v3030_v24, %v3044_v46  ;;  %v2096_v39 = vpop.permute.xlu1 %2095  ;;  %3518 = vmatpush1.bf16.msra.mxu1 %v4265_v19  ;;  %v3043_v12 = vsel %vm555_vm5, %v6172_v63, %v3042_v18  ;;  %v2742_v63 = vrot.slane %v6249_v14, 4 }
 0x2ed   : > { %v4273_v37 = vcombine.low %v2896_v45, %v3045_v15  ;;  %v4274_v44 = vcombine.high %v2896_v45, %v3045_v15  ;;  %v2102_v16 = vrot.slane %v2096_v39, 4  ;;  %v4271_v40 = vcombine.low %v2894_v60, %v3043_v12 }
 0x2ee   : > { %v4272_v42 = vcombine.high %v2894_v60, %v3043_v12  ;;  %v2748_v30 = vsel %vm403_vm1, %v2741_v56, %v2742_v63 }
 0x2ef   : > { %v2108_v0 = vsel %vm403_vm1, %v2101_v2, %v2102_v16  ;;  %3519 = vmatprep.subr.bf16.mxu1 %v4274_v44  ;;  %v2545_v10 = vpop.permute.xlu0 %2544  ;;  %v2749_v13 = vsel %vm864_vm6, %v6174_v33, %v2748_v30 }
 0x2f0   : > { %3476 = vmatprep.subr.bf16.mxu0 %v4272_v42  ;;  %v2394_v49 = vpop.permute.xlu1 %2393  ;;  %3520 = vmatpush1.bf16.msra.mxu1 %v4273_v37  ;;  %v2109_v2 = vsel %vm481_vm4, %v6182_v50, %v2108_v0  ;;  %v2258_v50 = vsel %vm638_vm8, %v6189_v4, %v2257_v21  ;;  %v2550_v38 = vrot.slane %v2545_v10, 4  ;;  %v4268_v60 = vcombine.high %v6044_v54, %v2749_v13 }
 0x2f1   : > { %v2400_v17 = vrot.slane %v2394_v49, 4  ;;  %3477 = vmatpush1.bf16.msra.mxu0 %v4271_v40  ;;  %4289 = vmatprep.subr.msk.bf16.mxu1 %vm403_vm1, %v4282_v62  ;;  %v4252_v47 = vcombine.high %v2109_v2, %v2258_v50  ;;  %v4251_v56 = vcombine.low %v2109_v2, %v2258_v50  ;;  %v4267_v62 = vcombine.low %v6044_v54, %v2749_v13 }
 0x2f2   : > { %4287 = vmatprep.subr.msk.bf16.mxu0 %vm403_vm1, %v4280_v29  ;;  %v2557_v53 = vsel %vm403_vm1, %v2549_v11, %v2550_v38 }
 0x2f3   : > { %v2406_v5 = vsel %vm403_vm1, %v2399_v52, %v2400_v17  ;;  %v6278_v27 = vpop.permute.xlu0 %3033  ;;  %v2110_v52 = vsel %vm403_vm1, %v2102_v16, %v2103_v59  ;;  %v2558_v37 = vsel %vm947_vm7, %v6222_v6, %v2557_v53 }
 0x2f4   : > { %v2247_v61 = vpop.permute.xlu1 %2246  ;;  %3522 = vmatpush1.bf16.msra.mxu1 %v3453_v26  ;;  %v2407_v4 = vsel %vm790_vm3, %v6187_v51, %v2406_v5  ;;  %v2111_v31 = vsel %vm481_vm4, %v2096_v39, %v2110_v52  ;;  %v3040_v51 = vrot.slane %v6278_v27, 4 }
 0x2f5   : > { %v2252_v8 = vrot.slane %v2247_v61, 4  ;;  %3479 = vmatpush1.bf16.msra.mxu0 %v3447_v20  ;;  %v4260_v9 = vcombine.high %v2407_v4, %v2556_v48  ;;  %v4259_v15 = vcombine.low %v2407_v4, %v2556_v48  ;;  %v3954_v4 = vld [vmem:[%s6397_s7] sm:$0xff]  ;;  %v3955_v48 = vld [vmem:[%s6397_s7 + $0x8] sm:$0xff] }
 0x2f6   : > { %3556 = vmatprep.subr.bf16.mxu0 %v4252_v47  ;;  %v3046_v39 = vsel %vm403_vm1, %v3039_v23, %v3040_v51  ;;  %v3658_v47 = vld [vmem:[%s6392_s2] sm:$0xff] }
 0x2f7   : > { %v2259_v24 = vsel %vm403_vm1, %v2251_v22, %v2252_v8  ;;  %4290 = vmatmul.mubr.msk.bf16.vlgmr.msra.gmra.mrb[12].mxu1 %vm3442_vm11, %v6286_v57  ;;  %v6302_v25 = vpop.permute.xlu0 %3182  ;;  %v6444_v22 = vmov 0   ;;  %v3666_v8 = vcombine.high %v3658_v47, %v3658_v47 }
 0x2f8   : > { %4288 = vmatmul.mubr.msk.bf16.vlgmr.msra.gmra.mrb[4].mxu0 %vm3442_vm11, %v6286_v57  ;;  %v2396_v43 = vpop.permute.xlu1 %2395  ;;  %v2260_v19 = vsel %vm638_vm8, %v6205_v34, %v2259_v24  ;;  %3631 = vmatprep.mubr.bf16.mxu1 %v6444_v22  ;;  %v3189_v18 = vrot.slane %v6302_v25, 4  ;;  %v4414_v24 = vpack.c.bf16 %v3955_v48, %v3954_v4 }
 0x2f9   : > { %v2401_v46 = vrot.slane %v2396_v43, 4  ;;  %3557 = vmatpush1.bf16.msra.mxu0 %v4251_v56  ;;  %v4253_v32 = vcombine.low %v2111_v31, %v2260_v19  ;;  %v4254_v33 = vcombine.high %v2111_v31, %v2260_v19  ;;  %3588 = vmatprep.mubr.bf16.mxu0 %v6444_v22  ;;  %v4479_v31 = vmov 0.0|0.0  }
 0x2fa   : > { %3558 = vmatprep.subr.bf16.mxu0 %v4260_v9  ;;  %v3195_v44 = vsel %vm403_vm1, %v3188_v1, %v3189_v18  ;;  %v3047_v1 = vsel %vm555_vm5, %v6178_v41, %v3046_v39 }
 0x2fb   : > { %v2408_v45 = vsel %vm403_vm1, %v2400_v17, %v2401_v46  ;;  %3599 = vmatprep.subr.bf16.mxu1 %v4254_v33  ;;  %v3036_v42 = vpop.permute.xlu0 %3035  ;;  %v3196_v0 = vsel %vm401_vm0, %v6170_v35, %v3195_v44 }
 0x2fc   : > { %v2885_v34 = vpop.permute.xlu1 %2884  ;;  %3600 = vmatpush1.bf16.msra.mxu1 %v4253_v32  ;;  %v2409_v12 = vsel %vm790_vm3, %v2394_v49, %v2408_v45  ;;  %v3041_v10 = vrot.slane %v3036_v42, 4  ;;  %v4284_v29 = vcombine.high %v3196_v0, %v3196_v0  ;;  %v4283_v17 = vcombine.low %v3196_v0, %v3196_v0 }
 0x2fd   : > { %v2891_v16 = vrot.slane %v2885_v34, 4  ;;  %3559 = vmatpush1.bf16.msra.mxu0 %v4259_v15  ;;  %v4261_v40 = vcombine.low %v2409_v12, %v2558_v37  ;;  %v4262_v36 = vcombine.high %v2409_v12, %v2558_v37 }
 0x2fe   : > { %3560 = vmatprep.subr.bf16.mxu0 %v4268_v60  ;;  %v3048_v41 = vsel %vm403_vm1, %v3040_v51, %v3041_v10  ;;  %v3459_v28 = vsel %vm403_vm1, %v4283_v17, 0 }
 0x2ff   : > { %v2897_v23 = vsel %vm403_vm1, %v2890_v58, %v2891_v16  ;;  %3601 = vmatprep.subr.bf16.mxu1 %v4262_v36  ;;  %v3049_v5 = vsel %vm555_vm5, %v6278_v27, %v3048_v41 }
 0x300   : > { %v2738_v11 = vpop.permute.xlu1 %2737  ;;  %3602 = vmatpush1.bf16.msra.mxu1 %v4261_v40  ;;  %v2898_v6 = vsel %vm712_vm2, %v6166_v3, %v2897_v23 }
 0x301   : > { %v2743_v7 = vrot.slane %v2738_v11, 4  ;;  %3561 = vmatpush1.bf16.msra.mxu0 %v4267_v62  ;;  %v4275_v21 = vcombine.low %v2898_v6, %v3047_v1  ;;  %v4276_v49 = vcombine.high %v2898_v6, %v3047_v1  ;;  %v3659_v1 = vld [vmem:[%s6392_s2 + $0x8] sm:$0xff] }
 0x302   : > { %v3667_v0 = vcombine.high %v3659_v1, %v3659_v1 }
 0x303   : > { %v2750_v54 = vsel %vm403_vm1, %v2742_v63, %v2743_v7  ;;  %3562 = vmatprep.subr.bf16.mxu0 %v4276_v49  ;;  %v3660_v7 = vld [vmem:[%s6392_s2 + $0x10] sm:$0xff] }
 0x304   : > { %v2887_v58 = vpop.permute.xlu1 %2886  ;;  %v2751_v3 = vsel %vm864_vm6, %v6249_v14, %v2750_v54  ;;  %v3668_v17 = vcombine.high %v3660_v7, %v3660_v7 }
 0x305   : > { %v2892_v2 = vrot.slane %v2887_v58, 4  ;;  %3563 = vmatpush1.bf16.msra.mxu0 %v4275_v21  ;;  %v4269_v35 = vcombine.low %v6102_v55, %v2751_v3  ;;  %v4270_v59 = vcombine.high %v6102_v55, %v2751_v3 }
 0x306   : > { %4291 = vmatprep.subr.msk.bf16.mxu0 %vm403_vm1, %v4284_v29 }
 0x307   : > { %v2899_v26 = vsel %vm403_vm1, %v2891_v16, %v2892_v2  ;;  %3603 = vmatprep.subr.bf16.mxu1 %v4270_v59 }
 0x308   : > { %v3185_v63 = vpop.permute.xlu1 %3184  ;;  %3604 = vmatpush1.bf16.msra.mxu1 %v4269_v35  ;;  %v2900_v14 = vsel %vm712_vm2, %v2885_v34, %v2899_v26 }
 0x309   : > { %v3190_v20 = vrot.slane %v3185_v63, 4  ;;  %3565 = vmatpush1.bf16.msra.mxu0 %v3459_v28  ;;  %v4277_v50 = vcombine.low %v2900_v14, %v3049_v5  ;;  %v4278_v30 = vcombine.high %v2900_v14, %v3049_v5 }
 0x30b   : > { %v3197_v55 = vsel %vm403_vm1, %v3189_v18, %v3190_v20  ;;  %3605 = vmatprep.subr.bf16.mxu1 %v4278_v30 }
 0x30c   : > { %v3198_v52 = vsel %vm401_vm0, %v6302_v25, %v3197_v55  ;;  %4292 = vmatmul.mubr.msk.bf16.vlgmr.msra.gmra.mrb[8].mxu0 %vm3442_vm11, %v6286_v57  ;;  %3606 = vmatpush1.bf16.msra.mxu1 %v4277_v50  ;;  %v3250_v56 = vpop.permute.xlu0 %3249 }
 0x30d   : > { %v4286_v38 = vcombine.high %v3198_v52, %v3198_v52  ;;  %v4285_v61 = vcombine.low %v3198_v52, %v3198_v52  ;;  %3738 = vmatprep.mubr.f32.mxu0 %v3666_v8 }
 0x30f   : > { %4293 = vmatprep.subr.msk.bf16.mxu1 %vm403_vm1, %v4286_v38  ;;  %v3465_v27 = vsel %vm403_vm1, %v4285_v61, 0 }
 0x310   : > { %3608 = vmatpush1.bf16.msra.mxu1 %v3465_v27 }
 0x311   : > { %4413 = vmatprep.subr.bf16.mxu1 %v4479_v31 }
 0x313   : > { %4294 = vmatmul.mubr.msk.bf16.vlgmr.msra.gmra.mrb[16].mxu1 %vm3442_vm11, %v6286_v57 }
 0x314   : > { %4415 = vmatpush3.bf16.msra.mxu1 %v4414_v24 }
 0x319   : > { %v3255_v25 = vpop.permute.xlu1 %3254 }
 0x3ca   : > { %v3547_v57 = vpop.f32.mrb[12].mxu1 }
 0x3cb   : > { %v3504_v13 = vpop.f32.mrb[4].mxu0  ;;  %v3548_v53 = vadd.f32 %v3547_v57, %v3250_v56  ;;  %v3549_v51 = vpop.f32.mrb[13].mxu1 }
 0x3cc   : > { %v3505_v43 = vadd.f32 %v3504_v13, %v3250_v56  ;;  %v3506_v9 = vpop.f32.mrb[5].mxu0  ;;  %v3550_v19 = vadd.f32 %v3549_v51, %v3250_v56  ;;  %v3551_v22 = vpop.f32.mrb[14].mxu1  ;;  %v4295_v13 = vld [vmem:[%s6398_s8] ss:$0 sm:$0xff] }
 0x3cd   : > { %v3507_v18 = vadd.f32 %v3506_v9, %v3250_v56  ;;  %v3508_v46 = vpop.f32.mrb[6].mxu0  ;;  %v3552_v32 = vadd.f32 %v3551_v22, %v3255_v25  ;;  %v3553_v33 = vpop.f32.mrb[15].mxu1  ;;  %v3644_v34 = vmax.f32 %v3548_v53, 0.0 }
 0x3ce   : > { %v3509_v45 = vadd.f32 %v3508_v46, %v3255_v25  ;;  %v3510_v15 = vpop.f32.mrb[7].mxu0  ;;  %v3554_v39 = vadd.f32 %v3553_v33, %v3255_v25  ;;  %v3642_v37 = vmax.f32 %v3505_v43, 0.0  ;;  %v3645_v44 = vmax.f32 %v3550_v19, 0.0 }
 0x3cf   : > { %v3652_v60 = vmax.f32 %v3552_v32, 0.0  ;;  %v3511_v12 = vadd.f32 %v3510_v15, %v3255_v25  ;;  %v3643_v36 = vmax.f32 %v3507_v18, 0.0 }
 0x3d0   : > { %v3650_v16 = vmax.f32 %v3509_v45, 0.0  ;;  %v3653_v40 = vmax.f32 %v3554_v39, 0.0 }
 0x3d1   : > { %v4403_v42 = vpack.c.bf16 %v3652_v60, %v3644_v34  ;;  %v3651_v23 = vmax.f32 %v3511_v12, 0.0 }
 0x3d2   : > { %v4399_v62 = vpack.c.bf16 %v3650_v16, %v3642_v37  ;;  %v4401_v11 = vpack.c.bf16 %v3653_v40, %v3645_v44 }
 0x3d3   : > { %v4397_v6 = vpack.c.bf16 %v3651_v23, %v3643_v36 }
 0x3d5   : > { %4398 = vmatprep.subr.bf16.mxu0 %v4397_v6 }
 0x3d6   : > { %4400 = vmatpush1.bf16.xpose.msra.mxu0 %v4399_v62 }
 0x3d7   : > { %4402 = vmatprep.subr.bf16.mxu0 %v4401_v11 }
 0x3dd   : > { %3739 = vmatmul.mubr.f32.vlgmr.msra.gmra.mrb[12].mxu0 %v3658_v47  ;;  %v3661_v47 = vld [vmem:[%s6392_s2 + $0x18] sm:$0xff] }
 0x3de   : > { %4404 = vmatpush1.bf16.xpose.msra.mxu0 %v4403_v42  ;;  %3808 = vmatprep.mubr.f32.mxu0 %v3667_v0  ;;  %v3669_v24 = vcombine.high %v3661_v47, %v3661_v47 }
 0x3df   : > { %v3590_v10 = vpop.f32.mrb[8].mxu0 }
 0x3e0   : > { %v3591_v21 = vadd.f32 %v3590_v10, %v3250_v56  ;;  %v3592_v49 = vpop.f32.mrb[9].mxu0 }
 0x3e1   : > { %v3593_v54 = vadd.f32 %v3592_v49, %v3250_v56  ;;  %v3594_v58 = vpop.f32.mrb[10].mxu0 }
 0x3e2   : > { %v3595_v29 = vadd.f32 %v3594_v58, %v3255_v25  ;;  %v3596_v3 = vpop.f32.mrb[11].mxu0  ;;  %v3646_v2 = vmax.f32 %v3591_v21, 0.0 }
 0x3e3   : > { %v3597_v41 = vadd.f32 %v3596_v3, %v3255_v25  ;;  %v3647_v59 = vmax.f32 %v3593_v54, 0.0 }
 0x3e4   : > { %v3654_v35 = vmax.f32 %v3595_v29, 0.0 }
 0x3e5   : > { %v3655_v26 = vmax.f32 %v3597_v41, 0.0  ;;  %3809 = vmatmul.mubr.f32.vlgmr.msra.gmra.mrb[12].mxu0 %v3659_v1 }
 0x3e6   : > { %v4407_v63 = vpack.c.bf16 %v3654_v35, %v3646_v2  ;;  %v3633_v28 = vpop.f32.mrb[16].mxu1  ;;  %3878 = vmatprep.mubr.f32.mxu0 %v3668_v17 }
 0x3e7   : > { %v4405_v14 = vpack.c.bf16 %v3655_v26, %v3647_v59  ;;  %v3634_v5 = vadd.f32 %v3633_v28, %v3250_v56  ;;  %v3635_v20 = vpop.f32.mrb[17].mxu1 }
 0x3e8   : > { %v3636_v50 = vadd.f32 %v3635_v20, %v3250_v56  ;;  %v3637_v30 = vpop.f32.mrb[18].mxu1  ;;  %v6445_v56 = vmov 0.0  }
 0x3e9   : > { %v3638_v55 = vadd.f32 %v3637_v30, %v3255_v25  ;;  %4406 = vmatprep.subr.bf16.mxu0 %v4405_v14  ;;  %v3639_v52 = vpop.f32.mrb[19].mxu1  ;;  %v3648_v61 = vmax.f32 %v3634_v5, 0.0  ;;  %4394 = vmatprep.mubr.msk.f32.mxu1 %vm4480_vm12, %v6445_v56 }
 0x3ea   : > { %v3640_v38 = vadd.f32 %v3639_v52, %v3255_v25  ;;  %4408 = vmatpush1.bf16.xpose.msra.mxu0 %v4407_v63  ;;  %v3649_v8 = vmax.f32 %v3636_v50, 0.0 }
 0x3eb   : > { %v3656_v27 = vmax.f32 %v3638_v55, 0.0 }
 0x3ec   : > { %v3657_v4 = vmax.f32 %v3640_v38, 0.0 }
 0x3ed   : > { %v4411_v48 = vpack.c.bf16 %v3656_v27, %v3648_v61 }
 0x3ee   : > { %v4409_v31 = vpack.c.bf16 %v3657_v4, %v3649_v8 }
 0x3f0   : > { %4410 = vmatprep.subr.bf16.mxu0 %v4409_v31 }
 0x3f1   : > { %3879 = vmatmul.mubr.f32.vlgmr.msra.gmra.mrb[12].mxu0 %v3660_v7 }
 0x3f2   : > { %4412 = vmatpush1.bf16.xpose.msra.mxu0 %v4411_v48  ;;  %3948 = vmatprep.mubr.f32.mxu0 %v3669_v24 }
 0x3f9   : > { %3949 = vmatmul.mubr.f32.vlgmr.msra.gmra.mrb[12].mxu0 %v3661_v47 }
 0x4cc   : > { %v3950_v57 = vpop.f32.mrb[12].mxu0 }
 0x4cd   : > { %v3952_v25 = vpop.f32.mrb[13].mxu0  ;;  %4395 = vmatmul.mubr.msk.f32.vlgmr.msra.gmra.mrb[20].mxu1 %vm638_vm8, %v3950_v57 }
 0x5a0   : > { %v4032_v53 = vpop.f32.mrb[20].mxu1 }
 0x5a1   : > { %v4033_v51 = vadd.f32 %v4295_v13, %v4032_v53  ;;  %v4396_v43 = vpop.f32.mrb[21].mxu1 }
 0x5a3   : > { %4036 = vst [vmem:[%s332_s29] sm:$0xf] %v4033_v51 }
 0x5a4 PF: > { %s19_s30 = sadd.s32 1, %s4467_s30  }
 0x5a5   : > { %p16_p5 = scmp.ge.s32.totalorder %s19_s30, 4  }
 0x5a7   :  { %18 = sbr.rel (!%p16_p5) target bundleno = 1 (0x1), region = 93 }

</bundles_post_ra>
